<compile_context>
chip_gen: v7x
topology: tpu7x:2x2x1
jax: 0.10.0
libtpu: 0.0.40
codegen_flags: <defaults>
</compile_context>

<pallas_src>
import functools

import numpy as np
import jax
import jax.numpy as jnp
from jax.experimental import pallas as pl
from jax.experimental.pallas import tpu as pltpu


_LAYER_CFG = ((1, 0), (2, 1), (2, 1), (2, 1))   # (stride, padding) per layer, K = 4


# ----------------------------------------------------------------------------
# Fused 4-layer kernel: one batch tile (bt samples) per grid step
# ----------------------------------------------------------------------------
def _generator_kernel(*refs, bt, n_channels):
    """Layout: channels on sublanes, time (bt samples concatenated) on lanes.

    Per layer:  y = W_allT @ x  (one matmul, all K taps stacked on M),
                out = sum_m  y[m-th tap] @ S_m   (bf16 0/1 scatter, tree-summed),
                + bias, ReLU / Tanh.
    The final layer writes NCL output blocks directly (no padding / transpose)."""
    z_ref, out_ref = refs[0], refs[-1]
    layer_refs = refs[1:-1]
    n_layers = len(layer_refs) // 3

    x = z_ref[0].astype(jnp.bfloat16)                    # (C_in0, bt*L_in)
    res = None
    for li in range(n_layers):
        w_ref, b_ref, s_ref = layer_refs[3 * li: 3 * li + 3]
        c_out = b_ref.shape[0]                           # padded to a multiple of 8
        k = s_ref.shape[0]

        # Main matmul: bf16 operands, f32 accumulation, M = K*C_out.
        y = jnp.dot(w_ref[...], x, preferred_element_type=jnp.float32)   # (k*c_out, lanes_in)

        # Overlap-add / interleave: K tiny bf16 0/1 matmuls (exact), balanced tree sum.
        parts = []
        for m in range(k):
            y_m = y[m * c_out:(m + 1) * c_out, :].astype(jnp.bfloat16)
            parts.append(jnp.dot(y_m, s_ref[m], preferred_element_type=jnp.float32))
        while len(parts) > 1:
            nxt = [parts[i] + parts[i + 1] for i in range(0, len(parts) - 1, 2)]
            if len(parts) % 2:
                nxt.append(parts[-1])
            parts = nxt
        acc = parts[0] + b_ref[...]                      # bias once, at the end

        if li < n_layers - 1:
            x = jnp.maximum(acc, 0.0).astype(jnp.bfloat16)
        else:
            res = jnp.tanh(acc)                          # (c_out_pad, bt*L_out) f32

    l_out = out_ref.shape[2]
    for b in range(bt):                                  # NCL blocks, real channels only
        out_ref[b] = res[:n_channels, b * l_out:(b + 1) * l_out].astype(out_ref.dtype)


# ----------------------------------------------------------------------------
# Host-side helpers (hoisted out of the hot path)
# ----------------------------------------------------------------------------
@functools.lru_cache(maxsize=None)
def _scatter_blocks(bt, l_in, stride, padding, k):
    """0/1 ConvTranspose1d output scatter, block-diagonal over one batch tile.

    S[m, b*l_in + j, b*l_out + t] = 1 iff t == stride*j - padding + m.
    Size scales with bt^2 (a fixed tile size), NOT with the full batch N."""
    l_out = (l_in - 1) * stride - 2 * padding + k
    s = np.zeros((k, bt * l_in, bt * l_out), np.float32)
    for m in range(k):
        for b in range(bt):
            for j in range(l_in):
                t = stride * j - padding + m
                if 0 <= t < l_out:
                    s[m, b * l_in + j, b * l_out + t] = 1.0
    return s, l_out


def prepare_kernel_params(params):
    """One-time weight prep: PyTorch ConvTranspose1d weight (C_in, C_out, K) ->
    W_allT (K*C_out_pad, C_in) bf16 with W_allT[m*C_out+o, c] = W[c, o, m];
    bias -> (C_out_pad, 1) f32.  C_out padded only to a multiple of 8 (last layer
    4 -> 8; no more 128-wide padding)."""
    kparams = []
    for (w, b) in params:
        c_in, c_out, k = w.shape
        c_pad = max(8, ((c_out + 7) // 8) * 8)
        if c_pad != c_out:
            w = jnp.pad(w, ((0, 0), (0, c_pad - c_out), (0, 0)))
            b = jnp.pad(b, (0, c_pad - c_out))
        w_all_t = jnp.transpose(w, (2, 1, 0)).reshape(k * c_pad, c_in).astype(jnp.bfloat16)
        b_col = b.reshape(c_pad, 1).astype(jnp.float32)
        kparams.append((w_all_t, b_col))
    return tuple(kparams)


def init_generator_params(key, latent_dim, n_channels):
    """Deterministic synthetic init; shapes match the PyTorch module
    (ConvTranspose1d weight layout (C_in, C_out, K))."""
    k = 4
    dims = [(latent_dim, 512), (512, 256), (256, 128), (128, n_channels)]
    params = []
    for (cin, cout) in dims:
        key, kw, kb = jax.random.split(key, 3)
        scale = 1.0 / float(np.sqrt(cin * k))
        w = jax.random.uniform(kw, (cin, cout, k), jnp.float32, -scale, scale)
        b = jax.random.uniform(kb, (cout,), jnp.float32, -scale, scale)
        params.append((w, b))
    return params


def _pick_batch_tile(n, l_final):
    """Largest divisor of n such that the final-layer lane count bt*l_final <~ 256."""
    target = max(1, 256 // max(1, l_final))
    bt = 1
    for d in range(1, n + 1):
        if n % d == 0 and d <= target:
            bt = d
    return bt


# ----------------------------------------------------------------------------
# Forward pass: single pallas_call, grid over batch tiles
# ----------------------------------------------------------------------------
@functools.partial(jax.jit, static_argnames=("n_channels",))
def generator_forward(kparams, z, *, n_channels):
    """z: (N, latent_dim, L) NCL -> (N, n_channels, L_out) NCL."""
    n, c0, l_in = z.shape

    # Static per-layer length bookkeeping.
    lengths = [l_in]
    for (w2, b_col), (stride, padding) in zip(kparams, _LAYER_CFG):
        k = w2.shape[0] // b_col.shape[0]
        lengths.append((lengths[-1] - 1) * stride - 2 * padding + k)
    l_final = lengths[-1]

    bt = _pick_batch_tile(n, l_final)
    grid = (n // bt,)

    # Tiny wrapper rearrange of the latent into per-tile channels-first layout
    # (c0, bt*l_in) with the tile's samples concatenated along lanes.
    z_t = (z.reshape(n // bt, bt, c0, l_in)
             .transpose(0, 2, 1, 3)
             .reshape(n // bt, c0, bt * l_in)
             .astype(jnp.float32))

    inputs = [z_t]
    in_specs = [pl.BlockSpec((1, c0, bt * l_in), lambda i: (i, 0, 0))]
    for li, ((w2, b_col), (stride, padding)) in enumerate(zip(kparams, _LAYER_CFG)):
        c_pad = b_col.shape[0]
        k = w2.shape[0] // c_pad
        s_np, _ = _scatter_blocks(bt, lengths[li], stride, padding, k)
        s_bf = jnp.asarray(s_np, dtype=jnp.bfloat16)          # 0/1 is exact in bf16
        inputs += [w2, b_col, s_bf]
        in_specs += [
            pl.BlockSpec(w2.shape, lambda i: (0, 0)),          # weights: resident
            pl.BlockSpec(b_col.shape, lambda i: (0, 0)),
            pl.BlockSpec(s_bf.shape, lambda i: (0, 0, 0)),
        ]

    out = pl.pallas_call(
        functools.partial(_generator_kernel, bt=bt, n_channels=n_channels),
        out_shape=jax.ShapeDtypeStruct((n, n_channels, l_final), jnp.float32),
        grid=grid,
        in_specs=in_specs,
        out_specs=pl.BlockSpec((bt, n_channels, l_final), lambda i: (i, 0, 0)),
        compiler_params=pltpu.CompilerParams(
            dimension_semantics=("parallel",),
            vmem_limit_bytes=48 * 1024 * 1024),
    )(*inputs)
    return out                                               # already NCL


# ----------------------------------------------------------------------------
# Pure-JAX reference (PyTorch ConvTranspose1d semantics) for validation
# ----------------------------------------------------------------------------
def _reference_conv_transpose1d(x, w, b, stride, padding):
    n, c_in, l_in = x.shape
    _, c_out, k = w.shape
    l_out = (l_in - 1) * stride - 2 * padding + k
    out = jnp.zeros((n, c_out, l_out), jnp.float32)
    for j in range(l_in):
        for m in range(k):
            t = stride * j - padding + m
            if 0 <= t < l_out:
                out = out.at[:, :, t].add(
                    jnp.einsum("nc,co->no", x[:, :, j], w[:, :, m],
                               precision=jax.lax.Precision.HIGHEST))
    return out + b[None, :, None]


def _reference_forward(params, z):
    acts = ("relu", "relu", "relu", "tanh")
    x = z.astype(jnp.float32)
    for (w, b), (stride, padding), act in zip(params, _LAYER_CFG, acts):
        x = _reference_conv_transpose1d(x, w, b, stride, padding)
        x = jnp.maximum(x, 0.0) if act == "relu" else jnp.tanh(x)
    return x


if __name__ == "__main__":
    latent_dim, n_channels, batch, l_in = 32, 4, 2, 1

    key = jax.random.PRNGKey(0)
    key, zkey = jax.random.split(key)
    params = init_generator_params(key, latent_dim, n_channels)
    kparams = prepare_kernel_params(params)      # hoisted one-time weight prep
    z = jax.random.normal(zkey, (batch, latent_dim, l_in), jnp.float32)

    out = generator_forward(kparams, z, n_channels=n_channels)
    out = jax.block_until_ready(out)

    assert out.shape == (batch, n_channels, 32), out.shape
    assert bool(jnp.all(jnp.isfinite(out)))
    assert bool(jnp.all(jnp.abs(out) <= 1.0 + 1e-6))    # tanh output range

    ref = _reference_forward(params, z)
    max_err = float(jnp.max(jnp.abs(out - ref)))
    assert max_err < 5e-2, f"mismatch vs reference: {max_err}"

    print("KERNEL_OK")
</pallas_src>

<mosaic_0001>
module attributes {stable_mosaic.version = 11 : i64} {
  func.func @_generator_kernel(%arg0: i32, %arg1: memref<1x32x2xf32, #tpu.memory_space<vmem>>, %arg2: memref<2048x32xbf16, #tpu.memory_space<vmem>>, %arg3: memref<512x1xf32, #tpu.memory_space<vmem>>, %arg4: memref<4x2x8xbf16, #tpu.memory_space<vmem>>, %arg5: memref<1024x512xbf16, #tpu.memory_space<vmem>>, %arg6: memref<256x1xf32, #tpu.memory_space<vmem>>, %arg7: memref<4x8x16xbf16, #tpu.memory_space<vmem>>, %arg8: memref<512x256xbf16, #tpu.memory_space<vmem>>, %arg9: memref<128x1xf32, #tpu.memory_space<vmem>>, %arg10: memref<4x16x32xbf16, #tpu.memory_space<vmem>>, %arg11: memref<32x128xbf16, #tpu.memory_space<vmem>>, %arg12: memref<8x1xf32, #tpu.memory_space<vmem>>, %arg13: memref<4x32x64xbf16, #tpu.memory_space<vmem>>, %arg14: memref<2x4x32xf32, #tpu.memory_space<vmem>>) attributes {dimension_semantics = [#tpu.dimension_semantics<parallel>], iteration_bounds = array<i64: 1>, scalar_prefetch = 0 : i64, scratch_operands = 0 : i64, tpu.core_type = #tpu.core_type<tc>, window_params = [{transform_indices = @transform_0, window_bounds = array<i64: 1, 32, 2>}, {pipeline_mode = #tpu.pipeline_mode<synchronous>, transform_indices = @transform_1, window_bounds = array<i64: 2048, 32>}, {pipeline_mode = #tpu.pipeline_mode<synchronous>, transform_indices = @transform_2, window_bounds = array<i64: 512, 1>}, {pipeline_mode = #tpu.pipeline_mode<synchronous>, transform_indices = @transform_3, window_bounds = array<i64: 4, 2, 8>}, {pipeline_mode = #tpu.pipeline_mode<synchronous>, transform_indices = @transform_4, window_bounds = array<i64: 1024, 512>}, {pipeline_mode = #tpu.pipeline_mode<synchronous>, transform_indices = @transform_5, window_bounds = array<i64: 256, 1>}, {pipeline_mode = #tpu.pipeline_mode<synchronous>, transform_indices = @transform_6, window_bounds = array<i64: 4, 8, 16>}, {pipeline_mode = #tpu.pipeline_mode<synchronous>, transform_indices = @transform_7, window_bounds = array<i64: 512, 256>}, {pipeline_mode = #tpu.pipeline_mode<synchronous>, transform_indices = @transform_8, window_bounds = array<i64: 128, 1>}, {pipeline_mode = #tpu.pipeline_mode<synchronous>, transform_indices = @transform_9, window_bounds = array<i64: 4, 16, 32>}, {pipeline_mode = #tpu.pipeline_mode<synchronous>, transform_indices = @transform_10, window_bounds = array<i64: 32, 128>}, {pipeline_mode = #tpu.pipeline_mode<synchronous>, transform_indices = @transform_11, window_bounds = array<i64: 8, 1>}, {pipeline_mode = #tpu.pipeline_mode<synchronous>, transform_indices = @transform_12, window_bounds = array<i64: 4, 32, 64>}, {transform_indices = @transform_13, window_bounds = array<i64: 2, 4, 32>}]} {
    %c0 = arith.constant 0 : index
    %c0_0 = arith.constant 0 : index
    %c0_1 = arith.constant 0 : index
    %0 = vector.load %arg1[%c0, %c0_0, %c0_1] : memref<1x32x2xf32, #tpu.memory_space<vmem>>, vector<1x32x2xf32>
    %1 = vector.shape_cast %0 : vector<1x32x2xf32> to vector<32x2xf32>
    %2 = arith.truncf %1 : vector<32x2xf32> to vector<32x2xbf16>
    %c0_2 = arith.constant 0 : index
    %c0_3 = arith.constant 0 : index
    %3 = vector.load %arg2[%c0_2, %c0_3] : memref<2048x32xbf16, #tpu.memory_space<vmem>>, vector<2048x32xbf16>
    %cst = arith.constant dense<0.000000e+00> : vector<2048x2xf32>
    %4 = tpu.matmul %3, %2, %cst {dimension_numbers = #tpu.dot_dimension_numbers<[1], [0], [0], [1], [0, 0, 1, 1], [], []>} : vector<2048x32xbf16>, vector<32x2xbf16>, vector<2048x2xf32> -> vector<2048x2xf32>
    %5 = vector.extract_strided_slice %4 {offsets = [0, 0], sizes = [512, 2], strides = [1, 1]} : vector<2048x2xf32> to vector<512x2xf32>
    %6 = arith.truncf %5 : vector<512x2xf32> to vector<512x2xbf16>
    %c0_4 = arith.constant 0 : index
    %c0_5 = arith.constant 0 : index
    %c0_6 = arith.constant 0 : index
    %7 = vector.load %arg4[%c0_4, %c0_5, %c0_6] : memref<4x2x8xbf16, #tpu.memory_space<vmem>>, vector<1x2x8xbf16>
    %8 = vector.shape_cast %7 : vector<1x2x8xbf16> to vector<2x8xbf16>
    %cst_7 = arith.constant dense<0.000000e+00> : vector<512x8xf32>
    %9 = tpu.matmul %6, %8, %cst_7 {dimension_numbers = #tpu.dot_dimension_numbers<[1], [0], [0], [1], [0, 0, 1, 1], [], []>} : vector<512x2xbf16>, vector<2x8xbf16>, vector<512x8xf32> -> vector<512x8xf32>
    %10 = vector.extract_strided_slice %4 {offsets = [512, 0], sizes = [512, 2], strides = [1, 1]} : vector<2048x2xf32> to vector<512x2xf32>
    %11 = arith.truncf %10 : vector<512x2xf32> to vector<512x2xbf16>
    %c1 = arith.constant 1 : index
    %c0_8 = arith.constant 0 : index
    %c0_9 = arith.constant 0 : index
    %12 = vector.load %arg4[%c1, %c0_8, %c0_9] : memref<4x2x8xbf16, #tpu.memory_space<vmem>>, vector<1x2x8xbf16>
    %13 = vector.shape_cast %12 : vector<1x2x8xbf16> to vector<2x8xbf16>
    %cst_10 = arith.constant dense<0.000000e+00> : vector<512x8xf32>
    %14 = tpu.matmul %11, %13, %cst_10 {dimension_numbers = #tpu.dot_dimension_numbers<[1], [0], [0], [1], [0, 0, 1, 1], [], []>} : vector<512x2xbf16>, vector<2x8xbf16>, vector<512x8xf32> -> vector<512x8xf32>
    %15 = vector.extract_strided_slice %4 {offsets = [1024, 0], sizes = [512, 2], strides = [1, 1]} : vector<2048x2xf32> to vector<512x2xf32>
    %16 = arith.truncf %15 : vector<512x2xf32> to vector<512x2xbf16>
    %c2 = arith.constant 2 : index
    %c0_11 = arith.constant 0 : index
    %c0_12 = arith.constant 0 : index
    %17 = vector.load %arg4[%c2, %c0_11, %c0_12] : memref<4x2x8xbf16, #tpu.memory_space<vmem>>, vector<1x2x8xbf16>
    %18 = vector.shape_cast %17 : vector<1x2x8xbf16> to vector<2x8xbf16>
    %cst_13 = arith.constant dense<0.000000e+00> : vector<512x8xf32>
    %19 = tpu.matmul %16, %18, %cst_13 {dimension_numbers = #tpu.dot_dimension_numbers<[1], [0], [0], [1], [0, 0, 1, 1], [], []>} : vector<512x2xbf16>, vector<2x8xbf16>, vector<512x8xf32> -> vector<512x8xf32>
    %20 = vector.extract_strided_slice %4 {offsets = [1536, 0], sizes = [512, 2], strides = [1, 1]} : vector<2048x2xf32> to vector<512x2xf32>
    %21 = arith.truncf %20 : vector<512x2xf32> to vector<512x2xbf16>
    %c3 = arith.constant 3 : index
    %c0_14 = arith.constant 0 : index
    %c0_15 = arith.constant 0 : index
    %22 = vector.load %arg4[%c3, %c0_14, %c0_15] : memref<4x2x8xbf16, #tpu.memory_space<vmem>>, vector<1x2x8xbf16>
    %23 = vector.shape_cast %22 : vector<1x2x8xbf16> to vector<2x8xbf16>
    %cst_16 = arith.constant dense<0.000000e+00> : vector<512x8xf32>
    %24 = tpu.matmul %21, %23, %cst_16 {dimension_numbers = #tpu.dot_dimension_numbers<[1], [0], [0], [1], [0, 0, 1, 1], [], []>} : vector<512x2xbf16>, vector<2x8xbf16>, vector<512x8xf32> -> vector<512x8xf32>
    %25 = arith.addf %9, %14 : vector<512x8xf32>
    %26 = arith.addf %19, %24 : vector<512x8xf32>
    %27 = arith.addf %25, %26 : vector<512x8xf32>
    %c0_17 = arith.constant 0 : index
    %c0_18 = arith.constant 0 : index
    %28 = vector.load %arg3[%c0_17, %c0_18] : memref<512x1xf32, #tpu.memory_space<vmem>>, vector<512x1xf32>
    %29 = vector.broadcast %28 : vector<512x1xf32> to vector<512x8xf32>
    %30 = arith.addf %27, %29 : vector<512x8xf32>
    %cst_19 = arith.constant 0.000000e+00 : f32
    %31 = vector.broadcast %cst_19 : f32 to vector<512x8xf32>
    %32 = arith.maximumf %30, %31 : vector<512x8xf32>
    %33 = arith.truncf %32 : vector<512x8xf32> to vector<512x8xbf16>
    %c0_20 = arith.constant 0 : index
    %c0_21 = arith.constant 0 : index
    %34 = vector.load %arg5[%c0_20, %c0_21] : memref<1024x512xbf16, #tpu.memory_space<vmem>>, vector<1024x512xbf16>
    %cst_22 = arith.constant dense<0.000000e+00> : vector<1024x8xf32>
    %35 = tpu.matmul %34, %33, %cst_22 {dimension_numbers = #tpu.dot_dimension_numbers<[1], [0], [0], [1], [0, 0, 1, 1], [], []>} : vector<1024x512xbf16>, vector<512x8xbf16>, vector<1024x8xf32> -> vector<1024x8xf32>
    %36 = vector.extract_strided_slice %35 {offsets = [0, 0], sizes = [256, 8], strides = [1, 1]} : vector<1024x8xf32> to vector<256x8xf32>
    %37 = arith.truncf %36 : vector<256x8xf32> to vector<256x8xbf16>
    %c0_23 = arith.constant 0 : index
    %c0_24 = arith.constant 0 : index
    %c0_25 = arith.constant 0 : index
    %38 = vector.load %arg7[%c0_23, %c0_24, %c0_25] : memref<4x8x16xbf16, #tpu.memory_space<vmem>>, vector<1x8x16xbf16>
    %39 = vector.shape_cast %38 : vector<1x8x16xbf16> to vector<8x16xbf16>
    %cst_26 = arith.constant dense<0.000000e+00> : vector<256x16xf32>
    %40 = tpu.matmul %37, %39, %cst_26 {dimension_numbers = #tpu.dot_dimension_numbers<[1], [0], [0], [1], [0, 0, 1, 1], [], []>} : vector<256x8xbf16>, vector<8x16xbf16>, vector<256x16xf32> -> vector<256x16xf32>
    %41 = vector.extract_strided_slice %35 {offsets = [256, 0], sizes = [256, 8], strides = [1, 1]} : vector<1024x8xf32> to vector<256x8xf32>
    %42 = arith.truncf %41 : vector<256x8xf32> to vector<256x8xbf16>
    %c1_27 = arith.constant 1 : index
    %c0_28 = arith.constant 0 : index
    %c0_29 = arith.constant 0 : index
    %43 = vector.load %arg7[%c1_27, %c0_28, %c0_29] : memref<4x8x16xbf16, #tpu.memory_space<vmem>>, vector<1x8x16xbf16>
    %44 = vector.shape_cast %43 : vector<1x8x16xbf16> to vector<8x16xbf16>
    %cst_30 = arith.constant dense<0.000000e+00> : vector<256x16xf32>
    %45 = tpu.matmul %42, %44, %cst_30 {dimension_numbers = #tpu.dot_dimension_numbers<[1], [0], [0], [1], [0, 0, 1, 1], [], []>} : vector<256x8xbf16>, vector<8x16xbf16>, vector<256x16xf32> -> vector<256x16xf32>
    %46 = vector.extract_strided_slice %35 {offsets = [512, 0], sizes = [256, 8], strides = [1, 1]} : vector<1024x8xf32> to vector<256x8xf32>
    %47 = arith.truncf %46 : vector<256x8xf32> to vector<256x8xbf16>
    %c2_31 = arith.constant 2 : index
    %c0_32 = arith.constant 0 : index
    %c0_33 = arith.constant 0 : index
    %48 = vector.load %arg7[%c2_31, %c0_32, %c0_33] : memref<4x8x16xbf16, #tpu.memory_space<vmem>>, vector<1x8x16xbf16>
    %49 = vector.shape_cast %48 : vector<1x8x16xbf16> to vector<8x16xbf16>
    %cst_34 = arith.constant dense<0.000000e+00> : vector<256x16xf32>
    %50 = tpu.matmul %47, %49, %cst_34 {dimension_numbers = #tpu.dot_dimension_numbers<[1], [0], [0], [1], [0, 0, 1, 1], [], []>} : vector<256x8xbf16>, vector<8x16xbf16>, vector<256x16xf32> -> vector<256x16xf32>
    %51 = vector.extract_strided_slice %35 {offsets = [768, 0], sizes = [256, 8], strides = [1, 1]} : vector<1024x8xf32> to vector<256x8xf32>
    %52 = arith.truncf %51 : vector<256x8xf32> to vector<256x8xbf16>
    %c3_35 = arith.constant 3 : index
    %c0_36 = arith.constant 0 : index
    %c0_37 = arith.constant 0 : index
    %53 = vector.load %arg7[%c3_35, %c0_36, %c0_37] : memref<4x8x16xbf16, #tpu.memory_space<vmem>>, vector<1x8x16xbf16>
    %54 = vector.shape_cast %53 : vector<1x8x16xbf16> to vector<8x16xbf16>
    %cst_38 = arith.constant dense<0.000000e+00> : vector<256x16xf32>
    %55 = tpu.matmul %52, %54, %cst_38 {dimension_numbers = #tpu.dot_dimension_numbers<[1], [0], [0], [1], [0, 0, 1, 1], [], []>} : vector<256x8xbf16>, vector<8x16xbf16>, vector<256x16xf32> -> vector<256x16xf32>
    %56 = arith.addf %40, %45 : vector<256x16xf32>
    %57 = arith.addf %50, %55 : vector<256x16xf32>
    %58 = arith.addf %56, %57 : vector<256x16xf32>
    %c0_39 = arith.constant 0 : index
    %c0_40 = arith.constant 0 : index
    %59 = vector.load %arg6[%c0_39, %c0_40] : memref<256x1xf32, #tpu.memory_space<vmem>>, vector<256x1xf32>
    %60 = vector.broadcast %59 : vector<256x1xf32> to vector<256x16xf32>
    %61 = arith.addf %58, %60 : vector<256x16xf32>
    %cst_41 = arith.constant 0.000000e+00 : f32
    %62 = vector.broadcast %cst_41 : f32 to vector<256x16xf32>
    %63 = arith.maximumf %61, %62 : vector<256x16xf32>
    %64 = arith.truncf %63 : vector<256x16xf32> to vector<256x16xbf16>
    %c0_42 = arith.constant 0 : index
    %c0_43 = arith.constant 0 : index
    %65 = vector.load %arg8[%c0_42, %c0_43] : memref<512x256xbf16, #tpu.memory_space<vmem>>, vector<512x256xbf16>
    %cst_44 = arith.constant dense<0.000000e+00> : vector<512x16xf32>
    %66 = tpu.matmul %65, %64, %cst_44 {dimension_numbers = #tpu.dot_dimension_numbers<[1], [0], [0], [1], [0, 0, 1, 1], [], []>} : vector<512x256xbf16>, vector<256x16xbf16>, vector<512x16xf32> -> vector<512x16xf32>
    %67 = vector.extract_strided_slice %66 {offsets = [0, 0], sizes = [128, 16], strides = [1, 1]} : vector<512x16xf32> to vector<128x16xf32>
    %68 = arith.truncf %67 : vector<128x16xf32> to vector<128x16xbf16>
    %c0_45 = arith.constant 0 : index
    %c0_46 = arith.constant 0 : index
    %c0_47 = arith.constant 0 : index
    %69 = vector.load %arg10[%c0_45, %c0_46, %c0_47] : memref<4x16x32xbf16, #tpu.memory_space<vmem>>, vector<1x16x32xbf16>
    %70 = vector.shape_cast %69 : vector<1x16x32xbf16> to vector<16x32xbf16>
    %cst_48 = arith.constant dense<0.000000e+00> : vector<128x32xf32>
    %71 = tpu.matmul %68, %70, %cst_48 {dimension_numbers = #tpu.dot_dimension_numbers<[1], [0], [0], [1], [0, 0, 1, 1], [], []>} : vector<128x16xbf16>, vector<16x32xbf16>, vector<128x32xf32> -> vector<128x32xf32>
    %72 = vector.extract_strided_slice %66 {offsets = [128, 0], sizes = [128, 16], strides = [1, 1]} : vector<512x16xf32> to vector<128x16xf32>
    %73 = arith.truncf %72 : vector<128x16xf32> to vector<128x16xbf16>
    %c1_49 = arith.constant 1 : index
    %c0_50 = arith.constant 0 : index
    %c0_51 = arith.constant 0 : index
    %74 = vector.load %arg10[%c1_49, %c0_50, %c0_51] : memref<4x16x32xbf16, #tpu.memory_space<vmem>>, vector<1x16x32xbf16>
    %75 = vector.shape_cast %74 : vector<1x16x32xbf16> to vector<16x32xbf16>
    %cst_52 = arith.constant dense<0.000000e+00> : vector<128x32xf32>
    %76 = tpu.matmul %73, %75, %cst_52 {dimension_numbers = #tpu.dot_dimension_numbers<[1], [0], [0], [1], [0, 0, 1, 1], [], []>} : vector<128x16xbf16>, vector<16x32xbf16>, vector<128x32xf32> -> vector<128x32xf32>
    %77 = vector.extract_strided_slice %66 {offsets = [256, 0], sizes = [128, 16], strides = [1, 1]} : vector<512x16xf32> to vector<128x16xf32>
    %78 = arith.truncf %77 : vector<128x16xf32> to vector<128x16xbf16>
    %c2_53 = arith.constant 2 : index
    %c0_54 = arith.constant 0 : index
    %c0_55 = arith.constant 0 : index
    %79 = vector.load %arg10[%c2_53, %c0_54, %c0_55] : memref<4x16x32xbf16, #tpu.memory_space<vmem>>, vector<1x16x32xbf16>
    %80 = vector.shape_cast %79 : vector<1x16x32xbf16> to vector<16x32xbf16>
    %cst_56 = arith.constant dense<0.000000e+00> : vector<128x32xf32>
    %81 = tpu.matmul %78, %80, %cst_56 {dimension_numbers = #tpu.dot_dimension_numbers<[1], [0], [0], [1], [0, 0, 1, 1], [], []>} : vector<128x16xbf16>, vector<16x32xbf16>, vector<128x32xf32> -> vector<128x32xf32>
    %82 = vector.extract_strided_slice %66 {offsets = [384, 0], sizes = [128, 16], strides = [1, 1]} : vector<512x16xf32> to vector<128x16xf32>
    %83 = arith.truncf %82 : vector<128x16xf32> to vector<128x16xbf16>
    %c3_57 = arith.constant 3 : index
    %c0_58 = arith.constant 0 : index
    %c0_59 = arith.constant 0 : index
    %84 = vector.load %arg10[%c3_57, %c0_58, %c0_59] : memref<4x16x32xbf16, #tpu.memory_space<vmem>>, vector<1x16x32xbf16>
    %85 = vector.shape_cast %84 : vector<1x16x32xbf16> to vector<16x32xbf16>
    %cst_60 = arith.constant dense<0.000000e+00> : vector<128x32xf32>
    %86 = tpu.matmul %83, %85, %cst_60 {dimension_numbers = #tpu.dot_dimension_numbers<[1], [0], [0], [1], [0, 0, 1, 1], [], []>} : vector<128x16xbf16>, vector<16x32xbf16>, vector<128x32xf32> -> vector<128x32xf32>
    %87 = arith.addf %71, %76 : vector<128x32xf32>
    %88 = arith.addf %81, %86 : vector<128x32xf32>
    %89 = arith.addf %87, %88 : vector<128x32xf32>
    %c0_61 = arith.constant 0 : index
    %c0_62 = arith.constant 0 : index
    %90 = vector.load %arg9[%c0_61, %c0_62] : memref<128x1xf32, #tpu.memory_space<vmem>>, vector<128x1xf32>
    %91 = vector.broadcast %90 : vector<128x1xf32> to vector<128x32xf32>
    %92 = arith.addf %89, %91 : vector<128x32xf32>
    %cst_63 = arith.constant 0.000000e+00 : f32
    %93 = vector.broadcast %cst_63 : f32 to vector<128x32xf32>
    %94 = arith.maximumf %92, %93 : vector<128x32xf32>
    %95 = arith.truncf %94 : vector<128x32xf32> to vector<128x32xbf16>
    %c0_64 = arith.constant 0 : index
    %c0_65 = arith.constant 0 : index
    %96 = vector.load %arg11[%c0_64, %c0_65] : memref<32x128xbf16, #tpu.memory_space<vmem>>, vector<32x128xbf16>
    %cst_66 = arith.constant dense<0.000000e+00> : vector<32x32xf32>
    %97 = tpu.matmul %96, %95, %cst_66 {dimension_numbers = #tpu.dot_dimension_numbers<[1], [0], [0], [1], [0, 0, 1, 1], [], []>} : vector<32x128xbf16>, vector<128x32xbf16>, vector<32x32xf32> -> vector<32x32xf32>
    %98 = vector.extract_strided_slice %97 {offsets = [0, 0], sizes = [8, 32], strides = [1, 1]} : vector<32x32xf32> to vector<8x32xf32>
    %99 = arith.truncf %98 : vector<8x32xf32> to vector<8x32xbf16>
    %c0_67 = arith.constant 0 : index
    %c0_68 = arith.constant 0 : index
    %c0_69 = arith.constant 0 : index
    %100 = vector.load %arg13[%c0_67, %c0_68, %c0_69] : memref<4x32x64xbf16, #tpu.memory_space<vmem>>, vector<1x32x64xbf16>
    %101 = vector.shape_cast %100 : vector<1x32x64xbf16> to vector<32x64xbf16>
    %cst_70 = arith.constant dense<0.000000e+00> : vector<8x64xf32>
    %102 = tpu.matmul %99, %101, %cst_70 {dimension_numbers = #tpu.dot_dimension_numbers<[1], [0], [0], [1], [0, 0, 1, 1], [], []>} : vector<8x32xbf16>, vector<32x64xbf16>, vector<8x64xf32> -> vector<8x64xf32>
    %103 = vector.extract_strided_slice %97 {offsets = [8, 0], sizes = [8, 32], strides = [1, 1]} : vector<32x32xf32> to vector<8x32xf32>
    %104 = arith.truncf %103 : vector<8x32xf32> to vector<8x32xbf16>
    %c1_71 = arith.constant 1 : index
    %c0_72 = arith.constant 0 : index
    %c0_73 = arith.constant 0 : index
    %105 = vector.load %arg13[%c1_71, %c0_72, %c0_73] : memref<4x32x64xbf16, #tpu.memory_space<vmem>>, vector<1x32x64xbf16>
    %106 = vector.shape_cast %105 : vector<1x32x64xbf16> to vector<32x64xbf16>
    %cst_74 = arith.constant dense<0.000000e+00> : vector<8x64xf32>
    %107 = tpu.matmul %104, %106, %cst_74 {dimension_numbers = #tpu.dot_dimension_numbers<[1], [0], [0], [1], [0, 0, 1, 1], [], []>} : vector<8x32xbf16>, vector<32x64xbf16>, vector<8x64xf32> -> vector<8x64xf32>
    %108 = vector.extract_strided_slice %97 {offsets = [16, 0], sizes = [8, 32], strides = [1, 1]} : vector<32x32xf32> to vector<8x32xf32>
    %109 = arith.truncf %108 : vector<8x32xf32> to vector<8x32xbf16>
    %c2_75 = arith.constant 2 : index
    %c0_76 = arith.constant 0 : index
    %c0_77 = arith.constant 0 : index
    %110 = vector.load %arg13[%c2_75, %c0_76, %c0_77] : memref<4x32x64xbf16, #tpu.memory_space<vmem>>, vector<1x32x64xbf16>
    %111 = vector.shape_cast %110 : vector<1x32x64xbf16> to vector<32x64xbf16>
    %cst_78 = arith.constant dense<0.000000e+00> : vector<8x64xf32>
    %112 = tpu.matmul %109, %111, %cst_78 {dimension_numbers = #tpu.dot_dimension_numbers<[1], [0], [0], [1], [0, 0, 1, 1], [], []>} : vector<8x32xbf16>, vector<32x64xbf16>, vector<8x64xf32> -> vector<8x64xf32>
    %113 = vector.extract_strided_slice %97 {offsets = [24, 0], sizes = [8, 32], strides = [1, 1]} : vector<32x32xf32> to vector<8x32xf32>
    %114 = arith.truncf %113 : vector<8x32xf32> to vector<8x32xbf16>
    %c3_79 = arith.constant 3 : index
    %c0_80 = arith.constant 0 : index
    %c0_81 = arith.constant 0 : index
    %115 = vector.load %arg13[%c3_79, %c0_80, %c0_81] : memref<4x32x64xbf16, #tpu.memory_space<vmem>>, vector<1x32x64xbf16>
    %116 = vector.shape_cast %115 : vector<1x32x64xbf16> to vector<32x64xbf16>
    %cst_82 = arith.constant dense<0.000000e+00> : vector<8x64xf32>
    %117 = tpu.matmul %114, %116, %cst_82 {dimension_numbers = #tpu.dot_dimension_numbers<[1], [0], [0], [1], [0, 0, 1, 1], [], []>} : vector<8x32xbf16>, vector<32x64xbf16>, vector<8x64xf32> -> vector<8x64xf32>
    %118 = arith.addf %102, %107 : vector<8x64xf32>
    %119 = arith.addf %112, %117 : vector<8x64xf32>
    %120 = arith.addf %118, %119 : vector<8x64xf32>
    %c0_83 = arith.constant 0 : index
    %c0_84 = arith.constant 0 : index
    %121 = vector.load %arg12[%c0_83, %c0_84] : memref<8x1xf32, #tpu.memory_space<vmem>>, vector<8x1xf32>
    %122 = vector.broadcast %121 : vector<8x1xf32> to vector<8x64xf32>
    %123 = arith.addf %120, %122 : vector<8x64xf32>
    %124 = math.tanh %123 : vector<8x64xf32>
    %125 = vector.extract_strided_slice %124 {offsets = [0, 0], sizes = [4, 32], strides = [1, 1]} : vector<8x64xf32> to vector<4x32xf32>
    %c0_85 = arith.constant 0 : index
    %c0_86 = arith.constant 0 : index
    %c0_87 = arith.constant 0 : index
    %126 = vector.load %arg14[%c0_85, %c0_86, %c0_87] : memref<2x4x32xf32, #tpu.memory_space<vmem>>, vector<1x4x32xf32>
    %127 = vector.shape_cast %126 : vector<1x4x32xf32> to vector<4x32xf32>
    %128 = vector.shape_cast %125 : vector<4x32xf32> to vector<1x4x32xf32>
    tpu.vector_store %arg14[%c0_85, %c0_86, %c0_87], %128 {strides = array<i32>} : memref<2x4x32xf32, #tpu.memory_space<vmem>>, vector<1x4x32xf32>,
    %129 = vector.extract_strided_slice %124 {offsets = [0, 32], sizes = [4, 32], strides = [1, 1]} : vector<8x64xf32> to vector<4x32xf32>
    %c1_88 = arith.constant 1 : index
    %c0_89 = arith.constant 0 : index
    %c0_90 = arith.constant 0 : index
    %130 = vector.load %arg14[%c1_88, %c0_89, %c0_90] : memref<2x4x32xf32, #tpu.memory_space<vmem>>, vector<1x4x32xf32>
    %131 = vector.shape_cast %130 : vector<1x4x32xf32> to vector<4x32xf32>
    %132 = vector.shape_cast %129 : vector<4x32xf32> to vector<1x4x32xf32>
    tpu.vector_store %arg14[%c1_88, %c0_89, %c0_90], %132 {strides = array<i32>} : memref<2x4x32xf32, #tpu.memory_space<vmem>>, vector<1x4x32xf32>,
    return
  }
  func.func @transform_0(%arg0: i32) -> (i32, i32, i32) {
    %c0_i32 = arith.constant 0 : i32
    %c0_i32_0 = arith.constant 0 : i32
    %c0_i32_1 = arith.constant 0 : i32
    return %arg0, %c0_i32, %c0_i32_0 : i32, i32, i32
  }
  func.func @transform_1(%arg0: i32) -> (i32, i32) {
    %c0_i32 = arith.constant 0 : i32
    %c0_i32_0 = arith.constant 0 : i32
    %c0_i32_1 = arith.constant 0 : i32
    return %c0_i32, %c0_i32_0 : i32, i32
  }
  func.func @transform_2(%arg0: i32) -> (i32, i32) {
    %c0_i32 = arith.constant 0 : i32
    %c0_i32_0 = arith.constant 0 : i32
    %c0_i32_1 = arith.constant 0 : i32
    return %c0_i32, %c0_i32_0 : i32, i32
  }
  func.func @transform_3(%arg0: i32) -> (i32, i32, i32) {
    %c0_i32 = arith.constant 0 : i32
    %c0_i32_0 = arith.constant 0 : i32
    %c0_i32_1 = arith.constant 0 : i32
    %c0_i32_2 = arith.constant 0 : i32
    return %c0_i32, %c0_i32_0, %c0_i32_1 : i32, i32, i32
  }
  func.func @transform_4(%arg0: i32) -> (i32, i32) {
    %c0_i32 = arith.constant 0 : i32
    %c0_i32_0 = arith.constant 0 : i32
    %c0_i32_1 = arith.constant 0 : i32
    return %c0_i32, %c0_i32_0 : i32, i32
  }
  func.func @transform_5(%arg0: i32) -> (i32, i32) {
    %c0_i32 = arith.constant 0 : i32
    %c0_i32_0 = arith.constant 0 : i32
    %c0_i32_1 = arith.constant 0 : i32
    return %c0_i32, %c0_i32_0 : i32, i32
  }
  func.func @transform_6(%arg0: i32) -> (i32, i32, i32) {
    %c0_i32 = arith.constant 0 : i32
    %c0_i32_0 = arith.constant 0 : i32
    %c0_i32_1 = arith.constant 0 : i32
    %c0_i32_2 = arith.constant 0 : i32
    return %c0_i32, %c0_i32_0, %c0_i32_1 : i32, i32, i32
  }
  func.func @transform_7(%arg0: i32) -> (i32, i32) {
    %c0_i32 = arith.constant 0 : i32
    %c0_i32_0 = arith.constant 0 : i32
    %c0_i32_1 = arith.constant 0 : i32
    return %c0_i32, %c0_i32_0 : i32, i32
  }
  func.func @transform_8(%arg0: i32) -> (i32, i32) {
    %c0_i32 = arith.constant 0 : i32
    %c0_i32_0 = arith.constant 0 : i32
    %c0_i32_1 = arith.constant 0 : i32
    return %c0_i32, %c0_i32_0 : i32, i32
  }
  func.func @transform_9(%arg0: i32) -> (i32, i32, i32) {
    %c0_i32 = arith.constant 0 : i32
    %c0_i32_0 = arith.constant 0 : i32
    %c0_i32_1 = arith.constant 0 : i32
    %c0_i32_2 = arith.constant 0 : i32
    return %c0_i32, %c0_i32_0, %c0_i32_1 : i32, i32, i32
  }
  func.func @transform_10(%arg0: i32) -> (i32, i32) {
    %c0_i32 = arith.constant 0 : i32
    %c0_i32_0 = arith.constant 0 : i32
    %c0_i32_1 = arith.constant 0 : i32
    return %c0_i32, %c0_i32_0 : i32, i32
  }
  func.func @transform_11(%arg0: i32) -> (i32, i32) {
    %c0_i32 = arith.constant 0 : i32
    %c0_i32_0 = arith.constant 0 : i32
    %c0_i32_1 = arith.constant 0 : i32
    return %c0_i32, %c0_i32_0 : i32, i32
  }
  func.func @transform_12(%arg0: i32) -> (i32, i32, i32) {
    %c0_i32 = arith.constant 0 : i32
    %c0_i32_0 = arith.constant 0 : i32
    %c0_i32_1 = arith.constant 0 : i32
    %c0_i32_2 = arith.constant 0 : i32
    return %c0_i32, %c0_i32_0, %c0_i32_1 : i32, i32, i32
  }
  func.func @transform_13(%arg0: i32) -> (i32, i32, i32) {
    %c0_i32 = arith.constant 0 : i32
    %c0_i32_0 = arith.constant 0 : i32
    %c0_i32_1 = arith.constant 0 : i32
    return %arg0, %c0_i32, %c0_i32_0 : i32, i32, i32
  }
}

</mosaic_0001>

<bundles_post_ra>
// kernel: generator_forward.1
= control target key start
LH: loop header
LB: loop body
LE: loop exit
PB: predicated region body
PF: predicated region fallthrough
CT: control target
= control target key end

     0   :  { %18 = vsyncpa [#allocation3], 0  ;;  %s16960_s0 = inlined_call_operand.vmem [shape: f32[1,32,2], index: 0, kind: input, shape index: {}]   ;;  %s16961_s1 = inlined_call_operand.vmem [shape: bf16[2048,32], index: 1, kind: input, shape index: {}]   ;;  %s16962_s2 = inlined_call_operand.vmem [shape: f32[512,1], index: 2, kind: input, shape index: {}]   ;;  %s16963_s3 = inlined_call_operand.vmem [shape: bf16[4,2,8], index: 3, kind: input, shape index: {}]   ;;  %s16964_s4 = inlined_call_operand.vmem [shape: bf16[1024,512], index: 4, kind: input, shape index: {}]   ;;  %s16965_s5 = inlined_call_operand.vmem [shape: f32[256,1], index: 5, kind: input, shape index: {}]   ;;  %s16966_s6 = inlined_call_operand.vmem [shape: bf16[4,8,16], index: 6, kind: input, shape index: {}]   ;;  %s16967_s7 = inlined_call_operand.hbm [shape: bf16[512,256], index: 7, kind: input, shape index: {}]   ;;  %s16968_s8 = inlined_call_operand.vmem [shape: f32[128,1], index: 8, kind: input, shape index: {}]   ;;  %s16969_s9 = inlined_call_operand.vmem [shape: bf16[4,16,32], index: 9, kind: input, shape index: {}]   ;;  %s16970_s10 = inlined_call_operand.vmem [shape: bf16[32,128], index: 10, kind: input, shape index: {}]   ;;  %s16971_s11 = inlined_call_operand.vmem [shape: f32[8,1], index: 11, kind: input, shape index: {}]   ;;  %s16972_s12 = inlined_call_operand.vmem [shape: bf16[4,32,64], index: 12, kind: input, shape index: {}]   ;;  %s16973_s13 = inlined_call_operand.hbm [shape: f32[2,4,32], index: 13, kind: output, shape index: {}]  }
   0x1   :  { %19 = vsyncpa [#allocation4], 0  ;;  %s13559_s25 = smov [#allocation2]   ;;  %s13511_s29 = scalar_lea.hbm %s16967_s7, 8192 }
   0x2   :  { %s39_s26 = sshll.u32 %s13559_s25, 4  ;;  %p13512_p0 = scmp.ne.s32.totalorder %s16967_s7, %s13511_s29  ;;  %s40_s26 = int_to_ptr.vmem [resolvable:$true] %s39_s26 }
   0x3   :  { %p13515_p1 = scmp.lt.u32.totalorder %s13511_s29, %s16967_s7 }
   0x5   :  { %p13517_p2 = pnand %p13515_p1, %p13512_p0 }
   0x7   :  { %13520 = shalt.err (!%p13517_p2)
}
   0x8   :  { %s13521_s17 = scalar_lea.vmem %s40_s26, 8192  ;;  %p13526_p4 = scmp.lt.s32.totalorder %s40_s26, %s40_s26 }
   0x9   :  { %p13522_p3 = scmp.ne.s32.totalorder %s40_s26, %s13521_s17  ;;  %p13527_p5 = scmp.lt.s32.totalorder %s13521_s17, %s13521_s17 }
   0xb   :  { %p13528_p6 = por %p13527_p5, %p13526_p4 }
   0xd   :  { %p13529_p7 = pnand %p13528_p6, %p13522_p3 }
   0xf   :  { %13532 = shalt.err (!%p13529_p7)
}
  0x10   :  { %s13560_s18 = smov 128   ;;  %s13561_s19 = smov 8  }
  0x11   :  { %45 = dma.hbm_to_vmem [thread:$0]  %s16967_s7, 8192, %s40_s26, [#allocation3], %s13560_s18, %s13560_s18, %s13561_s19  }
  0x12   :  { %13555 = dma.done.wait [#allocation3], 8192  }
  0x13   :  { %13556 = vsyncadd [#allocation3], 4294959104  ;;  %v60_v0 = vld [vmem:[%s16960_s0] sm:$0xff]  ;;  %v61_v1 = vld [vmem:[%s16960_s0 + $0x8] sm:$0xff]  ;;  %vm962_vm0 = vcmask 261120   ;;  %vm2568_vm1 = vcmask 1040384  }
  0x14   :  { %v62_v2 = vld [vmem:[%s16960_s0 + $0x10] sm:$0xff]  ;;  %v64_v3 = vpack.c.bf16 %v61_v1, %v60_v0  ;;  %v63_v4 = vld [vmem:[%s16960_s0 + $0x18] sm:$0xff]  ;;  %v12887_v6 = vld [vmem:[%s16961_s1] sm:$0xff]   ;;  %vm2471_vm2 = vcmask 15360   ;;  %vm7411_vm3 = vcmask 1043456   ;;  %vm7362_vm4 = vcmask 64512  }
  0x15   :  { %v65_v5 = vpack.c.bf16 %v63_v4, %v62_v2  ;;  %11505 = vmatprep.mubr.msk.bf16.mxu0 %vm962_vm0, %v12887_v6  ;;  %v12888_v7 = vld [vmem:[%s16961_s1 + $0x8] sm:$0xff]   ;;  %v12889_v8 = vld [vmem:[%s16961_s1 + $0x10] sm:$0xff]   ;;  %v12890_v9 = vld [vmem:[%s16961_s1 + $0x18] sm:$0xff]   ;;  %vm9252_vm5 = vcmask 130048   ;;  %vm13564_vm6 = vmmov 0   ;;  %vm10246_vm7 = vcmask 257024  }
  0x16   :  { %11501 = vmatprep.subr.bf16.mxu0 %v64_v3  ;;  %v12891_v10 = vld [vmem:[%s16961_s1 + $0x20] sm:$0xff]   ;;  %v12892_v11 = vld [vmem:[%s16961_s1 + $0x28] sm:$0xff]   ;;  %v12893_v12 = vld [vmem:[%s16961_s1 + $0x30] sm:$0xff]   ;;  %s13566_s16 = smov [#allocation5]  }
  0x17   :  { %11502 = vmatpush3.bf16.msra.mxu0 %v64_v3  ;;  %v12894_v13 = vld [vmem:[%s16961_s1 + $0x38] sm:$0xff]   ;;  %v12895_v14 = vld [vmem:[%s16961_s1 + $0x40] sm:$0xff]   ;;  %v12896_v15 = vld [vmem:[%s16961_s1 + $0x48] sm:$0xff]  }
  0x18   :  { %11503 = vmatprep.subr.bf16.mxu0 %v65_v5  ;;  %v12897_v16 = vld [vmem:[%s16961_s1 + $0x50] sm:$0xff]   ;;  %v12898_v17 = vld [vmem:[%s16961_s1 + $0x58] sm:$0xff]   ;;  %v12899_v18 = vld [vmem:[%s16961_s1 + $0x60] sm:$0xff]  }
  0x19   :  { %v12900_v19 = vld [vmem:[%s16961_s1 + $0x68] sm:$0xff]   ;;  %v12901_v20 = vld [vmem:[%s16961_s1 + $0x70] sm:$0xff]   ;;  %v12902_v21 = vld [vmem:[%s16961_s1 + $0x78] sm:$0xff]  }
  0x1a   :  { %v12903_v22 = vld [vmem:[%s16961_s1 + $0x80] sm:$0xff]   ;;  %v12904_v23 = vld [vmem:[%s16961_s1 + $0x88] sm:$0xff]   ;;  %v12905_v24 = vld [vmem:[%s16961_s1 + $0x90] sm:$0xff]  }
  0x1b   :  { %11504 = vmatpush3.bf16.msra.mxu0 %v65_v5  ;;  %v12906_v25 = vld [vmem:[%s16961_s1 + $0x98] sm:$0xff]   ;;  %v12907_v26 = vld [vmem:[%s16961_s1 + $0xa0] sm:$0xff]   ;;  %v12908_v27 = vld [vmem:[%s16961_s1 + $0xa8] sm:$0xff]  }
  0x1c   :  { %v12909_v28 = vld [vmem:[%s16961_s1 + $0xb0] sm:$0xff]   ;;  %v12910_v29 = vld [vmem:[%s16961_s1 + $0xb8] sm:$0xff]   ;;  %v12911_v30 = vld [vmem:[%s16961_s1 + $0xc0] sm:$0xff]  }
  0x1d   :  { %v12912_v31 = vld [vmem:[%s16961_s1 + $0xc8] sm:$0xff]   ;;  %v12913_v32 = vld [vmem:[%s16961_s1 + $0xd0] sm:$0xff]   ;;  %v12914_v33 = vld [vmem:[%s16961_s1 + $0xd8] sm:$0xff]  }
  0x1e   :  { %11506 = vmatmul.mubr.msk.bf16.vlgmr.msra.gmra.mrb[0].mxu0 %vm962_vm0, %v12888_v7  ;;  %v12915_v34 = vld [vmem:[%s16961_s1 + $0xe0] sm:$0xff]   ;;  %v12916_v35 = vld [vmem:[%s16961_s1 + $0xe8] sm:$0xff]   ;;  %v12917_v36 = vld [vmem:[%s16961_s1 + $0xf0] sm:$0xff]  }
  0x1f   :  { %11509 = vmatprep.mubr.msk.bf16.mxu0 %vm962_vm0, %v12889_v8  ;;  %v12918_v37 = vld [vmem:[%s16961_s1 + $0xf8] sm:$0xff]   ;;  %v12919_v38 = vld [vmem:[%s16961_s1 + $0x100] sm:$0xff]   ;;  %v12920_v39 = vld [vmem:[%s16961_s1 + $0x108] sm:$0xff]  }
  0x20   :  { %v12921_v40 = vld [vmem:[%s16961_s1 + $0x110] sm:$0xff]   ;;  %v12922_v41 = vld [vmem:[%s16961_s1 + $0x118] sm:$0xff]   ;;  %v12923_v42 = vld [vmem:[%s16961_s1 + $0x120] sm:$0xff]  }
  0x21   :  { %v12924_v43 = vld [vmem:[%s16961_s1 + $0x128] sm:$0xff]   ;;  %v12925_v44 = vld [vmem:[%s16961_s1 + $0x130] sm:$0xff]   ;;  %v12926_v45 = vld [vmem:[%s16961_s1 + $0x138] sm:$0xff]  }
  0x22   :  { %v12927_v46 = vld [vmem:[%s16961_s1 + $0x140] sm:$0xff]   ;;  %v12928_v47 = vld [vmem:[%s16961_s1 + $0x148] sm:$0xff]   ;;  %v12929_v48 = vld [vmem:[%s16961_s1 + $0x150] sm:$0xff]  }
  0x23   :  { %v12930_v49 = vld [vmem:[%s16961_s1 + $0x158] sm:$0xff]   ;;  %v12931_v50 = vld [vmem:[%s16961_s1 + $0x160] sm:$0xff]   ;;  %v12932_v51 = vld [vmem:[%s16961_s1 + $0x168] sm:$0xff]  }
  0x24   :  { %v12933_v52 = vld [vmem:[%s16961_s1 + $0x170] sm:$0xff]   ;;  %v12934_v53 = vld [vmem:[%s16961_s1 + $0x178] sm:$0xff]   ;;  %v12935_v54 = vld [vmem:[%s16961_s1 + $0x180] sm:$0xff]  }
  0x25   :  { %v12936_v55 = vld [vmem:[%s16961_s1 + $0x188] sm:$0xff]   ;;  %v12937_v56 = vld [vmem:[%s16961_s1 + $0x190] sm:$0xff]   ;;  %v12938_v57 = vld [vmem:[%s16961_s1 + $0x198] sm:$0xff]  }
  0x26   :  { %11510 = vmatmul.mubr.msk.bf16.gmra.mrb[4].mxu0 %vm962_vm0, %v12890_v9  ;;  %v12939_v58 = vld [vmem:[%s16961_s1 + $0x1a0] sm:$0xff]   ;;  %v12940_v59 = vld [vmem:[%s16961_s1 + $0x1a8] sm:$0xff]   ;;  %v12941_v60 = vld [vmem:[%s16961_s1 + $0x1b0] sm:$0xff]  }
  0x27   :  { %11513 = vmatprep.mubr.msk.bf16.mxu0 %vm962_vm0, %v12891_v10  ;;  %v12942_v63 = vld [vmem:[%s16961_s1 + $0x1b8] sm:$0xff]   ;;  %v12943_v1 = vld [vmem:[%s16961_s1 + $0x1c0] sm:$0xff]   ;;  %v12944_v9 = vld [vmem:[%s16961_s1 + $0x1c8] sm:$0xff]  }
  0x28   :  { %v10527_v2 = vld [vmem:[%s16963_s3 + $0x1] sm:$0x1]  ;;  %v12970_v3 = vld [vmem:[%s16961_s1 + $0x298] sm:$0xff]  }
  0x29   :  { %12867 = vmatprep.subr.msk.bf16.mxu1 %vm2568_vm1, %v10527_v2  ;;  %v2570_v5 = vsel %vm2568_vm1, %v10527_v2, 0 }
  0x2a   :  { %11762 = vmatpush3.bf16.msra.mxu1 %v2570_v5 }
  0x2e   :  { %11514 = vmatmul.mubr.msk.bf16.gmra.mrb[8].mxu0 %vm962_vm0, %v12892_v11  ;;  %v12945_v11 = vld [vmem:[%s16961_s1 + $0x1d0] sm:$0xff]  }
  0x2f   :  { %11517 = vmatprep.mubr.msk.bf16.mxu0 %vm962_vm0, %v12893_v12 }
  0x36   :  { %11518 = vmatmul.mubr.msk.bf16.gmra.mrb[12].mxu0 %vm962_vm0, %v12894_v13 }
  0x37   :  { %11521 = vmatprep.mubr.msk.bf16.mxu0 %vm962_vm0, %v12895_v14 }
  0x3e   :  { %11522 = vmatmul.mubr.msk.bf16.gmra.mrb[16].mxu0 %vm962_vm0, %v12896_v15 }
  0x3f   :  { %11525 = vmatprep.mubr.msk.bf16.mxu0 %vm962_vm0, %v12897_v16 }
  0x46   :  { %11526 = vmatmul.mubr.msk.bf16.gmra.mrb[20].mxu0 %vm962_vm0, %v12898_v17  ;;  %v12946_v17 = vld [vmem:[%s16961_s1 + $0x1d8] sm:$0xff]  }
  0x47   :  { %11529 = vmatprep.mubr.msk.bf16.mxu0 %vm962_vm0, %v12899_v18 }
  0x4e   :  { %11530 = vmatmul.mubr.msk.bf16.gmra.mrb[24].mxu0 %vm962_vm0, %v12900_v19  ;;  %v12947_v19 = vld [vmem:[%s16961_s1 + $0x1e0] sm:$0xff]  }
  0x4f   :  { %11533 = vmatprep.mubr.msk.bf16.mxu0 %vm962_vm0, %v12901_v20  ;;  %v12968_v20 = vld [vmem:[%s16961_s1 + $0x288] sm:$0xff]  }
  0x56   :  { %11534 = vmatmul.mubr.msk.bf16.gmra.mrb[28].mxu0 %vm962_vm0, %v12902_v21 }
  0x57   :  { %11537 = vmatprep.mubr.msk.bf16.mxu0 %vm962_vm0, %v12903_v22 }
  0x5e   :  { %11538 = vmatmul.mubr.msk.bf16.gmra.mrb[32].mxu0 %vm962_vm0, %v12904_v23 }
  0x5f   :  { %11541 = vmatprep.mubr.msk.bf16.mxu0 %vm962_vm0, %v12905_v24 }
  0x66   :  { %11542 = vmatmul.mubr.msk.bf16.gmra.mrb[36].mxu0 %vm962_vm0, %v12906_v25  ;;  %v12948_v25 = vld [vmem:[%s16961_s1 + $0x1e8] sm:$0xff]  }
  0x67   :  { %11545 = vmatprep.mubr.msk.bf16.mxu0 %vm962_vm0, %v12907_v26 }
  0x6e   :  { %11546 = vmatmul.mubr.msk.bf16.gmra.mrb[40].mxu0 %vm962_vm0, %v12908_v27  ;;  %v12949_v27 = vld [vmem:[%s16961_s1 + $0x1f0] sm:$0xff]  }
  0x6f   :  { %11549 = vmatprep.mubr.msk.bf16.mxu0 %vm962_vm0, %v12909_v28 }
  0x76   :  { %11550 = vmatmul.mubr.msk.bf16.gmra.mrb[44].mxu0 %vm962_vm0, %v12910_v29 }
  0x77   :  { %11553 = vmatprep.mubr.msk.bf16.mxu0 %vm962_vm0, %v12911_v30 }
  0x7e   :  { %11554 = vmatmul.mubr.msk.bf16.gmra.mrb[48].mxu0 %vm962_vm0, %v12912_v31 }
  0x7f   :  { %11557 = vmatprep.mubr.msk.bf16.mxu0 %vm962_vm0, %v12913_v32 }
  0x86   :  { %11558 = vmatmul.mubr.msk.bf16.gmra.mrb[52].mxu0 %vm962_vm0, %v12914_v33  ;;  %v12950_v33 = vld [vmem:[%s16961_s1 + $0x1f8] sm:$0xff]  }
  0x87   :  { %11561 = vmatprep.mubr.msk.bf16.mxu0 %vm962_vm0, %v12915_v34 }
  0x8e   :  { %11562 = vmatmul.mubr.msk.bf16.gmra.mrb[56].mxu0 %vm962_vm0, %v12916_v35  ;;  %v12951_v35 = vld [vmem:[%s16961_s1 + $0x200] sm:$0xff]  }
  0x8f   :  { %11565 = vmatprep.mubr.msk.bf16.mxu0 %vm962_vm0, %v12917_v36  ;;  %v12966_v36 = vld [vmem:[%s16961_s1 + $0x278] sm:$0xff]  }
  0x96   :  { %11566 = vmatmul.mubr.msk.bf16.gmra.mrb[60].mxu0 %vm962_vm0, %v12918_v37 }
  0x97   :  { %11569 = vmatprep.mubr.msk.bf16.mxu0 %vm962_vm0, %v12919_v38 }
  0x9e   :  { %11570 = vmatmul.mubr.msk.bf16.gmra.mrb[64].mxu0 %vm962_vm0, %v12920_v39 }
  0x9f   :  { %11573 = vmatprep.mubr.msk.bf16.mxu0 %vm962_vm0, %v12921_v40 }
  0xa6   :  { %11574 = vmatmul.mubr.msk.bf16.gmra.mrb[68].mxu0 %vm962_vm0, %v12922_v41  ;;  %v12952_v41 = vld [vmem:[%s16961_s1 + $0x208] sm:$0xff]  }
  0xa7   :  { %11577 = vmatprep.mubr.msk.bf16.mxu0 %vm962_vm0, %v12923_v42 }
  0xae   :  { %11578 = vmatmul.mubr.msk.bf16.gmra.mrb[72].mxu0 %vm962_vm0, %v12924_v43  ;;  %v12953_v43 = vld [vmem:[%s16961_s1 + $0x210] sm:$0xff]  }
  0xaf   :  { %11581 = vmatprep.mubr.msk.bf16.mxu0 %vm962_vm0, %v12925_v44 }
  0xb6   :  { %11582 = vmatmul.mubr.msk.bf16.gmra.mrb[76].mxu0 %vm962_vm0, %v12926_v45 }
  0xb7   :  { %11585 = vmatprep.mubr.msk.bf16.mxu0 %vm962_vm0, %v12927_v46 }
  0xbe   :  { %11586 = vmatmul.mubr.msk.bf16.gmra.mrb[80].mxu0 %vm962_vm0, %v12928_v47 }
  0xbf   :  { %11589 = vmatprep.mubr.msk.bf16.mxu0 %vm962_vm0, %v12929_v48 }
  0xc6   :  { %11590 = vmatmul.mubr.msk.bf16.gmra.mrb[84].mxu0 %vm962_vm0, %v12930_v49  ;;  %v12954_v49 = vld [vmem:[%s16961_s1 + $0x218] sm:$0xff]  }
  0xc7   :  { %11593 = vmatprep.mubr.msk.bf16.mxu0 %vm962_vm0, %v12931_v50 }
  0xce   :  { %11594 = vmatmul.mubr.msk.bf16.gmra.mrb[88].mxu0 %vm962_vm0, %v12932_v51  ;;  %v12955_v51 = vld [vmem:[%s16961_s1 + $0x220] sm:$0xff]  }
  0xcf   :  { %11597 = vmatprep.mubr.msk.bf16.mxu0 %vm962_vm0, %v12933_v52  ;;  %v12964_v52 = vld [vmem:[%s16961_s1 + $0x268] sm:$0xff]  }
  0xd6   :  { %11598 = vmatmul.mubr.msk.bf16.gmra.mrb[92].mxu0 %vm962_vm0, %v12934_v53 }
  0xd7   :  { %11601 = vmatprep.mubr.msk.bf16.mxu0 %vm962_vm0, %v12935_v54 }
  0xde   :  { %11602 = vmatmul.mubr.msk.bf16.gmra.mrb[96].mxu0 %vm962_vm0, %v12936_v55 }
  0xdf   :  { %11605 = vmatprep.mubr.msk.bf16.mxu0 %vm962_vm0, %v12937_v56 }
  0xe6   :  { %11606 = vmatmul.mubr.msk.bf16.gmra.mrb[100].mxu0 %vm962_vm0, %v12938_v57  ;;  %v12956_v57 = vld [vmem:[%s16961_s1 + $0x228] sm:$0xff]  }
  0xe7   :  { %11609 = vmatprep.mubr.msk.bf16.mxu0 %vm962_vm0, %v12939_v58 }
  0xee   :  { %11610 = vmatmul.mubr.msk.bf16.gmra.mrb[104].mxu0 %vm962_vm0, %v12940_v59  ;;  %v12957_v59 = vld [vmem:[%s16961_s1 + $0x230] sm:$0xff]  }
  0xef   :  { %11613 = vmatprep.mubr.msk.bf16.mxu0 %vm962_vm0, %v12941_v60 }
  0xf1   :  { %v13883_v61 = vpop.f32.mrb[0].mxu0 }
  0xf2   :  { %v13885_v62 = vpop.f32.mrb[1].mxu0 }
  0xf3   :  { %v13890_v0 = vpop.f32.mrb[2].mxu0 }
  0xf4   :  { %v13900_v4 = vpop.f32.mrb[3].mxu0 }
  0xf6   :  { %11614 = vmatmul.mubr.msk.bf16.gmra.mrb[108].mxu0 %vm962_vm0, %v12942_v63 }
  0xf7   :  { %11617 = vmatprep.mubr.msk.bf16.mxu0 %vm962_vm0, %v12943_v1 }
  0xf9   :  { %v13908_v7 = vpop.f32.mrb[4].mxu0 }
  0xfa   :  { %v13910_v8 = vpop.f32.mrb[5].mxu0 }
  0xfb   :  { %v13915_v10 = vpop.f32.mrb[6].mxu0 }
  0xfc   :  { %v13922_v13 = vpop.f32.mrb[7].mxu0 }
  0xfe   :  { %11618 = vmatmul.mubr.msk.bf16.gmra.mrb[112].mxu0 %vm962_vm0, %v12944_v9  ;;  %v12958_v9 = vld [vmem:[%s16961_s1 + $0x238] sm:$0xff]  }
  0xff   :  { %11621 = vmatprep.mubr.msk.bf16.mxu0 %vm962_vm0, %v12945_v11 }
 0x101   :  { %v13928_v15 = vpop.f32.mrb[8].mxu0 }
 0x102   :  { %v13930_v16 = vpop.f32.mrb[9].mxu0 }
 0x103   :  { %v13935_v18 = vpop.f32.mrb[10].mxu0 }
 0x104   :  { %v13942_v21 = vpop.f32.mrb[11].mxu0 }
 0x106   :  { %11622 = vmatmul.mubr.msk.bf16.gmra.mrb[116].mxu0 %vm962_vm0, %v12946_v17  ;;  %v12959_v17 = vld [vmem:[%s16961_s1 + $0x240] sm:$0xff]  }
 0x107   :  { %11625 = vmatprep.mubr.msk.bf16.mxu0 %vm962_vm0, %v12947_v19  ;;  %v12962_v19 = vld [vmem:[%s16961_s1 + $0x258] sm:$0xff]  }
 0x109   :  { %v13948_v23 = vpop.f32.mrb[12].mxu0 }
 0x10a   :  { %v13950_v24 = vpop.f32.mrb[13].mxu0 }
 0x10b   :  { %v13955_v26 = vpop.f32.mrb[14].mxu0 }
 0x10c   :  { %v13962_v29 = vpop.f32.mrb[15].mxu0 }
 0x10e   :  { %11626 = vmatmul.mubr.msk.bf16.gmra.mrb[120].mxu0 %vm962_vm0, %v12948_v25 }
 0x10f   :  { %11629 = vmatprep.mubr.msk.bf16.mxu0 %vm962_vm0, %v12949_v27 }
 0x111   :  { %v13968_v31 = vpop.f32.mrb[16].mxu0 }
 0x112   :  { %v13970_v32 = vpop.f32.mrb[17].mxu0 }
 0x113   :  { %v13975_v34 = vpop.f32.mrb[18].mxu0 }
 0x114   :  { %v13982_v37 = vpop.f32.mrb[19].mxu0 }
 0x116   :  { %11630 = vmatmul.mubr.msk.bf16.gmra.mrb[124].mxu0 %vm962_vm0, %v12950_v33 }
 0x117   :  { %11633 = vmatprep.mubr.msk.bf16.mxu0 %vm962_vm0, %v12951_v35 }
 0x119   :  { %v13988_v39 = vpop.f32.mrb[20].mxu0 }
 0x11a   :  { %v13990_v40 = vpop.f32.mrb[21].mxu0 }
 0x11b   :  { %v13995_v42 = vpop.f32.mrb[22].mxu0 }
 0x11c   :  { %v14002_v45 = vpop.f32.mrb[23].mxu0 }
 0x11e   :  { %11634 = vmatmul.mubr.msk.bf16.gmra.mrb[128].mxu0 %vm962_vm0, %v12952_v41  ;;  %v12960_v41 = vld [vmem:[%s16961_s1 + $0x248] sm:$0xff]  }
 0x11f   :  { %11637 = vmatprep.mubr.msk.bf16.mxu0 %vm962_vm0, %v12953_v43 }
 0x121   :  { %v14008_v47 = vpop.f32.mrb[24].mxu0 }
 0x122   :  { %v14010_v48 = vpop.f32.mrb[25].mxu0 }
 0x123   :  { %v14015_v50 = vpop.f32.mrb[26].mxu0 }
 0x124   :  { %v14022_v53 = vpop.f32.mrb[27].mxu0 }
 0x126   :  { %11638 = vmatmul.mubr.msk.bf16.gmra.mrb[132].mxu0 %vm962_vm0, %v12954_v49  ;;  %v12961_v49 = vld [vmem:[%s16961_s1 + $0x250] sm:$0xff]  }
 0x127   :  { %11641 = vmatprep.mubr.msk.bf16.mxu0 %vm962_vm0, %v12955_v51  ;;  %v12963_v51 = vld [vmem:[%s16961_s1 + $0x260] sm:$0xff]  }
 0x129   :  { %v14028_v55 = vpop.f32.mrb[28].mxu0 }
 0x12a   :  { %v14030_v56 = vpop.f32.mrb[29].mxu0 }
 0x12b   :  { %v14035_v58 = vpop.f32.mrb[30].mxu0 }
 0x12c   :  { %v14042_v63 = vpop.f32.mrb[31].mxu0 }
 0x12e   :  { %11642 = vmatmul.mubr.msk.bf16.gmra.mrb[136].mxu0 %vm962_vm0, %v12956_v57 }
 0x12f   :  { %11645 = vmatprep.mubr.msk.bf16.mxu0 %vm962_vm0, %v12957_v59  ;;  %v12965_v59 = vld [vmem:[%s16961_s1 + $0x270] sm:$0xff]  }
 0x131   :  { %v14048_v2 = vpop.f32.mrb[32].mxu0 }
 0x132   :  { %v14050_v5 = vpop.f32.mrb[33].mxu0 }
 0x133   :  { %v14055_v11 = vpop.f32.mrb[34].mxu0 }
 0x134   :  { %v14062_v25 = vpop.f32.mrb[35].mxu0 }
 0x136   :  { %11646 = vmatmul.mubr.msk.bf16.gmra.mrb[140].mxu0 %vm962_vm0, %v12958_v9 }
 0x137   :  { %11649 = vmatprep.mubr.msk.bf16.mxu0 %vm962_vm0, %v12959_v17 }
 0x139   :  { %v14068_v33 = vpop.f32.mrb[36].mxu0 }
 0x13a   :  { %v14070_v35 = vpop.f32.mrb[37].mxu0 }
 0x13b   :  { %v14075_v43 = vpop.f32.mrb[38].mxu0 }
 0x13c   :  { %v14082_v57 = vpop.f32.mrb[39].mxu0 }
 0x13e   :  { %11650 = vmatmul.mubr.msk.bf16.gmra.mrb[144].mxu0 %vm962_vm0, %v12960_v41 }
 0x13f   :  { %11653 = vmatprep.mubr.msk.bf16.mxu0 %vm962_vm0, %v12961_v49  ;;  %v12967_v49 = vld [vmem:[%s16961_s1 + $0x280] sm:$0xff]  }
 0x141   :  { %v14088_v9 = vpop.f32.mrb[40].mxu0 }
 0x142   :  { %v14090_v17 = vpop.f32.mrb[41].mxu0 }
 0x143   :  { %v14095_v27 = vpop.f32.mrb[42].mxu0 }
 0x144   :  { %v14102_v41 = vpop.f32.mrb[43].mxu0 }
 0x146   :  { %11654 = vmatmul.mubr.msk.bf16.gmra.mrb[148].mxu0 %vm962_vm0, %v12962_v19 }
 0x147   :  { %11657 = vmatprep.mubr.msk.bf16.mxu0 %vm962_vm0, %v12963_v51  ;;  %v12969_v51 = vld [vmem:[%s16961_s1 + $0x290] sm:$0xff]  }
 0x149   :  { %v14108_v60 = vpop.f32.mrb[44].mxu0 }
 0x14a   :  { %v14110_v1 = vpop.f32.mrb[45].mxu0 }
 0x14b   :  { %v14115_v54 = vpop.f32.mrb[46].mxu0 }
 0x14c   :  { %v14122_v19 = vpop.f32.mrb[47].mxu0 }
 0x14e   :  { %11658 = vmatmul.mubr.msk.bf16.gmra.mrb[152].mxu0 %vm962_vm0, %v12964_v52 }
 0x14f   :  { %11661 = vmatprep.mubr.msk.bf16.mxu0 %vm962_vm0, %v12965_v59  ;;  %v12971_v59 = vld [vmem:[%s16961_s1 + $0x2a0] sm:$0xff]  }
 0x151   :  { %v14128_v44 = vpop.f32.mrb[48].mxu0 }
 0x152   :  { %17070 = vst [vmem:[#allocation8_spill] sm:$0xff] %v14128_v44  ;;  %v14130_v46 = vpop.f32.mrb[49].mxu0 }
 0x153   :  { %v14135_v38 = vpop.f32.mrb[50].mxu0 }
 0x154   :  { %v14142_v52 = vpop.f32.mrb[51].mxu0 }
 0x156   :  { %11662 = vmatmul.mubr.msk.bf16.gmra.mrb[156].mxu0 %vm962_vm0, %v12966_v36 }
 0x157   :  { %11665 = vmatprep.mubr.msk.bf16.mxu0 %vm962_vm0, %v12967_v49  ;;  %v12973_v49 = vld [vmem:[%s16961_s1 + $0x2b0] sm:$0xff]  }
 0x159   :  { %v14148_v28 = vpop.f32.mrb[52].mxu0 }
 0x15a   :  { %17071 = vst [vmem:[#allocation9_spill] sm:$0xff] %v14148_v28  ;;  %v14150_v30 = vpop.f32.mrb[53].mxu0 }
 0x15b   :  { %17072 = vst [vmem:[#allocation10_spill] sm:$0xff] %v14150_v30  ;;  %v14155_v22 = vpop.f32.mrb[54].mxu0  ;;  %v12972_v30 = vld [vmem:[%s16961_s1 + $0x2a8] sm:$0xff]  }
 0x15c   :  { %17073 = vst [vmem:[#allocation11_spill] sm:$0xff] %v14155_v22  ;;  %v14162_v36 = vpop.f32.mrb[55].mxu0 }
 0x15d   :  { %17074 = vst [vmem:[#allocation12_spill] sm:$0xff] %v14162_v36 }
 0x15e   :  { %11666 = vmatmul.mubr.msk.bf16.gmra.mrb[160].mxu0 %vm962_vm0, %v12968_v20 }
 0x15f   :  { %11669 = vmatprep.mubr.msk.bf16.mxu0 %vm962_vm0, %v12969_v51  ;;  %v12975_v51 = vld [vmem:[%s16961_s1 + $0x2c0] sm:$0xff]  }
 0x161   :  { %v14168_v12 = vpop.f32.mrb[56].mxu0 }
 0x162   :  { %17075 = vst [vmem:[#allocation13_spill] sm:$0xff] %v14168_v12  ;;  %v14170_v14 = vpop.f32.mrb[57].mxu0 }
 0x163   :  { %17076 = vst [vmem:[#allocation14_spill] sm:$0xff] %v14170_v14  ;;  %v14175_v6 = vpop.f32.mrb[58].mxu0  ;;  %v12974_v14 = vld [vmem:[%s16961_s1 + $0x2b8] sm:$0xff]  }
 0x164   :  { %17077 = vst [vmem:[#allocation15_spill] sm:$0xff] %v14175_v6  ;;  %v14182_v20 = vpop.f32.mrb[59].mxu0 }
 0x165   :  { %17078 = vst [vmem:[#allocation16_spill] sm:$0xff] %v14182_v20 }
 0x166   :  { %11670 = vmatmul.mubr.msk.bf16.gmra.mrb[164].mxu0 %vm962_vm0, %v12970_v3 }
 0x167   :  { %11673 = vmatprep.mubr.msk.bf16.mxu0 %vm962_vm0, %v12971_v59  ;;  %v12976_v59 = vld [vmem:[%s16961_s1 + $0x2c8] sm:$0xff]  }
 0x169   :  { %v14188_v28 = vpop.f32.mrb[60].mxu0 }
 0x16a   :  { %17079 = vst [vmem:[#allocation17_spill] sm:$0xff] %v14188_v28  ;;  %v14190_v22 = vpop.f32.mrb[61].mxu0 }
 0x16b   :  { %17080 = vst [vmem:[#allocation18_spill] sm:$0xff] %v14190_v22  ;;  %v14195_v36 = vpop.f32.mrb[62].mxu0 }
 0x16c   :  { %17081 = vst [vmem:[#allocation19_spill] sm:$0xff] %v14195_v36  ;;  %v14202_v3 = vpop.f32.mrb[63].mxu0 }
 0x16d   :  { %17082 = vst [vmem:[#allocation20_spill] sm:$0xff] %v14202_v3 }
 0x16e   :  { %11674 = vmatmul.mubr.msk.bf16.gmra.mrb[168].mxu0 %vm962_vm0, %v12972_v30 }
 0x16f   :  { %11677 = vmatprep.mubr.msk.bf16.mxu0 %vm962_vm0, %v12973_v49 }
 0x171   :  { %v11571_v12 = vpop.f32.mrb[64].mxu0 }
 0x172   :  { %v1637_v6 = vpop.f32.mrb[65].mxu0 }
 0x173   :  { %v11572_v20 = vpop.f32.mrb[66].mxu0 }
 0x174   :  { %v2438_v28 = vpack.c.bf16 %v11572_v20, %v11571_v12  ;;  %v1640_v36 = vpop.f32.mrb[67].mxu0  ;;  %v12977_v12 = vld [vmem:[%s16961_s1 + $0x2d0] sm:$0xff]   ;;  %v12978_v20 = vld [vmem:[%s16961_s1 + $0x2d8] sm:$0xff]  }
 0x175   :  { %v2437_v44 = vpack.c.bf16 %v1640_v36, %v1637_v6 }
 0x176   :  { %11678 = vmatmul.mubr.msk.bf16.gmra.mrb[172].mxu0 %vm962_vm0, %v12974_v14 }
 0x177   :  { %11763 = vmatprep.mubr.msk.bf16.mxu1 %vm2471_vm2, %v2437_v44  ;;  %11681 = vmatprep.mubr.msk.bf16.mxu0 %vm962_vm0, %v12975_v51 }
 0x178   :  { %11764 = vmatmul.mubr.msk.bf16.vlgmr.msra.gmra.mrb[0].mxu1 %vm2471_vm2, %v2438_v28 }
 0x179   :  { %v11575_v30 = vpop.f32.mrb[68].mxu0 }
 0x17a   :  { %v1653_v49 = vpop.f32.mrb[69].mxu0 }
 0x17b   :  { %v11576_v22 = vpop.f32.mrb[70].mxu0 }
 0x17c   :  { %v2440_v6 = vpack.c.bf16 %v11576_v22, %v11575_v30  ;;  %v1656_v36 = vpop.f32.mrb[71].mxu0  ;;  %v12979_v22 = vld [vmem:[%s16961_s1 + $0x2e0] sm:$0xff]  }
 0x17d   :  { %v2439_v14 = vpack.c.bf16 %v1656_v36, %v1653_v49  ;;  %v12980_v36 = vld [vmem:[%s16961_s1 + $0x2e8] sm:$0xff]  }
 0x17e   :  { %11682 = vmatmul.mubr.msk.bf16.gmra.mrb[176].mxu0 %vm962_vm0, %v12976_v59 }
 0x17f   :  { %11767 = vmatprep.mubr.msk.bf16.mxu1 %vm2471_vm2, %v2439_v14  ;;  %11685 = vmatprep.mubr.msk.bf16.mxu0 %vm962_vm0, %v12977_v12 }
 0x180   :  { %11768 = vmatmul.mubr.msk.bf16.gmra.mrb[4].mxu1 %vm2471_vm2, %v2440_v6 }
 0x181   :  { %v11579_v28 = vpop.f32.mrb[72].mxu0 }
 0x182   :  { %v1669_v44 = vpop.f32.mrb[73].mxu0 }
 0x183   :  { %v11580_v51 = vpop.f32.mrb[74].mxu0 }
 0x184   :  { %v2442_v30 = vpack.c.bf16 %v11580_v51, %v11579_v28  ;;  %v1672_v49 = vpop.f32.mrb[75].mxu0  ;;  %v12981_v28 = vld [vmem:[%s16961_s1 + $0x2f0] sm:$0xff]  }
 0x185   :  { %v2441_v59 = vpack.c.bf16 %v1672_v49, %v1669_v44  ;;  %v12982_v49 = vld [vmem:[%s16961_s1 + $0x2f8] sm:$0xff]  }
 0x186   :  { %11686 = vmatmul.mubr.msk.bf16.gmra.mrb[180].mxu0 %vm962_vm0, %v12978_v20 }
 0x187   :  { %11771 = vmatprep.mubr.msk.bf16.mxu1 %vm2471_vm2, %v2441_v59  ;;  %11689 = vmatprep.mubr.msk.bf16.mxu0 %vm962_vm0, %v12979_v22 }
 0x188   :  { %11772 = vmatmul.mubr.msk.bf16.gmra.mrb[8].mxu1 %vm2471_vm2, %v2442_v30 }
 0x189   :  { %v11583_v12 = vpop.f32.mrb[76].mxu0 }
 0x18a   :  { %v1685_v6 = vpop.f32.mrb[77].mxu0 }
 0x18b   :  { %v11584_v14 = vpop.f32.mrb[78].mxu0 }
 0x18c   :  { %v2444_v44 = vpack.c.bf16 %v11584_v14, %v11583_v12  ;;  %v1688_v51 = vpop.f32.mrb[79].mxu0  ;;  %v12983_v12 = vld [vmem:[%s16961_s1 + $0x300] sm:$0xff]  }
 0x18d   :  { %v2443_v20 = vpack.c.bf16 %v1688_v51, %v1685_v6  ;;  %v12984_v51 = vld [vmem:[%s16961_s1 + $0x308] sm:$0xff]  }
 0x18e   :  { %11690 = vmatmul.mubr.msk.bf16.gmra.mrb[184].mxu0 %vm962_vm0, %v12980_v36 }
 0x18f   :  { %11775 = vmatprep.mubr.msk.bf16.mxu1 %vm2471_vm2, %v2443_v20  ;;  %11693 = vmatprep.mubr.msk.bf16.mxu0 %vm962_vm0, %v12981_v28 }
 0x190   :  { %11776 = vmatmul.mubr.msk.bf16.gmra.mrb[12].mxu1 %vm2471_vm2, %v2444_v44 }
 0x191   :  { %v11587_v22 = vpop.f32.mrb[80].mxu0 }
 0x192   :  { %v1701_v30 = vpop.f32.mrb[81].mxu0 }
 0x193   :  { %v11588_v59 = vpop.f32.mrb[82].mxu0 }
 0x194   :  { %v2446_v6 = vpack.c.bf16 %v11588_v59, %v11587_v22  ;;  %v1704_v14 = vpop.f32.mrb[83].mxu0  ;;  %v12985_v22 = vld [vmem:[%s16961_s1 + $0x310] sm:$0xff]  }
 0x195   :  { %v2445_v36 = vpack.c.bf16 %v1704_v14, %v1701_v30  ;;  %v12986_v14 = vld [vmem:[%s16961_s1 + $0x318] sm:$0xff]  }
 0x196   :  { %11694 = vmatmul.mubr.msk.bf16.gmra.mrb[188].mxu0 %vm962_vm0, %v12982_v49 }
 0x197   :  { %11779 = vmatprep.mubr.msk.bf16.mxu1 %vm2471_vm2, %v2445_v36  ;;  %11697 = vmatprep.mubr.msk.bf16.mxu0 %vm962_vm0, %v12983_v12 }
 0x198   :  { %11780 = vmatmul.mubr.msk.bf16.gmra.mrb[16].mxu1 %vm2471_vm2, %v2446_v6 }
 0x199   :  { %v11591_v28 = vpop.f32.mrb[84].mxu0 }
 0x19a   :  { %v1717_v44 = vpop.f32.mrb[85].mxu0 }
 0x19b   :  { %v11592_v20 = vpop.f32.mrb[86].mxu0 }
 0x19c   :  { %v1720_v30 = vpop.f32.mrb[87].mxu0  ;;  %v2448_v59 = vpack.c.bf16 %v11592_v20, %v11591_v28  ;;  %v12987_v28 = vld [vmem:[%s16961_s1 + $0x320] sm:$0xff]  }
 0x19d   :  { %v2447_v49 = vpack.c.bf16 %v1720_v30, %v1717_v44 }
 0x19e   :  { %11698 = vmatmul.mubr.msk.bf16.gmra.mrb[192].mxu0 %vm962_vm0, %v12984_v51 }
 0x19f   :  { %11783 = vmatprep.mubr.msk.bf16.mxu1 %vm2471_vm2, %v2447_v49  ;;  %11701 = vmatprep.mubr.msk.bf16.mxu0 %vm962_vm0, %v12985_v22 }
 0x1a0   :  { %11784 = vmatmul.mubr.msk.bf16.gmra.mrb[20].mxu1 %vm2471_vm2, %v2448_v59  ;;  %v12988_v59 = vld [vmem:[%s16961_s1 + $0x328] sm:$0xff]  }
 0x1a1   :  { %v11595_v12 = vpop.f32.mrb[88].mxu0 }
 0x1a2   :  { %v1733_v6 = vpop.f32.mrb[89].mxu0 }
 0x1a3   :  { %v11596_v36 = vpop.f32.mrb[90].mxu0 }
 0x1a4   :  { %v1736_v44 = vpop.f32.mrb[91].mxu0  ;;  %v2450_v20 = vpack.c.bf16 %v11596_v36, %v11595_v12  ;;  %v12989_v12 = vld [vmem:[%s16961_s1 + $0x330] sm:$0xff]  }
 0x1a5   :  { %v2449_v51 = vpack.c.bf16 %v1736_v44, %v1733_v6 }
 0x1a6   :  { %11702 = vmatmul.mubr.msk.bf16.gmra.mrb[196].mxu0 %vm962_vm0, %v12986_v14 }
 0x1a7   :  { %11787 = vmatprep.mubr.msk.bf16.mxu1 %vm2471_vm2, %v2449_v51  ;;  %11705 = vmatprep.mubr.msk.bf16.mxu0 %vm962_vm0, %v12987_v28 }
 0x1a8   :  { %11788 = vmatmul.mubr.msk.bf16.gmra.mrb[24].mxu1 %vm2471_vm2, %v2450_v20  ;;  %v12990_v20 = vld [vmem:[%s16961_s1 + $0x338] sm:$0xff]  }
 0x1a9   :  { %v11599_v22 = vpop.f32.mrb[92].mxu0 }
 0x1aa   :  { %v1749_v30 = vpop.f32.mrb[93].mxu0 }
 0x1ab   :  { %v11600_v49 = vpop.f32.mrb[94].mxu0 }
 0x1ac   :  { %v1752_v6 = vpop.f32.mrb[95].mxu0  ;;  %v2452_v36 = vpack.c.bf16 %v11600_v49, %v11599_v22  ;;  %v12991_v22 = vld [vmem:[%s16961_s1 + $0x340] sm:$0xff]  }
 0x1ad   :  { %v2451_v14 = vpack.c.bf16 %v1752_v6, %v1749_v30 }
 0x1ae   :  { %11706 = vmatmul.mubr.msk.bf16.gmra.mrb[200].mxu0 %vm962_vm0, %v12988_v59 }
 0x1af   :  { %11791 = vmatprep.mubr.msk.bf16.mxu1 %vm2471_vm2, %v2451_v14  ;;  %11709 = vmatprep.mubr.msk.bf16.mxu0 %vm962_vm0, %v12989_v12  ;;  %v10561_v12 = vld [vmem:[%s16963_s3 + $0x3] sm:$0x1] }
 0x1b0   :  { %11792 = vmatmul.mubr.msk.bf16.gmra.mrb[28].mxu1 %vm2471_vm2, %v2452_v36  ;;  %12868 = vmatprep.subr.msk.bf16.mxu1 %vm2568_vm1, %v10561_v12  ;;  %v3026_v36 = vsel %vm2568_vm1, %v10561_v12, 0  ;;  %v12994_v12 = vld [vmem:[%s16961_s1 + $0x358] sm:$0xff]  }
 0x1b1   :  { %v11603_v28 = vpop.f32.mrb[96].mxu0  ;;  %11828 = vmatpush3.bf16.msra.mxu1 %v3026_v36 }
 0x1b2   :  { %v1765_v44 = vpop.f32.mrb[97].mxu0 }
 0x1b3   :  { %v11604_v51 = vpop.f32.mrb[98].mxu0 }
 0x1b4   :  { %v1768_v30 = vpop.f32.mrb[99].mxu0  ;;  %v2454_v49 = vpack.c.bf16 %v11604_v51, %v11603_v28  ;;  %v12992_v28 = vld [vmem:[%s16961_s1 + $0x348] sm:$0xff]  }
 0x1b5   :  { %v2453_v59 = vpack.c.bf16 %v1768_v30, %v1765_v44 }
 0x1b6   :  { %11710 = vmatmul.mubr.msk.bf16.gmra.mrb[204].mxu0 %vm962_vm0, %v12990_v20  ;;  %v12993_v20 = vld [vmem:[%s16961_s1 + $0x350] sm:$0xff]  }
 0x1b7   :  { %11795 = vmatprep.mubr.msk.bf16.mxu1 %vm2471_vm2, %v2453_v59  ;;  %11713 = vmatprep.mubr.msk.bf16.mxu0 %vm962_vm0, %v12991_v22 }
 0x1b8   :  { %11796 = vmatmul.mubr.msk.bf16.gmra.mrb[32].mxu1 %vm2471_vm2, %v2454_v49 }
 0x1b9   :  { %v11607_v6 = vpop.f32.mrb[100].mxu0 }
 0x1ba   :  { %v1781_v14 = vpop.f32.mrb[101].mxu0 }
 0x1bb   :  { %v11608_v44 = vpop.f32.mrb[102].mxu0 }
 0x1bc   :  { %v1784_v51 = vpop.f32.mrb[103].mxu0  ;;  %v2456_v30 = vpack.c.bf16 %v11608_v44, %v11607_v6  ;;  %v12995_v6 = vld [vmem:[%s16961_s1 + $0x360] sm:$0xff]  }
 0x1bd   :  { %v2455_v59 = vpack.c.bf16 %v1784_v51, %v1781_v14 }
 0x1be   :  { %11714 = vmatmul.mubr.msk.bf16.gmra.mrb[208].mxu0 %vm962_vm0, %v12992_v28 }
 0x1bf   :  { %11799 = vmatprep.mubr.msk.bf16.mxu1 %vm2471_vm2, %v2455_v59  ;;  %11717 = vmatprep.mubr.msk.bf16.mxu0 %vm962_vm0, %v12993_v20 }
 0x1c0   :  { %11800 = vmatmul.mubr.msk.bf16.gmra.mrb[36].mxu1 %vm2471_vm2, %v2456_v30  ;;  %v12996_v30 = vld [vmem:[%s16961_s1 + $0x368] sm:$0xff]  }
 0x1c1   :  { %v11611_v22 = vpop.f32.mrb[104].mxu0 }
 0x1c2   :  { %v1797_v49 = vpop.f32.mrb[105].mxu0 }
 0x1c3   :  { %v11612_v36 = vpop.f32.mrb[106].mxu0 }
 0x1c4   :  { %v1800_v14 = vpop.f32.mrb[107].mxu0  ;;  %v2458_v44 = vpack.c.bf16 %v11612_v36, %v11611_v22  ;;  %v12997_v22 = vld [vmem:[%s16961_s1 + $0x370] sm:$0xff]  }
 0x1c5   :  { %v2457_v28 = vpack.c.bf16 %v1800_v14, %v1797_v49 }
 0x1c6   :  { %11718 = vmatmul.mubr.msk.bf16.gmra.mrb[212].mxu0 %vm962_vm0, %v12994_v12 }
 0x1c7   :  { %11803 = vmatprep.mubr.msk.bf16.mxu1 %vm2471_vm2, %v2457_v28  ;;  %11721 = vmatprep.mubr.msk.bf16.mxu0 %vm962_vm0, %v12995_v6 }
 0x1c8   :  { %11804 = vmatmul.mubr.msk.bf16.gmra.mrb[40].mxu1 %vm2471_vm2, %v2458_v44  ;;  %v12998_v44 = vld [vmem:[%s16961_s1 + $0x378] sm:$0xff]  }
 0x1c9   :  { %v11615_v20 = vpop.f32.mrb[108].mxu0 }
 0x1ca   :  { %v1813_v51 = vpop.f32.mrb[109].mxu0 }
 0x1cb   :  { %v11616_v59 = vpop.f32.mrb[110].mxu0 }
 0x1cc   :  { %v1816_v49 = vpop.f32.mrb[111].mxu0  ;;  %v2460_v36 = vpack.c.bf16 %v11616_v59, %v11615_v20  ;;  %v12999_v20 = vld [vmem:[%s16961_s1 + $0x380] sm:$0xff]  }
 0x1cd   :  { %v2459_v12 = vpack.c.bf16 %v1816_v49, %v1813_v51 }
 0x1ce   :  { %11722 = vmatmul.mubr.msk.bf16.gmra.mrb[216].mxu0 %vm962_vm0, %v12996_v30 }
 0x1cf   :  { %11807 = vmatprep.mubr.msk.bf16.mxu1 %vm2471_vm2, %v2459_v12  ;;  %11725 = vmatprep.mubr.msk.bf16.mxu0 %vm962_vm0, %v12997_v22 }
 0x1d0   :  { %11808 = vmatmul.mubr.msk.bf16.gmra.mrb[44].mxu1 %vm2471_vm2, %v2460_v36  ;;  %v13000_v36 = vld [vmem:[%s16961_s1 + $0x388] sm:$0xff]  }
 0x1d1   :  { %v11619_v6 = vpop.f32.mrb[112].mxu0 }
 0x1d2   :  { %v1829_v14 = vpop.f32.mrb[113].mxu0 }
 0x1d3   :  { %v11620_v28 = vpop.f32.mrb[114].mxu0 }
 0x1d4   :  { %v1832_v51 = vpop.f32.mrb[115].mxu0  ;;  %v2462_v59 = vpack.c.bf16 %v11620_v28, %v11619_v6  ;;  %v13001_v6 = vld [vmem:[%s16961_s1 + $0x390] sm:$0xff]  }
 0x1d5   :  { %v2461_v30 = vpack.c.bf16 %v1832_v51, %v1829_v14 }
 0x1d6   :  { %11726 = vmatmul.mubr.msk.bf16.gmra.mrb[220].mxu0 %vm962_vm0, %v12998_v44 }
 0x1d7   :  { %11811 = vmatprep.mubr.msk.bf16.mxu1 %vm2471_vm2, %v2461_v30  ;;  %11729 = vmatprep.mubr.msk.bf16.mxu0 %vm962_vm0, %v12999_v20 }
 0x1d8   :  { %11812 = vmatmul.mubr.msk.bf16.gmra.mrb[48].mxu1 %vm2471_vm2, %v2462_v59  ;;  %v13002_v59 = vld [vmem:[%s16961_s1 + $0x398] sm:$0xff]  }
 0x1d9   :  { %v11623_v22 = vpop.f32.mrb[116].mxu0 }
 0x1da   :  { %v1845_v49 = vpop.f32.mrb[117].mxu0 }
 0x1db   :  { %v11624_v12 = vpop.f32.mrb[118].mxu0 }
 0x1dc   :  { %v2464_v14 = vpack.c.bf16 %v11624_v12, %v11623_v22  ;;  %v1848_v28 = vpop.f32.mrb[119].mxu0  ;;  %v13003_v22 = vld [vmem:[%s16961_s1 + $0x3a0] sm:$0xff]  }
 0x1dd   :  { %v2463_v44 = vpack.c.bf16 %v1848_v28, %v1845_v49  ;;  %v13004_v28 = vld [vmem:[%s16961_s1 + $0x3a8] sm:$0xff]  }
 0x1de   :  { %11730 = vmatmul.mubr.msk.bf16.gmra.mrb[224].mxu0 %vm962_vm0, %v13000_v36 }
 0x1df   :  { %11815 = vmatprep.mubr.msk.bf16.mxu1 %vm2471_vm2, %v2463_v44  ;;  %11733 = vmatprep.mubr.msk.bf16.mxu0 %vm962_vm0, %v13001_v6 }
 0x1e0   :  { %11816 = vmatmul.mubr.msk.bf16.gmra.mrb[52].mxu1 %vm2471_vm2, %v2464_v14 }
 0x1e1   :  { %v11627_v20 = vpop.f32.mrb[120].mxu0 }
 0x1e2   :  { %v1861_v51 = vpop.f32.mrb[121].mxu0 }
 0x1e3   :  { %v11628_v30 = vpop.f32.mrb[122].mxu0 }
 0x1e4   :  { %v2466_v49 = vpack.c.bf16 %v11628_v30, %v11627_v20  ;;  %v1864_v12 = vpop.f32.mrb[123].mxu0  ;;  %v13005_v20 = vld [vmem:[%s16961_s1 + $0x3b0] sm:$0xff]  }
 0x1e5   :  { %v2465_v36 = vpack.c.bf16 %v1864_v12, %v1861_v51  ;;  %v13006_v12 = vld [vmem:[%s16961_s1 + $0x3b8] sm:$0xff]  }
 0x1e6   :  { %11734 = vmatmul.mubr.msk.bf16.gmra.mrb[228].mxu0 %vm962_vm0, %v13002_v59 }
 0x1e7   :  { %11819 = vmatprep.mubr.msk.bf16.mxu1 %vm2471_vm2, %v2465_v36  ;;  %11737 = vmatprep.mubr.msk.bf16.mxu0 %vm962_vm0, %v13003_v22 }
 0x1e8   :  { %11820 = vmatmul.mubr.msk.bf16.gmra.mrb[56].mxu1 %vm2471_vm2, %v2466_v49 }
 0x1e9   :  { %v11631_v6 = vpop.f32.mrb[124].mxu0 }
 0x1ea   :  { %v1877_v14 = vpop.f32.mrb[125].mxu0 }
 0x1eb   :  { %v11632_v44 = vpop.f32.mrb[126].mxu0 }
 0x1ec   :  { %v2468_v51 = vpack.c.bf16 %v11632_v44, %v11631_v6  ;;  %v1880_v30 = vpop.f32.mrb[127].mxu0  ;;  %v13007_v6 = vld [vmem:[%s16961_s1 + $0x3c0] sm:$0xff]  }
 0x1ed   :  { %v2467_v59 = vpack.c.bf16 %v1880_v30, %v1877_v14  ;;  %v13008_v30 = vld [vmem:[%s16961_s1 + $0x3c8] sm:$0xff]   ;;  %v13009_v14 = vld [vmem:[%s16961_s1 + $0x3d0] sm:$0xff]   ;;  %v13011_v44 = vld [vmem:[%s16961_s1 + $0x3e0] sm:$0xff]  }
 0x1ee   :  { %11738 = vmatmul.mubr.msk.bf16.gmra.mrb[232].mxu0 %vm962_vm0, %v13004_v28 }
 0x1ef   :  { %11823 = vmatprep.mubr.msk.bf16.mxu1 %vm2471_vm2, %v2467_v59  ;;  %11741 = vmatprep.mubr.msk.bf16.mxu0 %vm962_vm0, %v13005_v20 }
 0x1f0   :  { %11824 = vmatmul.mubr.msk.bf16.gmra.mrb[60].mxu1 %vm2471_vm2, %v2468_v51 }
 0x1f1   :  { %v14373_v22 = vpop.f32.mrb[128].mxu0 }
 0x1f2   :  { %17083 = vst [vmem:[#allocation21_spill] sm:$0xff] %v14373_v22  ;;  %v14375_v49 = vpop.f32.mrb[129].mxu0 }
 0x1f3   :  { %17084 = vst [vmem:[#allocation22_spill] sm:$0xff] %v14375_v49  ;;  %v14380_v36 = vpop.f32.mrb[130].mxu0  ;;  %v13010_v49 = vld [vmem:[%s16961_s1 + $0x3d8] sm:$0xff]  }
 0x1f4   :  { %17085 = vst [vmem:[#allocation23_spill] sm:$0xff] %v14380_v36  ;;  %v14387_v28 = vpop.f32.mrb[131].mxu0 }
 0x1f5   :  { %17086 = vst [vmem:[#allocation24_spill] sm:$0xff] %v14387_v28 }
 0x1f6   :  { %11742 = vmatmul.mubr.msk.bf16.gmra.mrb[236].mxu0 %vm962_vm0, %v13006_v12 }
 0x1f7   :  { %11745 = vmatprep.mubr.msk.bf16.mxu0 %vm962_vm0, %v13007_v6  ;;  %v13013_v6 = vld [vmem:[%s16961_s1 + $0x3f0] sm:$0xff]  }
 0x1f9   :  { %v14393_v20 = vpop.f32.mrb[132].mxu0 }
 0x1fa   :  { %17087 = vst [vmem:[#allocation25_spill] sm:$0xff] %v14393_v20  ;;  %v14395_v51 = vpop.f32.mrb[133].mxu0 }
 0x1fb   :  { %17088 = vst [vmem:[#allocation26_spill] sm:$0xff] %v14395_v51  ;;  %v14400_v59 = vpop.f32.mrb[134].mxu0  ;;  %v13012_v51 = vld [vmem:[%s16961_s1 + $0x3e8] sm:$0xff]  }
 0x1fc   :  { %17089 = vst [vmem:[#allocation27_spill] sm:$0xff] %v14400_v59  ;;  %v14407_v12 = vpop.f32.mrb[135].mxu0 }
 0x1fd   :  { %17090 = vst [vmem:[#allocation28_spill] sm:$0xff] %v14407_v12 }
 0x1fe   :  { %11746 = vmatmul.mubr.msk.bf16.gmra.mrb[240].mxu0 %vm962_vm0, %v13008_v30 }
 0x1ff   :  { %11749 = vmatprep.mubr.msk.bf16.mxu0 %vm962_vm0, %v13009_v14  ;;  %v14520_v14 = vld [vmem:[%s16963_s3] sm:$0x1] }
 0x200   :  { %12869 = vmatprep.subr.msk.bf16.mxu1 %vm2568_vm1, %v14520_v14 }
 0x201   :  { %v14413_v22 = vpop.f32.mrb[136].mxu0 }
 0x202   :  { %17091 = vst [vmem:[#allocation29_spill] sm:$0xff] %v14413_v22  ;;  %v14415_v36 = vpop.f32.mrb[137].mxu0 }
 0x203   :  { %17092 = vst [vmem:[#allocation30_spill] sm:$0xff] %v14415_v36  ;;  %v14420_v28 = vpop.f32.mrb[138].mxu0  ;;  %v13014_v36 = vld [vmem:[%s16961_s1 + $0x3f8] sm:$0xff]  }
 0x204   :  { %17093 = vst [vmem:[#allocation31_spill] sm:$0xff] %v14420_v28  ;;  %v14427_v30 = vpop.f32.mrb[139].mxu0 }
 0x205   :  { %17094 = vst [vmem:[#allocation32_spill] sm:$0xff] %v14427_v30 }
 0x206   :  { %11750 = vmatmul.mubr.msk.bf16.gmra.mrb[244].mxu0 %vm962_vm0, %v13010_v49 }
 0x207   :  { %11753 = vmatprep.mubr.msk.bf16.mxu0 %vm962_vm0, %v13011_v44 }
 0x209   :  { %v14433_v20 = vpop.f32.mrb[140].mxu0 }
 0x20a   :  { %17095 = vst [vmem:[#allocation33_spill] sm:$0xff] %v14433_v20  ;;  %v14435_v59 = vpop.f32.mrb[141].mxu0 }
 0x20b   :  { %17096 = vst [vmem:[#allocation34_spill] sm:$0xff] %v14435_v59  ;;  %v14440_v12 = vpop.f32.mrb[142].mxu0 }
 0x20c   :  { %17097 = vst [vmem:[#allocation35_spill] sm:$0xff] %v14440_v12  ;;  %v14447_v49 = vpop.f32.mrb[143].mxu0 }
 0x20d   :  { %17098 = vst [vmem:[#allocation36_spill] sm:$0xff] %v14447_v49 }
 0x20e   :  { %11754 = vmatmul.mubr.msk.bf16.gmra.mrb[248].mxu0 %vm962_vm0, %v13012_v51 }
 0x20f   :  { %11757 = vmatprep.mubr.msk.bf16.mxu0 %vm962_vm0, %v13013_v6 }
 0x211   :  { %v14453_v22 = vpop.f32.mrb[144].mxu0 }
 0x212   :  { %17099 = vst [vmem:[#allocation37_spill] sm:$0xff] %v14453_v22  ;;  %v14455_v28 = vpop.f32.mrb[145].mxu0 }
 0x213   :  { %17100 = vst [vmem:[#allocation38_spill] sm:$0xff] %v14455_v28  ;;  %v14460_v30 = vpop.f32.mrb[146].mxu0 }
 0x214   :  { %17101 = vst [vmem:[#allocation39_spill] sm:$0xff] %v14460_v30  ;;  %v14464_v20 = vpop.f32.mrb[147].mxu0 }
 0x215   :  { %17102 = vst [vmem:[#allocation40_spill] sm:$0xff] %v14464_v20 }
 0x216   :  { %11758 = vmatmul.mubr.msk.bf16.gmra.mrb[252].mxu0 %vm962_vm0, %v13014_v36 }
 0x219   :  { %v14469_v6 = vpop.f32.mrb[148].mxu0 }
 0x21a   :  { %17103 = vst [vmem:[#allocation41_spill] sm:$0xff] %v14469_v6  ;;  %v14471_v44 = vpop.f32.mrb[149].mxu0 }
 0x21b   :  { %17104 = vst [vmem:[#allocation42_spill] sm:$0xff] %v14471_v44  ;;  %v14473_v12 = vpop.f32.mrb[150].mxu0 }
 0x21c   :  { %17105 = vst [vmem:[#allocation43_spill] sm:$0xff] %v14473_v12  ;;  %v14477_v49 = vpop.f32.mrb[151].mxu0 }
 0x21d   :  { %17106 = vst [vmem:[#allocation44_spill] sm:$0xff] %v14477_v49 }
 0x221   :  { %v14481_v22 = vpop.f32.mrb[152].mxu0 }
 0x222   :  { %17107 = vst [vmem:[#allocation45_spill] sm:$0xff] %v14481_v22  ;;  %v14483_v30 = vpop.f32.mrb[153].mxu0 }
 0x223   :  { %17108 = vst [vmem:[#allocation46_spill] sm:$0xff] %v14483_v30  ;;  %v14485_v51 = vpop.f32.mrb[154].mxu0 }
 0x224   :  { %17109 = vst [vmem:[#allocation47_spill] sm:$0xff] %v14485_v51  ;;  %v14489_v28 = vpop.f32.mrb[155].mxu0 }
 0x225   :  { %17110 = vst [vmem:[#allocation48_spill] sm:$0xff] %v14489_v28 }
 0x229   :  { %v14493_v59 = vpop.f32.mrb[156].mxu0 }
 0x22a   :  { %17111 = vst [vmem:[#allocation49_spill] sm:$0xff] %v14493_v59  ;;  %v14495_v6 = vpop.f32.mrb[157].mxu0 }
 0x22b   :  { %17112 = vst [vmem:[#allocation50_spill] sm:$0xff] %v14495_v6  ;;  %v14497_v12 = vpop.f32.mrb[158].mxu0 }
 0x22c   :  { %17113 = vst [vmem:[#allocation51_spill] sm:$0xff] %v14497_v12  ;;  %v14501_v44 = vpop.f32.mrb[159].mxu0 }
 0x22d   :  { %17114 = vst [vmem:[#allocation52_spill] sm:$0xff] %v14501_v44 }
 0x231   :  { %v14505_v36 = vpop.f32.mrb[160].mxu0 }
 0x232   :  { %17115 = vst [vmem:[#allocation53_spill] sm:$0xff] %v14505_v36  ;;  %v14507_v22 = vpop.f32.mrb[161].mxu0 }
 0x233   :  { %17116 = vst [vmem:[#allocation54_spill] sm:$0xff] %v14507_v22  ;;  %v14509_v51 = vpop.f32.mrb[162].mxu0 }
 0x234   :  { %17117 = vst [vmem:[#allocation55_spill] sm:$0xff] %v14509_v51  ;;  %v14513_v30 = vpop.f32.mrb[163].mxu0 }
 0x235   :  { %17118 = vst [vmem:[#allocation56_spill] sm:$0xff] %v14513_v30 }
 0x239   :  { %v14522_v49 = vpop.f32.mrb[164].mxu0 }
 0x23a   :  { %17119 = vst [vmem:[#allocation57_spill] sm:$0xff] %v14522_v49  ;;  %v14526_v59 = vpop.f32.mrb[165].mxu0 }
 0x23b   :  { %17120 = vst [vmem:[#allocation58_spill] sm:$0xff] %v14526_v59  ;;  %v14528_v12 = vpop.f32.mrb[166].mxu0 }
 0x23c   :  { %17121 = vst [vmem:[#allocation59_spill] sm:$0xff] %v14528_v12  ;;  %v14532_v36 = vpop.f32.mrb[167].mxu0 }
 0x23d   :  { %17122 = vst [vmem:[#allocation60_spill] sm:$0xff] %v14532_v36 }
 0x241   :  { %v14536_v51 = vpop.f32.mrb[168].mxu0 }
 0x242   :  { %17123 = vst [vmem:[#allocation61_spill] sm:$0xff] %v14536_v51  ;;  %v14538_v22 = vpop.f32.mrb[169].mxu0 }
 0x243   :  { %17124 = vst [vmem:[#allocation62_spill] sm:$0xff] %v14538_v22  ;;  %v14540_v30 = vpop.f32.mrb[170].mxu0 }
 0x244   :  { %17125 = vst [vmem:[#allocation63_spill] sm:$0xff] %v14540_v30  ;;  %v14544_v44 = vpop.f32.mrb[171].mxu0 }
 0x245   :  { %17126 = vst [vmem:[#allocation64_spill] sm:$0xff] %v14544_v44 }
 0x249   :  { %v14548_v20 = vpop.f32.mrb[172].mxu0 }
 0x24a   :  { %17127 = vst [vmem:[#allocation65_spill] sm:$0xff] %v14548_v20  ;;  %v14550_v49 = vpop.f32.mrb[173].mxu0 }
 0x24b   :  { %17128 = vst [vmem:[#allocation66_spill] sm:$0xff] %v14550_v49  ;;  %v14552_v12 = vpop.f32.mrb[174].mxu0 }
 0x24c   :  { %17129 = vst [vmem:[#allocation67_spill] sm:$0xff] %v14552_v12  ;;  %v14556_v59 = vpop.f32.mrb[175].mxu0 }
 0x24d   :  { %17130 = vst [vmem:[#allocation68_spill] sm:$0xff] %v14556_v59  ;;  %v4157_v59 = vld [vmem:[%s16962_s2] sm:$0xff] }
 0x251   :  { %v14560_v6 = vpop.f32.mrb[176].mxu0 }
 0x252   :  { %17131 = vst [vmem:[#allocation69_spill] sm:$0xff] %v14560_v6  ;;  %v14562_v51 = vpop.f32.mrb[177].mxu0 }
 0x253   :  { %17132 = vst [vmem:[#allocation70_spill] sm:$0xff] %v14562_v51  ;;  %v14564_v30 = vpop.f32.mrb[178].mxu0 }
 0x254   :  { %17133 = vst [vmem:[#allocation71_spill] sm:$0xff] %v14564_v30  ;;  %v14568_v22 = vpop.f32.mrb[179].mxu0 }
 0x255   :  { %17134 = vst [vmem:[#allocation72_spill] sm:$0xff] %v14568_v22 }
 0x259   :  { %v14572_v28 = vpop.f32.mrb[180].mxu0 }
 0x25a   :  { %17135 = vst [vmem:[#allocation73_spill] sm:$0xff] %v14572_v28  ;;  %v14574_v20 = vpop.f32.mrb[181].mxu0 }
 0x25b   :  { %17136 = vst [vmem:[#allocation74_spill] sm:$0xff] %v14574_v20  ;;  %v14576_v12 = vpop.f32.mrb[182].mxu0 }
 0x25c   :  { %17137 = vst [vmem:[#allocation75_spill] sm:$0xff] %v14576_v12  ;;  %v14580_v49 = vpop.f32.mrb[183].mxu0  ;;  %v17045_v12 = vmov 0  }
 0x25d   :  { %12885 = vset.pattern.permute.xlu0 %v17045_v12  ;;  %12886 = vset.pattern.permute.xlu1 %v17045_v12 }
 0x25e   :  { %4223 = vperm.xlu0 %12885, %v4157_v59   ;;  %6237 = vmatprep.subr.bf16.mxu0 %v17045_v12  ;;  %v4161_v59 = vld [vmem:[%s16962_s2 + $0x20] sm:$0xff]  ;;  %v4159_v12 = vld [vmem:[%s16962_s2 + $0x10] sm:$0xff] }
 0x25f   :  { %4233 = vperm.xlu1 %12886, %v4159_v12  }
 0x261   :  { %v14584_v3 = vpop.f32.mrb[184].mxu0 }
 0x262   :  { %17138 = vst [vmem:[#allocation76_spill] sm:$0xff] %v14584_v3  ;;  %v14586_v6 = vpop.f32.mrb[185].mxu0  ;;  %v4158_v3 = vld [vmem:[%s16962_s2 + $0x8] sm:$0xff] }
 0x263   :  { %17139 = vst [vmem:[#allocation77_spill] sm:$0xff] %v14586_v6  ;;  %v14588_v30 = vpop.f32.mrb[186].mxu0  ;;  %4228 = vperm.xlu0 %12885, %v4158_v3  }
 0x264   :  { %17140 = vst [vmem:[#allocation78_spill] sm:$0xff] %v14588_v30  ;;  %v14592_v51 = vpop.f32.mrb[187].mxu0  ;;  %v4163_v30 = vld [vmem:[%s16962_s2 + $0x30] sm:$0xff] }
 0x265   :  { %17141 = vst [vmem:[#allocation79_spill] sm:$0xff] %v14592_v51 }
 0x267   :  { %4243 = vperm.xlu0 %12885, %v4161_v59  }
 0x269   :  { %v14596_v36 = vpop.f32.mrb[188].mxu0 }
 0x26a   :  { %17142 = vst [vmem:[#allocation80_spill] sm:$0xff] %v14596_v36  ;;  %v14598_v28 = vpop.f32.mrb[189].mxu0 }
 0x26b   :  { %17143 = vst [vmem:[#allocation81_spill] sm:$0xff] %v14598_v28  ;;  %v14605_v20 = vpop.f32.mrb[190].mxu0  ;;  %v3414_v28 = vsel %vm2568_vm1, %v14520_v14, 0  ;;  %4253 = vperm.xlu0 %12885, %v4163_v30   ;;  %v4162_v14 = vld [vmem:[%s16962_s2 + $0x28] sm:$0xff] }
 0x26c   :  { %17144 = vst [vmem:[#allocation82_spill] sm:$0xff] %v14605_v20  ;;  %v14610_v22 = vpop.f32.mrb[191].mxu0 }
 0x26d   :  { %17145 = vst [vmem:[#allocation83_spill] sm:$0xff] %v14610_v22  ;;  %v4160_v22 = vld [vmem:[%s16962_s2 + $0x18] sm:$0xff] }
 0x26e   :  { %4238 = vperm.xlu1 %12886, %v4160_v22   ;;  %v4167_v22 = vld [vmem:[%s16962_s2 + $0x50] sm:$0xff] }
 0x271   :  { %v11699_v6 = vpop.f32.mrb[192].mxu0 }
 0x272   :  { %v2149_v44 = vpop.f32.mrb[193].mxu0  ;;  %4248 = vperm.xlu1 %12886, %v4162_v14  }
 0x273   :  { %v11700_v36 = vpop.f32.mrb[194].mxu0 }
 0x274   :  { %v2896_v20 = vpack.c.bf16 %v11700_v36, %v11699_v6  ;;  %v2152_v51 = vpop.f32.mrb[195].mxu0  ;;  %v4165_v6 = vld [vmem:[%s16962_s2 + $0x40] sm:$0xff] }
 0x275   :  { %v2895_v3 = vpack.c.bf16 %v2152_v51, %v2149_v44  ;;  %4263 = vperm.xlu0 %12885, %v4165_v6  }
 0x277   :  { %11829 = vmatprep.mubr.msk.bf16.mxu1 %vm2471_vm2, %v2895_v3  ;;  %v4169_v3 = vld [vmem:[%s16962_s2 + $0x60] sm:$0xff] }
 0x278   :  { %11830 = vmatmul.mubr.msk.bf16.vlgmr.msra.gmra.mrb[0].mxu1 %vm2471_vm2, %v2896_v20 }
 0x279   :  { %v11703_v12 = vpop.f32.mrb[196].mxu0  ;;  %11894 = vmatpush3.bf16.msra.mxu1 %v3414_v28  ;;  %v4164_v28 = vld [vmem:[%s16962_s2 + $0x38] sm:$0xff]  ;;  %4273 = vperm.xlu0 %12885, %v4167_v22  }
 0x27a   :  { %v2165_v44 = vpop.f32.mrb[197].mxu0  ;;  %4258 = vperm.xlu1 %12886, %v4164_v28   ;;  %v4168_v22 = vld [vmem:[%s16962_s2 + $0x58] sm:$0xff]  ;;  %v4173_v28 = vld [vmem:[%s16962_s2 + $0x80] sm:$0xff] }
 0x27b   :  { %v11704_v51 = vpop.f32.mrb[198].mxu0 }
 0x27c   :  { %v2898_v36 = vpack.c.bf16 %v11704_v51, %v11703_v12  ;;  %v2168_v59 = vpop.f32.mrb[199].mxu0  ;;  %v4166_v12 = vld [vmem:[%s16962_s2 + $0x48] sm:$0xff] }
 0x27d   :  { %v2897_v20 = vpack.c.bf16 %v2168_v59, %v2165_v44  ;;  %4283 = vperm.xlu0 %12885, %v4169_v3  }
 0x27e   :  { %4268 = vperm.xlu1 %12886, %v4166_v12  }
 0x27f   :  { %11833 = vmatprep.mubr.msk.bf16.mxu1 %vm2471_vm2, %v2897_v20 }
 0x280   :  { %11834 = vmatmul.mubr.msk.bf16.gmra.mrb[4].mxu1 %vm2471_vm2, %v2898_v36  ;;  %v4171_v36 = vld [vmem:[%s16962_s2 + $0x70] sm:$0xff] }
 0x281   :  { %v11707_v30 = vpop.f32.mrb[200].mxu0  ;;  %4293 = vperm.xlu0 %12885, %v4171_v36   ;;  %v4172_v36 = vld [vmem:[%s16962_s2 + $0x78] sm:$0xff] }
 0x282   :  { %v2181_v6 = vpop.f32.mrb[201].mxu0  ;;  %4278 = vperm.xlu1 %12886, %v4168_v22   ;;  %v4177_v22 = vld [vmem:[%s16962_s2 + $0xa0] sm:$0xff] }
 0x283   :  { %v11708_v14 = vpop.f32.mrb[202].mxu0 }
 0x284   :  { %v2900_v44 = vpack.c.bf16 %v11708_v14, %v11707_v30  ;;  %v2184_v51 = vpop.f32.mrb[203].mxu0  ;;  %v4170_v30 = vld [vmem:[%s16962_s2 + $0x68] sm:$0xff] }
 0x285   :  { %v2899_v59 = vpack.c.bf16 %v2184_v51, %v2181_v6  ;;  %4303 = vperm.xlu0 %12885, %v4173_v28  }
 0x286   :  { %4288 = vperm.xlu1 %12886, %v4170_v30  }
 0x287   :  { %11837 = vmatprep.mubr.msk.bf16.mxu1 %vm2471_vm2, %v2899_v59 }
 0x288   :  { %11838 = vmatmul.mubr.msk.bf16.gmra.mrb[8].mxu1 %vm2471_vm2, %v2900_v44  ;;  %v4175_v44 = vld [vmem:[%s16962_s2 + $0x90] sm:$0xff] }
 0x289   :  { %v11711_v20 = vpop.f32.mrb[204].mxu0  ;;  %4313 = vperm.xlu0 %12885, %v4175_v44   ;;  %v4176_v44 = vld [vmem:[%s16962_s2 + $0x98] sm:$0xff] }
 0x28a   :  { %v2197_v3 = vpop.f32.mrb[205].mxu0  ;;  %4298 = vperm.xlu1 %12886, %v4172_v36   ;;  %v4181_v36 = vld [vmem:[%s16962_s2 + $0xc0] sm:$0xff] }
 0x28b   :  { %v11712_v12 = vpop.f32.mrb[206].mxu0 }
 0x28c   :  { %v2902_v6 = vpack.c.bf16 %v11712_v12, %v11711_v20  ;;  %v2200_v14 = vpop.f32.mrb[207].mxu0  ;;  %v4174_v20 = vld [vmem:[%s16962_s2 + $0x88] sm:$0xff] }
 0x28d   :  { %v2901_v51 = vpack.c.bf16 %v2200_v14, %v2197_v3  ;;  %4323 = vperm.xlu0 %12885, %v4177_v22  }
 0x28e   :  { %4308 = vperm.xlu1 %12886, %v4174_v20  }
 0x28f   :  { %11841 = vmatprep.mubr.msk.bf16.mxu1 %vm2471_vm2, %v2901_v51 }
 0x290   :  { %11842 = vmatmul.mubr.msk.bf16.gmra.mrb[12].mxu1 %vm2471_vm2, %v2902_v6  ;;  %v4179_v6 = vld [vmem:[%s16962_s2 + $0xb0] sm:$0xff] }
 0x291   :  { %v11715_v59 = vpop.f32.mrb[208].mxu0  ;;  %4333 = vperm.xlu0 %12885, %v4179_v6   ;;  %v4180_v6 = vld [vmem:[%s16962_s2 + $0xb8] sm:$0xff] }
 0x292   :  { %v2213_v28 = vpop.f32.mrb[209].mxu0  ;;  %4318 = vperm.xlu1 %12886, %v4176_v44   ;;  %v4185_v44 = vld [vmem:[%s16962_s2 + $0xe0] sm:$0xff] }
 0x293   :  { %v11716_v30 = vpop.f32.mrb[210].mxu0 }
 0x294   :  { %v2904_v3 = vpack.c.bf16 %v11716_v30, %v11715_v59  ;;  %v2216_v12 = vpop.f32.mrb[211].mxu0  ;;  %v4178_v59 = vld [vmem:[%s16962_s2 + $0xa8] sm:$0xff] }
 0x295   :  { %v2903_v14 = vpack.c.bf16 %v2216_v12, %v2213_v28  ;;  %4343 = vperm.xlu0 %12885, %v4181_v36  }
 0x296   :  { %4328 = vperm.xlu1 %12886, %v4178_v59  }
 0x297   :  { %11845 = vmatprep.mubr.msk.bf16.mxu1 %vm2471_vm2, %v2903_v14 }
 0x298   :  { %11846 = vmatmul.mubr.msk.bf16.gmra.mrb[16].mxu1 %vm2471_vm2, %v2904_v3  ;;  %v4183_v3 = vld [vmem:[%s16962_s2 + $0xd0] sm:$0xff] }
 0x299   :  { %v11719_v51 = vpop.f32.mrb[212].mxu0  ;;  %4353 = vperm.xlu0 %12885, %v4183_v3   ;;  %v4184_v3 = vld [vmem:[%s16962_s2 + $0xd8] sm:$0xff] }
 0x29a   :  { %v2229_v22 = vpop.f32.mrb[213].mxu0  ;;  %4338 = vperm.xlu1 %12886, %v4180_v6   ;;  %v4189_v6 = vld [vmem:[%s16962_s2 + $0x100] sm:$0xff] }
 0x29b   :  { %v11720_v20 = vpop.f32.mrb[214].mxu0 }
 0x29c   :  { %v2906_v28 = vpack.c.bf16 %v11720_v20, %v11719_v51  ;;  %v2232_v30 = vpop.f32.mrb[215].mxu0  ;;  %v4182_v51 = vld [vmem:[%s16962_s2 + $0xc8] sm:$0xff] }
 0x29d   :  { %v2905_v12 = vpack.c.bf16 %v2232_v30, %v2229_v22  ;;  %4363 = vperm.xlu0 %12885, %v4185_v44  }
 0x29e   :  { %4348 = vperm.xlu1 %12886, %v4182_v51  }
 0x29f   :  { %11849 = vmatprep.mubr.msk.bf16.mxu1 %vm2471_vm2, %v2905_v12 }
 0x2a0   :  { %11850 = vmatmul.mubr.msk.bf16.gmra.mrb[20].mxu1 %vm2471_vm2, %v2906_v28  ;;  %v4187_v28 = vld [vmem:[%s16962_s2 + $0xf0] sm:$0xff] }
 0x2a1   :  { %v11723_v14 = vpop.f32.mrb[216].mxu0  ;;  %4373 = vperm.xlu0 %12885, %v4187_v28   ;;  %v4188_v28 = vld [vmem:[%s16962_s2 + $0xf8] sm:$0xff] }
 0x2a2   :  { %v2245_v36 = vpop.f32.mrb[217].mxu0  ;;  %4358 = vperm.xlu1 %12886, %v4184_v3   ;;  %v4193_v3 = vld [vmem:[%s16962_s2 + $0x120] sm:$0xff] }
 0x2a3   :  { %v11724_v59 = vpop.f32.mrb[218].mxu0 }
 0x2a4   :  { %v2908_v22 = vpack.c.bf16 %v11724_v59, %v11723_v14  ;;  %v2248_v20 = vpop.f32.mrb[219].mxu0  ;;  %v4186_v14 = vld [vmem:[%s16962_s2 + $0xe8] sm:$0xff] }
 0x2a5   :  { %v2907_v30 = vpack.c.bf16 %v2248_v20, %v2245_v36  ;;  %4383 = vperm.xlu0 %12885, %v4189_v6  }
 0x2a6   :  { %4368 = vperm.xlu1 %12886, %v4186_v14  }
 0x2a7   :  { %11853 = vmatprep.mubr.msk.bf16.mxu1 %vm2471_vm2, %v2907_v30 }
 0x2a8   :  { %11854 = vmatmul.mubr.msk.bf16.gmra.mrb[24].mxu1 %vm2471_vm2, %v2908_v22  ;;  %v4191_v22 = vld [vmem:[%s16962_s2 + $0x110] sm:$0xff] }
 0x2a9   :  { %v11727_v12 = vpop.f32.mrb[220].mxu0  ;;  %4393 = vperm.xlu0 %12885, %v4191_v22   ;;  %v4192_v22 = vld [vmem:[%s16962_s2 + $0x118] sm:$0xff] }
 0x2aa   :  { %v2261_v44 = vpop.f32.mrb[221].mxu0  ;;  %4378 = vperm.xlu1 %12886, %v4188_v28  }
 0x2ab   :  { %v11728_v51 = vpop.f32.mrb[222].mxu0 }
 0x2ac   :  { %v2910_v36 = vpack.c.bf16 %v11728_v51, %v11727_v12  ;;  %v2264_v59 = vpop.f32.mrb[223].mxu0  ;;  %v4190_v12 = vld [vmem:[%s16962_s2 + $0x108] sm:$0xff] }
 0x2ad   :  { %v2909_v20 = vpack.c.bf16 %v2264_v59, %v2261_v44  ;;  %4403 = vperm.xlu0 %12885, %v4193_v3   ;;  %v4194_v3 = vld [vmem:[%s16962_s2 + $0x128] sm:$0xff] }
 0x2ae   :  { %4388 = vperm.xlu1 %12886, %v4190_v12  }
 0x2af   :  { %11857 = vmatprep.mubr.msk.bf16.mxu1 %vm2471_vm2, %v2909_v20  ;;  %v14748_v20 = vld [vmem:[%s16963_s3 + $0x2] sm:$0x1] }
 0x2b0   :  { %11858 = vmatmul.mubr.msk.bf16.gmra.mrb[28].mxu1 %vm2471_vm2, %v2910_v36  ;;  %v4195_v36 = vld [vmem:[%s16962_s2 + $0x130] sm:$0xff]  ;;  %12870 = vmatprep.subr.msk.bf16.mxu1 %vm2568_vm1, %v14748_v20 }
 0x2b1   :  { %v11731_v30 = vpop.f32.mrb[224].mxu0  ;;  %4413 = vperm.xlu0 %12885, %v4195_v36  }
 0x2b2   :  { %v2277_v6 = vpop.f32.mrb[225].mxu0  ;;  %4398 = vperm.xlu1 %12886, %v4192_v22  }
 0x2b3   :  { %v11732_v14 = vpop.f32.mrb[226].mxu0 }
 0x2b4   :  { %v2912_v44 = vpack.c.bf16 %v11732_v14, %v11731_v30  ;;  %v2280_v51 = vpop.f32.mrb[227].mxu0  ;;  %v4197_v30 = vld [vmem:[%s16962_s2 + $0x140] sm:$0xff] }
 0x2b5   :  { %v2911_v59 = vpack.c.bf16 %v2280_v51, %v2277_v6  ;;  %4423 = vperm.xlu0 %12885, %v4197_v30   ;;  %v4199_v51 = vld [vmem:[%s16962_s2 + $0x150] sm:$0xff]  ;;  %v4198_v30 = vld [vmem:[%s16962_s2 + $0x148] sm:$0xff] }
 0x2b6   :  { %4408 = vperm.xlu1 %12886, %v4194_v3  }
 0x2b7   :  { %11861 = vmatprep.mubr.msk.bf16.mxu1 %vm2471_vm2, %v2911_v59  ;;  %v4196_v59 = vld [vmem:[%s16962_s2 + $0x138] sm:$0xff] }
 0x2b8   :  { %11862 = vmatmul.mubr.msk.bf16.gmra.mrb[32].mxu1 %vm2471_vm2, %v2912_v44 }
 0x2b9   :  { %v11735_v28 = vpop.f32.mrb[228].mxu0  ;;  %4433 = vperm.xlu0 %12885, %v4199_v51  }
 0x2ba   :  { %v2293_v12 = vpop.f32.mrb[229].mxu0  ;;  %4418 = vperm.xlu1 %12886, %v4196_v59  }
 0x2bb   :  { %v11736_v6 = vpop.f32.mrb[230].mxu0 }
 0x2bc   :  { %v2914_v14 = vpack.c.bf16 %v11736_v6, %v11735_v28  ;;  %v2296_v44 = vpop.f32.mrb[231].mxu0  ;;  %v4201_v28 = vld [vmem:[%s16962_s2 + $0x160] sm:$0xff] }
 0x2bd   :  { %v2913_v36 = vpack.c.bf16 %v2296_v44, %v2293_v12  ;;  %4443 = vperm.xlu0 %12885, %v4201_v28   ;;  %v4202_v28 = vld [vmem:[%s16962_s2 + $0x168] sm:$0xff] }
 0x2be   :  { %4428 = vperm.xlu1 %12886, %v4198_v30  }
 0x2bf   :  { %11865 = vmatprep.mubr.msk.bf16.mxu1 %vm2471_vm2, %v2913_v36  ;;  %v4200_v36 = vld [vmem:[%s16962_s2 + $0x158] sm:$0xff] }
 0x2c0   :  { %11866 = vmatmul.mubr.msk.bf16.gmra.mrb[36].mxu1 %vm2471_vm2, %v2914_v14  ;;  %v4203_v14 = vld [vmem:[%s16962_s2 + $0x170] sm:$0xff] }
 0x2c1   :  { %v11739_v22 = vpop.f32.mrb[232].mxu0  ;;  %4453 = vperm.xlu0 %12885, %v4203_v14  }
 0x2c2   :  { %v2309_v3 = vpop.f32.mrb[233].mxu0  ;;  %4438 = vperm.xlu1 %12886, %v4200_v36  }
 0x2c3   :  { %v11740_v12 = vpop.f32.mrb[234].mxu0 }
 0x2c4   :  { %v2916_v6 = vpack.c.bf16 %v11740_v12, %v11739_v22  ;;  %v2312_v44 = vpop.f32.mrb[235].mxu0  ;;  %v4205_v22 = vld [vmem:[%s16962_s2 + $0x180] sm:$0xff] }
 0x2c5   :  { %v2915_v51 = vpack.c.bf16 %v2312_v44, %v2309_v3  ;;  %4463 = vperm.xlu0 %12885, %v4205_v22   ;;  %v4206_v22 = vld [vmem:[%s16962_s2 + $0x188] sm:$0xff] }
 0x2c6   :  { %4448 = vperm.xlu1 %12886, %v4202_v28  }
 0x2c7   :  { %11869 = vmatprep.mubr.msk.bf16.mxu1 %vm2471_vm2, %v2915_v51  ;;  %v4204_v51 = vld [vmem:[%s16962_s2 + $0x178] sm:$0xff] }
 0x2c8   :  { %11870 = vmatmul.mubr.msk.bf16.gmra.mrb[40].mxu1 %vm2471_vm2, %v2916_v6  ;;  %v4207_v6 = vld [vmem:[%s16962_s2 + $0x190] sm:$0xff] }
 0x2c9   :  { %v11743_v59 = vpop.f32.mrb[236].mxu0  ;;  %4473 = vperm.xlu0 %12885, %v4207_v6  }
 0x2ca   :  { %v2325_v30 = vpop.f32.mrb[237].mxu0  ;;  %4458 = vperm.xlu1 %12886, %v4204_v51  }
 0x2cb   :  { %v11744_v3 = vpop.f32.mrb[238].mxu0 }
 0x2cc   :  { %v2918_v12 = vpack.c.bf16 %v11744_v3, %v11743_v59  ;;  %v2328_v44 = vpop.f32.mrb[239].mxu0  ;;  %v4209_v59 = vld [vmem:[%s16962_s2 + $0x1a0] sm:$0xff] }
 0x2cd   :  { %v2917_v14 = vpack.c.bf16 %v2328_v44, %v2325_v30  ;;  %4483 = vperm.xlu0 %12885, %v4209_v59   ;;  %v4210_v59 = vld [vmem:[%s16962_s2 + $0x1a8] sm:$0xff] }
 0x2ce   :  { %4468 = vperm.xlu1 %12886, %v4206_v22  }
 0x2cf   :  { %11873 = vmatprep.mubr.msk.bf16.mxu1 %vm2471_vm2, %v2917_v14  ;;  %v4208_v14 = vld [vmem:[%s16962_s2 + $0x198] sm:$0xff] }
 0x2d0   :  { %11874 = vmatmul.mubr.msk.bf16.gmra.mrb[44].mxu1 %vm2471_vm2, %v2918_v12  ;;  %v4211_v12 = vld [vmem:[%s16962_s2 + $0x1b0] sm:$0xff] }
 0x2d1   :  { %v11747_v36 = vpop.f32.mrb[240].mxu0  ;;  %4493 = vperm.xlu0 %12885, %v4211_v12  }
 0x2d2   :  { %v2341_v28 = vpop.f32.mrb[241].mxu0  ;;  %4478 = vperm.xlu1 %12886, %v4208_v14  }
 0x2d3   :  { %v11748_v30 = vpop.f32.mrb[242].mxu0 }
 0x2d4   :  { %v2920_v3 = vpack.c.bf16 %v11748_v30, %v11747_v36  ;;  %v2344_v44 = vpop.f32.mrb[243].mxu0  ;;  %v4213_v36 = vld [vmem:[%s16962_s2 + $0x1c0] sm:$0xff] }
 0x2d5   :  { %v2919_v6 = vpack.c.bf16 %v2344_v44, %v2341_v28  ;;  %4503 = vperm.xlu0 %12885, %v4213_v36   ;;  %v4214_v36 = vld [vmem:[%s16962_s2 + $0x1c8] sm:$0xff] }
 0x2d6   :  { %4488 = vperm.xlu1 %12886, %v4210_v59  }
 0x2d7   :  { %11877 = vmatprep.mubr.msk.bf16.mxu1 %vm2471_vm2, %v2919_v6  ;;  %v4212_v6 = vld [vmem:[%s16962_s2 + $0x1b8] sm:$0xff] }
 0x2d8   :  { %11878 = vmatmul.mubr.msk.bf16.gmra.mrb[48].mxu1 %vm2471_vm2, %v2920_v3  ;;  %v4215_v3 = vld [vmem:[%s16962_s2 + $0x1d0] sm:$0xff] }
 0x2d9   :  { %v11751_v51 = vpop.f32.mrb[244].mxu0  ;;  %4513 = vperm.xlu0 %12885, %v4215_v3  }
 0x2da   :  { %v2357_v22 = vpop.f32.mrb[245].mxu0  ;;  %4498 = vperm.xlu1 %12886, %v4212_v6  }
 0x2db   :  { %v11752_v28 = vpop.f32.mrb[246].mxu0 }
 0x2dc   :  { %v2360_v30 = vpop.f32.mrb[247].mxu0  ;;  %v2922_v44 = vpack.c.bf16 %v11752_v28, %v11751_v51  ;;  %v4217_v51 = vld [vmem:[%s16962_s2 + $0x1e0] sm:$0xff] }
 0x2dd   :  { %v2921_v12 = vpack.c.bf16 %v2360_v30, %v2357_v22  ;;  %4523 = vperm.xlu0 %12885, %v4217_v51   ;;  %v4218_v51 = vld [vmem:[%s16962_s2 + $0x1e8] sm:$0xff] }
 0x2de   :  { %4508 = vperm.xlu1 %12886, %v4214_v36  }
 0x2df   :  { %11881 = vmatprep.mubr.msk.bf16.mxu1 %vm2471_vm2, %v2921_v12  ;;  %v4216_v12 = vld [vmem:[%s16962_s2 + $0x1d8] sm:$0xff] }
 0x2e0   :  { %11882 = vmatmul.mubr.msk.bf16.gmra.mrb[52].mxu1 %vm2471_vm2, %v2922_v44  ;;  %v4219_v44 = vld [vmem:[%s16962_s2 + $0x1f0] sm:$0xff] }
 0x2e1   :  { %v11755_v14 = vpop.f32.mrb[248].mxu0  ;;  %4533 = vperm.xlu0 %12885, %v4219_v44  }
 0x2e2   :  { %v2373_v59 = vpop.f32.mrb[249].mxu0  ;;  %4518 = vperm.xlu1 %12886, %v4216_v12   ;;  %v17146_v12 = vpack.c.bf16 %v13900_v4, %v13885_v62  ;;  %v8283_v62 = vld [vmem:[%s16965_s5 + $0x18] sm:$0xff]  ;;  %v17147_v4 = vpack.c.bf16 %v13890_v0, %v13883_v61  ;;  %v8290_v61 = vld [vmem:[%s16965_s5 + $0x50] sm:$0xff] }
 0x2e3   :  { %v11756_v22 = vpop.f32.mrb[250].mxu0  ;;  %v8287_v0 = vld [vmem:[%s16965_s5 + $0x38] sm:$0xff] }
 0x2e4   :  { %v2376_v28 = vpop.f32.mrb[251].mxu0  ;;  %v2924_v30 = vpack.c.bf16 %v11756_v22, %v11755_v14  ;;  %v8280_v14 = vld [vmem:[%s16965_s5] sm:$0xff] }
 0x2e5   :  { %v2923_v3 = vpack.c.bf16 %v2376_v28, %v2373_v59  ;;  %8314 = vperm.xlu0 %12885, %v8280_v14   ;;  %v8281_v14 = vld [vmem:[%s16965_s5 + $0x8] sm:$0xff] }
 0x2e6   :  { %4528 = vperm.xlu1 %12886, %v4218_v51   ;;  %v8286_v51 = vld [vmem:[%s16965_s5 + $0x30] sm:$0xff] }
 0x2e7   :  { %11885 = vmatprep.mubr.msk.bf16.mxu1 %vm2471_vm2, %v2923_v3  ;;  %v4220_v3 = vld [vmem:[%s16962_s2 + $0x1f8] sm:$0xff] }
 0x2e8   :  { %11886 = vmatmul.mubr.msk.bf16.gmra.mrb[56].mxu1 %vm2471_vm2, %v2924_v30  ;;  %v8282_v30 = vld [vmem:[%s16965_s5 + $0x10] sm:$0xff] }
 0x2e9   :  { %v11759_v6 = vpop.f32.mrb[252].mxu0  ;;  %8324 = vperm.xlu0 %12885, %v8282_v30   ;;  %v8292_v30 = vld [vmem:[%s16965_s5 + $0x60] sm:$0xff] }
 0x2ea   :  { %v2389_v36 = vpop.f32.mrb[253].mxu0  ;;  %4538 = vperm.xlu1 %12886, %v4220_v3   ;;  %v8296_v3 = vld [vmem:[%s16965_s5 + $0x80] sm:$0xff] }
 0x2eb   :  { %v11760_v59 = vpop.f32.mrb[254].mxu0 }
 0x2ec   :  { %v2392_v22 = vpop.f32.mrb[255].mxu0  ;;  %v2926_v28 = vpack.c.bf16 %v11760_v59, %v11759_v6  ;;  %v8284_v6 = vld [vmem:[%s16965_s5 + $0x20] sm:$0xff]  ;;  %v17148_v59 = vpack.c.bf16 %v13922_v13, %v13910_v8  ;;  %v17150_v8 = vpack.c.bf16 %v13915_v10, %v13908_v7  ;;  %v17151_v13 = vpack.c.bf16 %v13942_v21, %v13930_v16  ;;  %v8294_v7 = vld [vmem:[%s16965_s5 + $0x70] sm:$0xff]  ;;  %v8291_v10 = vld [vmem:[%s16965_s5 + $0x58] sm:$0xff] }
 0x2ed   :  { %v2925_v44 = vpack.c.bf16 %v2392_v22, %v2389_v36  ;;  %8334 = vperm.xlu0 %12885, %v8284_v6   ;;  %v3802_v36 = vsel %vm2568_vm1, %v14748_v20, 0  ;;  %v8288_v20 = vld [vmem:[%s16965_s5 + $0x40] sm:$0xff]  ;;  %v8285_v22 = vld [vmem:[%s16965_s5 + $0x28] sm:$0xff]  ;;  %v17152_v16 = vpack.c.bf16 %v13935_v18, %v13928_v15  ;;  %v17153_v21 = vpack.c.bf16 %v13962_v29, %v13950_v24  ;;  %v8298_v15 = vld [vmem:[%s16965_s5 + $0x90] sm:$0xff] }
 0x2ee   :  { %8319 = vperm.xlu1 %12886, %v8281_v14   ;;  %v8295_v18 = vld [vmem:[%s16965_s5 + $0x78] sm:$0xff]  ;;  %v17154_v24 = vpack.c.bf16 %v13955_v26, %v13948_v23  ;;  %v17155_v29 = vpack.c.bf16 %v13982_v37, %v13970_v32  ;;  %v8300_v6 = vld [vmem:[%s16965_s5 + $0xa0] sm:$0xff]  ;;  %v8297_v14 = vld [vmem:[%s16965_s5 + $0x88] sm:$0xff]  ;;  %v17156_v32 = vpack.c.bf16 %v13975_v34, %v13968_v31  ;;  %v17157_v37 = vpack.c.bf16 %v14002_v45, %v13990_v40 }
 0x2ef   :  { %11889 = vmatprep.mubr.msk.bf16.mxu1 %vm2471_vm2, %v2925_v44  ;;  %v8289_v44 = vld [vmem:[%s16965_s5 + $0x48] sm:$0xff]  ;;  %v8302_v23 = vld [vmem:[%s16965_s5 + $0xb0] sm:$0xff]  ;;  %v8299_v26 = vld [vmem:[%s16965_s5 + $0x98] sm:$0xff]  ;;  %v17158_v40 = vpack.c.bf16 %v13995_v42, %v13988_v39  ;;  %v17159_v45 = vpack.c.bf16 %v14022_v53, %v14010_v48  ;;  %v17160_v53 = vpack.c.bf16 %v14015_v50, %v14008_v47 }
 0x2f0   :  { %11890 = vmatmul.mubr.msk.bf16.gmra.mrb[60].mxu1 %vm2471_vm2, %v2926_v28  ;;  %v17149_v28 = vmov 0   ;;  %v8306_v31 = vld [vmem:[%s16965_s5 + $0xd0] sm:$0xff]  ;;  %v8303_v34 = vld [vmem:[%s16965_s5 + $0xb8] sm:$0xff] }
 0x2f1   :  { %11895 = vmatprep.mubr.msk.bf16.mxu1 %vm2471_vm2, %v17146_v12  ;;  %8344 = vperm.xlu0 %12885, %v8286_v51   ;;  %v8293_v12 = vld [vmem:[%s16965_s5 + $0x68] sm:$0xff]  ;;  %v8304_v51 = vld [vmem:[%s16965_s5 + $0xc0] sm:$0xff]  ;;  %v8310_v39 = vld [vmem:[%s16965_s5 + $0xf0] sm:$0xff] }
 0x2f2   :  { %8329 = vperm.xlu1 %12886, %v8283_v62   ;;  %v14977_v62 = vpop.permute.xlu0 %4223  ;;  %v8307_v42 = vld [vmem:[%s16965_s5 + $0xd8] sm:$0xff]  ;;  %v9795_v47 = vld [vmem:[%s16968_s8 + $0x10] sm:$0xff] }
 0x2f5   :  { %8354 = vperm.xlu0 %12885, %v8288_v20   ;;  %v17161_v20 = vpack.c.bf16 %v14042_v63, %v14030_v56  ;;  %v8311_v56 = vld [vmem:[%s16965_s5 + $0xf8] sm:$0xff]  ;;  %v17162_v63 = vpack.c.bf16 %v14035_v58, %v14028_v55  ;;  %v9799_v55 = vld [vmem:[%s16968_s8 + $0x30] sm:$0xff] }
 0x2f6   :  { %8339 = vperm.xlu1 %12886, %v8285_v22   ;;  %v14991_v48 = vpop.permute.xlu0 %4228  ;;  %v9793_v22 = vld [vmem:[%s16968_s8] sm:$0xff]  ;;  %v9796_v58 = vld [vmem:[%s16968_s8 + $0x18] sm:$0xff] }
 0x2f8   :  { %11896 = vmatmul.mubr.msk.bf16.vlgmr.msra.gmra.mrb[0].mxu1 %vm2471_vm2, %v17147_v4  ;;  %v8308_v4 = vld [vmem:[%s16965_s5 + $0xe0] sm:$0xff] }
 0x2f9   :  { %11899 = vmatprep.mubr.msk.bf16.mxu1 %vm2471_vm2, %v17148_v59  ;;  %11960 = vmatpush3.bf16.msra.mxu1 %v3802_v36  ;;  %v8301_v36 = vld [vmem:[%s16965_s5 + $0xa8] sm:$0xff] }
 0x2fa   :  { %12285 = vmatprep.subr.bf16.mxu1 %v17149_v28  ;;  %8364 = vperm.xlu0 %12885, %v8290_v61   ;;  %v8305_v59 = vld [vmem:[%s16965_s5 + $0xc8] sm:$0xff]  ;;  %v15012_v50 = vpop.permute.xlu0 %4243 }
 0x2fb   :  { %8349 = vperm.xlu1 %12886, %v8287_v0   ;;  %v8309_v61 = vld [vmem:[%s16965_s5 + $0xe8] sm:$0xff]  ;;  %v15007_v0 = vpop.permute.xlu1 %4233 }
 0x2fe   :  { %8374 = vperm.xlu0 %12885, %v8292_v30   ;;  %v9794_v30 = vld [vmem:[%s16968_s8 + $0x8] sm:$0xff] }
 0x2ff   :  { %8359 = vperm.xlu1 %12886, %v8289_v44   ;;  %v15031_v44 = vpop.permute.xlu1 %4238 }
 0x300   :  { %11900 = vmatmul.mubr.msk.bf16.gmra.mrb[4].mxu1 %vm2471_vm2, %v17150_v8  ;;  %v17163_v8 = vpack.c.bf16 %v14062_v25, %v14050_v5  ;;  %v17164_v5 = vpack.c.bf16 %v14055_v11, %v14048_v2  ;;  %v9798_v2 = vld [vmem:[%s16968_s8 + $0x28] sm:$0xff]  ;;  %v9803_v11 = vld [vmem:[%s16968_s8 + $0x50] sm:$0xff] }
 0x301   :  { %11903 = vmatprep.mubr.msk.bf16.mxu1 %vm2471_vm2, %v17151_v13  ;;  %v9797_v13 = vld [vmem:[%s16968_s8 + $0x20] sm:$0xff] }
 0x302   :  { %8384 = vperm.xlu0 %12885, %v8294_v7   ;;  %v15033_v7 = vpop.permute.xlu0 %4253 }
 0x303   :  { %8369 = vperm.xlu1 %12886, %v8291_v10   ;;  %v15045_v25 = vpop.permute.xlu1 %4248  ;;  %v17165_v10 = vpack.c.bf16 %v14082_v57, %v14070_v35  ;;  %v9800_v35 = vld [vmem:[%s16968_s8 + $0x38] sm:$0xff] }
 0x306   :  { %8394 = vperm.xlu0 %12885, %v8296_v3  }
 0x307   :  { %8379 = vperm.xlu1 %12886, %v8293_v12   ;;  %v15062_v3 = vpop.permute.xlu1 %4258  ;;  %v17166_v12 = vpack.c.bf16 %v14075_v43, %v14068_v33  ;;  %v9807_v33 = vld [vmem:[%s16968_s8 + $0x70] sm:$0xff] }
 0x308   :  { %11904 = vmatmul.mubr.msk.bf16.gmra.mrb[8].mxu1 %vm2471_vm2, %v17152_v16  ;;  %v15051_v16 = vpop.permute.xlu0 %4263 }
 0x309   :  { %11907 = vmatprep.mubr.msk.bf16.mxu1 %vm2471_vm2, %v17153_v21  ;;  %v9801_v21 = vld [vmem:[%s16968_s8 + $0x40] sm:$0xff] }
 0x30a   :  { %8404 = vperm.xlu0 %12885, %v8298_v15   ;;  %v17167_v15 = vpack.c.bf16 %v14102_v41, %v14090_v17  ;;  %v9804_v17 = vld [vmem:[%s16968_s8 + $0x58] sm:$0xff]  ;;  %v17168_v41 = vpack.c.bf16 %v14095_v27, %v14088_v9  ;;  %v17170_v27 = vpack.c.bf16 %v14115_v54, %v14108_v60  ;;  %v17177_v54 = vld [vmem:[#allocation11_spill] sm:$0xff]  ;;  %v17178_v60 = vld [vmem:[#allocation9_spill] sm:$0xff] }
 0x30b   :  { %8389 = vperm.xlu1 %12886, %v8295_v18   ;;  %v9805_v18 = vld [vmem:[%s16968_s8 + $0x60] sm:$0xff] }
 0x30c   :  { %v15067_v57 = vpop.permute.xlu0 %4273 }
 0x30e   :  { %8414 = vperm.xlu0 %12885, %v8300_v6   ;;  %v17169_v6 = vpack.c.bf16 %v14122_v19, %v14110_v1  ;;  %v9808_v1 = vld [vmem:[%s16968_s8 + $0x78] sm:$0xff]  ;;  %v17171_v19 = vpack.c.bf16 %v14142_v52, %v14130_v46  ;;  %v17183_v52 = vld [vmem:[#allocation15_spill] sm:$0xff] }
 0x30f   :  { %8399 = vperm.xlu1 %12886, %v8297_v14   ;;  %v10238_v14 = vld [vmem:[%s16971_s11] sm:$0xff] }
 0x310   :  { %11908 = vmatmul.mubr.msk.bf16.gmra.mrb[12].mxu1 %vm2471_vm2, %v17154_v24  ;;  %v9802_v24 = vld [vmem:[%s16968_s8 + $0x48] sm:$0xff]  ;;  %v15088_v43 = vpop.permute.xlu0 %4283 }
 0x311   :  { %11911 = vmatprep.mubr.msk.bf16.mxu1 %vm2471_vm2, %v17155_v29  ;;  %v15083_v29 = vpop.permute.xlu1 %4268 }
 0x312   :  { %8424 = vperm.xlu0 %12885, %v8302_v23   ;;  %v9806_v23 = vld [vmem:[%s16968_s8 + $0x68] sm:$0xff] }
 0x313   :  { %8409 = vperm.xlu1 %12886, %v8299_v26  }
 0x315   :  { %v15107_v26 = vpop.permute.xlu1 %4278 }
 0x316   :  { %8434 = vperm.xlu0 %12885, %v8304_v51  }
 0x317   :  { %8419 = vperm.xlu1 %12886, %v8301_v36   ;;  %v17174_v36 = vld [vmem:[#allocation12_spill] sm:$0xff] }
 0x318   :  { %11912 = vmatmul.mubr.msk.bf16.gmra.mrb[16].mxu1 %vm2471_vm2, %v17156_v32  ;;  %v15109_v32 = vpop.permute.xlu0 %4293 }
 0x319   :  { %11915 = vmatprep.mubr.msk.bf16.mxu1 %vm2471_vm2, %v17157_v37  ;;  %v15118_v9 = vpop.permute.xlu1 %4288  ;;  %v17172_v37 = vld [vmem:[#allocation8_spill] sm:$0xff] }
 0x31a   :  { %8444 = vperm.xlu0 %12885, %v8306_v31   ;;  %v17173_v51 = vpack.c.bf16 %v14135_v38, %v17172_v37  ;;  %v17175_v31 = vld [vmem:[#allocation10_spill] sm:$0xff]  ;;  %v17219_v37 = vld [vmem:[#allocation39_spill] sm:$0xff] }
 0x31b   :  { %8429 = vperm.xlu1 %12886, %v8303_v34   ;;  %v17176_v34 = vpack.c.bf16 %v17174_v36, %v17175_v31  ;;  %v17222_v31 = vld [vmem:[#allocation44_spill] sm:$0xff] }
 0x31e   :  { %8454 = vperm.xlu0 %12885, %v8308_v4   ;;  %v17181_v4 = vld [vmem:[#allocation14_spill] sm:$0xff] }
 0x31f   :  { %8439 = vperm.xlu1 %12886, %v8305_v59   ;;  %v17184_v59 = vld [vmem:[#allocation13_spill] sm:$0xff] }
 0x320   :  { %11916 = vmatmul.mubr.msk.bf16.gmra.mrb[20].mxu1 %vm2471_vm2, %v17158_v40  ;;  %v17179_v40 = vpack.c.bf16 %v17177_v54, %v17178_v60  ;;  %v17185_v38 = vpack.c.bf16 %v17183_v52, %v17184_v59  ;;  %v17225_v60 = vld [vmem:[#allocation43_spill] sm:$0xff] }
 0x321   :  { %11919 = vmatprep.mubr.msk.bf16.mxu1 %vm2471_vm2, %v17159_v45  ;;  %v17180_v45 = vld [vmem:[#allocation16_spill] sm:$0xff]  ;;  %v17231_v59 = vld [vmem:[#allocation47_spill] sm:$0xff] }
 0x322   :  { %8464 = vperm.xlu0 %12885, %v8310_v39   ;;  %v17182_v46 = vpack.c.bf16 %v17180_v45, %v17181_v4  ;;  %v17186_v39 = vld [vmem:[#allocation20_spill] sm:$0xff] }
 0x323   :  { %8449 = vperm.xlu1 %12886, %v8307_v42   ;;  %v17187_v42 = vld [vmem:[#allocation18_spill] sm:$0xff]  ;;  %v17228_v4 = vld [vmem:[#allocation48_spill] sm:$0xff] }
 0x326   :  { %9811 = vperm.xlu0 %12885, %v9793_v22   ;;  %v17190_v22 = vld [vmem:[#allocation17_spill] sm:$0xff] }
 0x327   :  { %8459 = vperm.xlu1 %12886, %v8309_v61  }
 0x328   :  { %11920 = vmatmul.mubr.msk.bf16.gmra.mrb[24].mxu1 %vm2471_vm2, %v17160_v53  ;;  %v17188_v53 = vpack.c.bf16 %v17186_v39, %v17187_v42  ;;  %v17234_v42 = vld [vmem:[#allocation52_spill] sm:$0xff] }
 0x329   :  { %11923 = vmatprep.mubr.msk.bf16.mxu1 %vm2471_vm2, %v17161_v20  ;;  %v17189_v20 = vld [vmem:[#allocation19_spill] sm:$0xff] }
 0x32a   :  { %9821 = vperm.xlu0 %12885, %v9795_v47   ;;  %v17191_v61 = vpack.c.bf16 %v17189_v20, %v17190_v22  ;;  %v17192_v47 = vld [vmem:[#allocation24_spill] sm:$0xff]  ;;  %v17237_v22 = vld [vmem:[#allocation51_spill] sm:$0xff] }
 0x32b   :  { %8469 = vperm.xlu1 %12886, %v8311_v56   ;;  %v17193_v56 = vld [vmem:[#allocation22_spill] sm:$0xff] }
 0x32e   :  { %9831 = vperm.xlu0 %12885, %v9797_v13   ;;  %v17196_v13 = vld [vmem:[#allocation21_spill] sm:$0xff] }
 0x32f   :  { %9816 = vperm.xlu1 %12886, %v9794_v30  }
 0x330   :  { %11924 = vmatmul.mubr.msk.bf16.gmra.mrb[28].mxu1 %vm2471_vm2, %v17162_v63  ;;  %v17194_v63 = vpack.c.bf16 %v17192_v47, %v17193_v56  ;;  %v17240_v56 = vld [vmem:[#allocation56_spill] sm:$0xff] }
 0x331   :  { %11927 = vmatprep.mubr.msk.bf16.mxu1 %vm2471_vm2, %v17163_v8  ;;  %v17195_v8 = vld [vmem:[#allocation23_spill] sm:$0xff] }
 0x332   :  { %9841 = vperm.xlu0 %12885, %v9799_v55   ;;  %v17197_v30 = vpack.c.bf16 %v17195_v8, %v17196_v13  ;;  %v17198_v55 = vld [vmem:[#allocation28_spill] sm:$0xff]  ;;  %v17243_v13 = vld [vmem:[#allocation55_spill] sm:$0xff] }
 0x333   :  { %9826 = vperm.xlu1 %12886, %v9796_v58   ;;  %v17199_v58 = vld [vmem:[#allocation26_spill] sm:$0xff] }
 0x336   :  { %9851 = vperm.xlu0 %12885, %v9801_v21   ;;  %v17202_v21 = vld [vmem:[#allocation25_spill] sm:$0xff] }
 0x337   :  { %9836 = vperm.xlu1 %12886, %v9798_v2  }
 0x338   :  { %11928 = vmatmul.mubr.msk.bf16.gmra.mrb[32].mxu1 %vm2471_vm2, %v17164_v5  ;;  %v17200_v5 = vpack.c.bf16 %v17198_v55, %v17199_v58  ;;  %v17246_v58 = vld [vmem:[#allocation60_spill] sm:$0xff] }
 0x339   :  { %11931 = vmatprep.mubr.msk.bf16.mxu1 %vm2471_vm2, %v17165_v10  ;;  %v17201_v10 = vld [vmem:[#allocation27_spill] sm:$0xff] }
 0x33a   :  { %9861 = vperm.xlu0 %12885, %v9803_v11   ;;  %v17203_v2 = vpack.c.bf16 %v17201_v10, %v17202_v21  ;;  %v17204_v11 = vld [vmem:[#allocation32_spill] sm:$0xff]  ;;  %v17249_v21 = vld [vmem:[#allocation59_spill] sm:$0xff] }
 0x33b   :  { %9846 = vperm.xlu1 %12886, %v9800_v35   ;;  %v17205_v35 = vld [vmem:[#allocation30_spill] sm:$0xff] }
 0x33e   :  { %9871 = vperm.xlu0 %12885, %v9805_v18   ;;  %v17208_v18 = vld [vmem:[#allocation29_spill] sm:$0xff] }
 0x33f   :  { %9856 = vperm.xlu1 %12886, %v9802_v24  }
 0x340   :  { %11932 = vmatmul.mubr.msk.bf16.gmra.mrb[36].mxu1 %vm2471_vm2, %v17166_v12  ;;  %v17206_v12 = vpack.c.bf16 %v17204_v11, %v17205_v35  ;;  %v17252_v35 = vld [vmem:[#allocation64_spill] sm:$0xff] }
 0x341   :  { %11935 = vmatprep.mubr.msk.bf16.mxu1 %vm2471_vm2, %v17167_v15  ;;  %v17207_v15 = vld [vmem:[#allocation31_spill] sm:$0xff] }
 0x342   :  { %9881 = vperm.xlu0 %12885, %v9807_v33   ;;  %v17209_v24 = vpack.c.bf16 %v17207_v15, %v17208_v18  ;;  %v17210_v33 = vld [vmem:[#allocation36_spill] sm:$0xff]  ;;  %v17255_v18 = vld [vmem:[#allocation63_spill] sm:$0xff] }
 0x343   :  { %9866 = vperm.xlu1 %12886, %v9804_v17   ;;  %v17211_v17 = vld [vmem:[#allocation34_spill] sm:$0xff] }
 0x346   :  { %10241 = vperm.xlu0 %12885, %v10238_v14   ;;  %v17214_v14 = vld [vmem:[#allocation33_spill] sm:$0xff] }
 0x347   :  { %9876 = vperm.xlu1 %12886, %v9806_v23  }
 0x348   :  { %11936 = vmatmul.mubr.msk.bf16.gmra.mrb[40].mxu1 %vm2471_vm2, %v17168_v41  ;;  %v17212_v41 = vpack.c.bf16 %v17210_v33, %v17211_v17  ;;  %v17258_v17 = vld [vmem:[#allocation68_spill] sm:$0xff] }
 0x349   :  { %11939 = vmatprep.mubr.msk.bf16.mxu1 %vm2471_vm2, %v17169_v6  ;;  %v17213_v6 = vld [vmem:[#allocation35_spill] sm:$0xff] }
 0x34a   :  { %v17215_v23 = vpack.c.bf16 %v17213_v6, %v17214_v14  ;;  %v17261_v14 = vld [vmem:[#allocation67_spill] sm:$0xff] }
 0x34b   :  { %9886 = vperm.xlu1 %12886, %v9808_v1   ;;  %v17216_v1 = vld [vmem:[#allocation40_spill] sm:$0xff] }
 0x350   :  { %11940 = vmatmul.mubr.msk.bf16.gmra.mrb[44].mxu1 %vm2471_vm2, %v17170_v27  ;;  %v17217_v27 = vld [vmem:[#allocation38_spill] sm:$0xff] }
 0x351   :  { %11943 = vmatprep.mubr.msk.bf16.mxu1 %vm2471_vm2, %v17171_v19  ;;  %v17218_v19 = vpack.c.bf16 %v17216_v1, %v17217_v27  ;;  %v17264_v27 = vld [vmem:[#allocation72_spill] sm:$0xff] }
 0x358   :  { %11944 = vmatmul.mubr.msk.bf16.gmra.mrb[48].mxu1 %vm2471_vm2, %v17173_v51  ;;  %v17220_v51 = vld [vmem:[#allocation37_spill] sm:$0xff] }
 0x359   :  { %11947 = vmatprep.mubr.msk.bf16.mxu1 %vm2471_vm2, %v17176_v34  ;;  %v17221_v36 = vpack.c.bf16 %v17219_v37, %v17220_v51  ;;  %v17223_v34 = vld [vmem:[#allocation42_spill] sm:$0xff]  ;;  %v17267_v51 = vld [vmem:[#allocation71_spill] sm:$0xff] }
 0x35a   :  { %v17224_v54 = vpack.c.bf16 %v17222_v31, %v17223_v34  ;;  %v17270_v34 = vld [vmem:[#allocation74_spill] sm:$0xff] }
 0x360   :  { %11948 = vmatmul.mubr.msk.bf16.gmra.mrb[52].mxu1 %vm2471_vm2, %v17179_v40  ;;  %v17226_v40 = vld [vmem:[#allocation41_spill] sm:$0xff] }
 0x361   :  { %11951 = vmatprep.mubr.msk.bf16.mxu1 %vm2471_vm2, %v17182_v46  ;;  %v17227_v45 = vpack.c.bf16 %v17225_v60, %v17226_v40  ;;  %v17229_v46 = vld [vmem:[#allocation46_spill] sm:$0xff]  ;;  %v17272_v60 = vld [vmem:[#allocation75_spill] sm:$0xff]  ;;  %v17273_v40 = vld [vmem:[#allocation73_spill] sm:$0xff] }
 0x362   :  { %v17230_v52 = vpack.c.bf16 %v17228_v4, %v17229_v46  ;;  %v17275_v4 = vld [vmem:[#allocation79_spill] sm:$0xff]  ;;  %v17276_v46 = vld [vmem:[#allocation77_spill] sm:$0xff] }
 0x368   :  { %11952 = vmatmul.mubr.msk.bf16.gmra.mrb[56].mxu1 %vm2471_vm2, %v17185_v38  ;;  %v17232_v38 = vld [vmem:[#allocation45_spill] sm:$0xff] }
 0x369   :  { %11955 = vmatprep.mubr.msk.bf16.mxu1 %vm2471_vm2, %v17188_v53  ;;  %v17233_v39 = vpack.c.bf16 %v17231_v59, %v17232_v38  ;;  %v17235_v53 = vld [vmem:[#allocation50_spill] sm:$0xff]  ;;  %v17279_v38 = vld [vmem:[#allocation76_spill] sm:$0xff] }
 0x36a   :  { %v17236_v20 = vpack.c.bf16 %v17234_v42, %v17235_v53  ;;  %v17278_v59 = vld [vmem:[#allocation78_spill] sm:$0xff]  ;;  %v17281_v42 = vld [vmem:[#allocation83_spill] sm:$0xff]  ;;  %v17282_v53 = vld [vmem:[#allocation81_spill] sm:$0xff] }
 0x370   :  { %11956 = vmatmul.mubr.msk.bf16.gmra.mrb[60].mxu1 %vm2471_vm2, %v17191_v61  ;;  %v17238_v61 = vld [vmem:[#allocation49_spill] sm:$0xff] }
 0x371   :  { %11961 = vmatprep.mubr.msk.bf16.mxu1 %vm2471_vm2, %v17194_v63  ;;  %v17239_v47 = vpack.c.bf16 %v17237_v22, %v17238_v61  ;;  %v17241_v63 = vld [vmem:[#allocation54_spill] sm:$0xff]  ;;  %v17285_v22 = vld [vmem:[#allocation80_spill] sm:$0xff] }
 0x372   :  { %v17242_v8 = vpack.c.bf16 %v17240_v56, %v17241_v63  ;;  %v15283_v56 = vpop.permute.xlu1 %4298  ;;  %v15285_v63 = vpop.permute.xlu0 %4303 }
 0x378   :  { %11962 = vmatmul.mubr.msk.bf16.vlgmr.msra.gmra.mrb[0].mxu1 %vm2471_vm2, %v17197_v30  ;;  %v17244_v30 = vld [vmem:[#allocation53_spill] sm:$0xff] }
 0x379   :  { %11965 = vmatprep.mubr.msk.bf16.mxu1 %vm2471_vm2, %v17200_v5  ;;  %v17245_v55 = vpack.c.bf16 %v17243_v13, %v17244_v30  ;;  %v17247_v5 = vld [vmem:[#allocation58_spill] sm:$0xff]  ;;  %v15289_v13 = vpop.permute.xlu0 %4313 }
 0x37a   :  { %v17248_v10 = vpack.c.bf16 %v17246_v58, %v17247_v5 }
 0x380   :  { %11966 = vmatmul.mubr.msk.bf16.gmra.mrb[4].mxu1 %vm2471_vm2, %v17203_v2  ;;  %v17250_v2 = vld [vmem:[#allocation57_spill] sm:$0xff] }
 0x381   :  { %11969 = vmatprep.mubr.msk.bf16.mxu1 %vm2471_vm2, %v17206_v12  ;;  %v17251_v11 = vpack.c.bf16 %v17249_v21, %v17250_v2  ;;  %v17253_v12 = vld [vmem:[#allocation62_spill] sm:$0xff] }
 0x382   :  { %v17254_v15 = vpack.c.bf16 %v17252_v35, %v17253_v12 }
 0x388   :  { %11970 = vmatmul.mubr.msk.bf16.gmra.mrb[8].mxu1 %vm2471_vm2, %v17209_v24  ;;  %v17256_v24 = vld [vmem:[#allocation61_spill] sm:$0xff] }
 0x389   :  { %11973 = vmatprep.mubr.msk.bf16.mxu1 %vm2471_vm2, %v17212_v41  ;;  %v17257_v33 = vpack.c.bf16 %v17255_v18, %v17256_v24  ;;  %v17259_v41 = vld [vmem:[#allocation66_spill] sm:$0xff] }
 0x38a   :  { %v17260_v6 = vpack.c.bf16 %v17258_v17, %v17259_v41 }
 0x390   :  { %11974 = vmatmul.mubr.msk.bf16.gmra.mrb[12].mxu1 %vm2471_vm2, %v17215_v23  ;;  %v17262_v23 = vld [vmem:[#allocation65_spill] sm:$0xff] }
 0x391   :  { %11977 = vmatprep.mubr.msk.bf16.mxu1 %vm2471_vm2, %v17218_v19  ;;  %v17263_v1 = vpack.c.bf16 %v17261_v14, %v17262_v23  ;;  %v17265_v19 = vld [vmem:[#allocation70_spill] sm:$0xff] }
 0x392   :  { %v17266_v37 = vpack.c.bf16 %v17264_v27, %v17265_v19 }
 0x398   :  { %11978 = vmatmul.mubr.msk.bf16.gmra.mrb[16].mxu1 %vm2471_vm2, %v17221_v36  ;;  %v17268_v36 = vld [vmem:[#allocation69_spill] sm:$0xff] }
 0x399   :  { %11981 = vmatprep.mubr.msk.bf16.mxu1 %vm2471_vm2, %v17224_v54  ;;  %v17269_v31 = vpack.c.bf16 %v17267_v51, %v17268_v36  ;;  %v17271_v54 = vpack.c.bf16 %v14580_v49, %v17270_v34  ;;  %v17283_v49 = vpack.c.bf16 %v17281_v42, %v17282_v53 }
 0x3a0   :  { %11982 = vmatmul.mubr.msk.bf16.gmra.mrb[20].mxu1 %vm2471_vm2, %v17227_v45  ;;  %v17274_v45 = vpack.c.bf16 %v17272_v60, %v17273_v40 }
 0x3a1   :  { %11985 = vmatprep.mubr.msk.bf16.mxu1 %vm2471_vm2, %v17230_v52  ;;  %v17277_v52 = vpack.c.bf16 %v17275_v4, %v17276_v46 }
 0x3a8   :  { %11986 = vmatmul.mubr.msk.bf16.gmra.mrb[24].mxu1 %vm2471_vm2, %v17233_v39  ;;  %v17280_v39 = vpack.c.bf16 %v17278_v59, %v17279_v38 }
 0x3a9   :  { %11989 = vmatprep.mubr.msk.bf16.mxu1 %vm2471_vm2, %v17236_v20  ;;  %v17284_v20 = vld [vmem:[#allocation82_spill] sm:$0xff] }
 0x3aa   :  { %v17286_v61 = vpack.c.bf16 %v17284_v20, %v17285_v22 }
 0x3b0   :  { %11990 = vmatmul.mubr.msk.bf16.gmra.mrb[28].mxu1 %vm2471_vm2, %v17239_v47  ;;  %v13017_v47 = vld [vmem:[%s16964_s4 + $0x2a4] ss:$16 sps:$4 sm:$0xff]  }
 0x3b1   :  { %11993 = vmatprep.mubr.msk.bf16.mxu1 %vm2471_vm2, %v17242_v8  ;;  %v15287_v8 = vpop.permute.xlu1 %4308 }
 0x3b5   :  { %v15291_v30 = vpop.permute.xlu1 %4318 }
 0x3b8   :  { %11994 = vmatmul.mubr.msk.bf16.gmra.mrb[32].mxu1 %vm2471_vm2, %v17245_v55  ;;  %v15293_v55 = vpop.permute.xlu0 %4323 }
 0x3b9   :  { %11997 = vmatprep.mubr.msk.bf16.mxu1 %vm2471_vm2, %v17248_v10  ;;  %v15295_v58 = vpop.permute.xlu1 %4328 }
 0x3bc   :  { %v15297_v5 = vpop.permute.xlu0 %4333 }
 0x3c0   :  { %11998 = vmatmul.mubr.msk.bf16.gmra.mrb[36].mxu1 %vm2471_vm2, %v17251_v11  ;;  %v15300_v11 = vpop.permute.xlu1 %4338  ;;  %v15305_v41 = vpop.permute.xlu0 %4343 }
 0x3c1   :  { %12001 = vmatprep.mubr.msk.bf16.mxu1 %vm2471_vm2, %v17254_v15 }
 0x3c4   :  { %v15314_v36 = vpop.permute.xlu0 %4353 }
 0x3c8   :  { %12002 = vmatmul.mubr.msk.bf16.gmra.mrb[40].mxu1 %vm2471_vm2, %v17257_v33 }
 0x3c9   :  { %12005 = vmatprep.mubr.msk.bf16.mxu1 %vm2471_vm2, %v17260_v6 }
 0x3d0   :  { %12006 = vmatmul.mubr.msk.bf16.gmra.mrb[44].mxu1 %vm2471_vm2, %v17263_v1  ;;  %v15307_v1 = vpop.permute.xlu1 %4348 }
 0x3d1   :  { %12009 = vmatprep.mubr.msk.bf16.mxu1 %vm2471_vm2, %v17266_v37 }
 0x3d8   :  { %12010 = vmatmul.mubr.msk.bf16.gmra.mrb[48].mxu1 %vm2471_vm2, %v17269_v31 }
 0x3d9   :  { %12013 = vmatprep.mubr.msk.bf16.mxu1 %vm2471_vm2, %v17271_v54 }
 0x3e0   :  { %12014 = vmatmul.mubr.msk.bf16.gmra.mrb[52].mxu1 %vm2471_vm2, %v17274_v45 }
 0x3e1   :  { %12017 = vmatprep.mubr.msk.bf16.mxu1 %vm2471_vm2, %v17277_v52  ;;  %v15322_v52 = vpop.permute.xlu0 %4363 }
 0x3e8   :  { %12018 = vmatmul.mubr.msk.bf16.gmra.mrb[56].mxu1 %vm2471_vm2, %v17280_v39 }
 0x3e9   :  { %12021 = vmatprep.mubr.msk.bf16.mxu1 %vm2471_vm2, %v17283_v49 }
 0x3f0   :  { %12022 = vmatmul.mubr.msk.bf16.gmra.mrb[60].mxu1 %vm2471_vm2, %v17286_v61 }
 0x3f1   :  { %6437 = vmatprep.mubr.bf16.mxu1 %v13017_v47 }
 0x44b   :  { %v11963_v10 = vpop.f32.mrb[0].mxu1 }
 0x44c   :  { %v4543_v21 = vadd.f32 %v11963_v10, %v15007_v0  ;;  %v3838_v2 = vpop.f32.mrb[1].mxu1 }
 0x44d   :  { %v4541_v35 = vadd.f32 %v14977_v62, %v3838_v2  ;;  %v11964_v12 = vpop.f32.mrb[2].mxu1 }
 0x44e   :  { %v4544_v15 = vadd.f32 %v11964_v12, %v15031_v44  ;;  %v3841_v18 = vpop.f32.mrb[3].mxu1  ;;  %v4607_v33 = vmax.f32 %v4543_v21, 0.0 }
 0x44f   :  { %v4542_v24 = vadd.f32 %v14991_v48, %v3841_v18  ;;  %v4605_v6 = vmax.f32 %v4541_v35, 0.0 }
 0x450   :  { %v4608_v17 = vmax.f32 %v4544_v15, 0.0 }
 0x451   :  { %v4606_v14 = vmax.f32 %v4542_v24, 0.0 }
 0x452   :  { %v4670_v23 = vpack.c.bf16 %v4608_v17, %v4607_v33 }
 0x453   :  { %v4669_v0 = vpack.c.bf16 %v4606_v14, %v4605_v6  ;;  %v11967_v27 = vpop.f32.mrb[4].mxu1 }
 0x454   :  { %v4547_v19 = vadd.f32 %v11967_v27, %v15033_v7  ;;  %v3854_v62 = vpop.f32.mrb[5].mxu1  ;;  %v15317_v7 = vpop.permute.xlu1 %4358 }
 0x455   :  { %v4545_v37 = vadd.f32 %v15012_v50, %v3854_v62  ;;  %v11968_v44 = vpop.f32.mrb[6].mxu1  ;;  %6238 = vmatpush1.bf16.msra.mxu0 %v4669_v0  ;;  %12301 = vmatpush1.bf16.msra.mxu1 %v4669_v0 }
 0x456   :  { %v4548_v48 = vadd.f32 %v11968_v44, %v15062_v3  ;;  %v3857_v51 = vpop.f32.mrb[7].mxu1  ;;  %6239 = vmatprep.subr.bf16.mxu0 %v17149_v28  ;;  %12286 = vmatprep.subr.bf16.mxu1 %v17149_v28  ;;  %v4611_v34 = vmax.f32 %v4547_v19, 0.0 }
 0x457   :  { %v4546_v31 = vadd.f32 %v15045_v25, %v3857_v51  ;;  %v4609_v60 = vmax.f32 %v4545_v37, 0.0 }
 0x458   :  { %v4612_v54 = vmax.f32 %v4548_v48, 0.0  ;;  %v15328_v42 = vpop.permute.xlu1 %4368 }
 0x459   :  { %v4610_v50 = vmax.f32 %v4546_v31, 0.0  ;;  %6240 = vmatpush1.bf16.msra.mxu0 %v4670_v23  ;;  %12302 = vmatpush1.bf16.msra.mxu1 %v4670_v23 }
 0x45a   :  { %v4672_v40 = vpack.c.bf16 %v4612_v54, %v4611_v34  ;;  %6241 = vmatprep.subr.bf16.mxu0 %v17149_v28  ;;  %12287 = vmatprep.subr.bf16.mxu1 %v17149_v28 }
 0x45b   :  { %v4671_v3 = vpack.c.bf16 %v4610_v50, %v4609_v60  ;;  %v11971_v45 = vpop.f32.mrb[8].mxu1 }
 0x45c   :  { %v4551_v4 = vadd.f32 %v11971_v45, %v15067_v57  ;;  %v3870_v46 = vpop.f32.mrb[9].mxu1  ;;  %v15336_v2 = vpop.permute.xlu1 %4378 }
 0x45d   :  { %v4549_v25 = vadd.f32 %v15051_v16, %v3870_v46  ;;  %v11972_v59 = vpop.f32.mrb[10].mxu1  ;;  %6242 = vmatpush1.bf16.msra.mxu0 %v4671_v3  ;;  %12303 = vmatpush1.bf16.msra.mxu1 %v4671_v3 }
 0x45e   :  { %v4552_v38 = vadd.f32 %v11972_v59, %v15107_v26  ;;  %v3873_v39 = vpop.f32.mrb[11].mxu1  ;;  %6243 = vmatprep.subr.bf16.mxu0 %v17149_v28  ;;  %12288 = vmatprep.subr.bf16.mxu1 %v17149_v28  ;;  %v4615_v57 = vmax.f32 %v4551_v4, 0.0  ;;  %v15333_v26 = vpop.permute.xlu0 %4373 }
 0x45f   :  { %v4550_v53 = vadd.f32 %v15083_v29, %v3873_v39  ;;  %v4613_v20 = vmax.f32 %v4549_v25, 0.0 }
 0x460   :  { %v4616_v49 = vmax.f32 %v4552_v38, 0.0 }
 0x461   :  { %v4614_v22 = vmax.f32 %v4550_v53, 0.0  ;;  %6244 = vmatpush1.bf16.msra.mxu0 %v4672_v40  ;;  %12304 = vmatpush1.bf16.msra.mxu1 %v4672_v40 }
 0x462   :  { %v4674_v16 = vpack.c.bf16 %v4616_v49, %v4615_v57  ;;  %6245 = vmatprep.subr.bf16.mxu0 %v17149_v28  ;;  %12289 = vmatprep.subr.bf16.mxu1 %v17149_v28 }
 0x463   :  { %v4673_v61 = vpack.c.bf16 %v4614_v22, %v4613_v20  ;;  %v11975_v47 = vpop.f32.mrb[12].mxu1 }
 0x464   :  { %v4555_v10 = vadd.f32 %v11975_v47, %v15109_v32  ;;  %v3886_v21 = vpop.f32.mrb[13].mxu1  ;;  %v15343_v32 = vpop.permute.xlu0 %4383 }
 0x465   :  { %v4553_v29 = vadd.f32 %v15088_v43, %v3886_v21  ;;  %v11976_v35 = vpop.f32.mrb[14].mxu1  ;;  %6246 = vmatpush1.bf16.msra.mxu0 %v4673_v61  ;;  %12305 = vmatpush1.bf16.msra.mxu1 %v4673_v61 }
 0x466   :  { %v4556_v12 = vadd.f32 %v11976_v35, %v15283_v56  ;;  %v3889_v15 = vpop.f32.mrb[15].mxu1  ;;  %6247 = vmatprep.subr.bf16.mxu0 %v17149_v28  ;;  %12290 = vmatprep.subr.bf16.mxu1 %v17149_v28  ;;  %v4619_v24 = vmax.f32 %v4555_v10, 0.0  ;;  %v15347_v56 = vpop.permute.xlu1 %4388 }
 0x467   :  { %v4554_v18 = vadd.f32 %v15118_v9, %v3889_v15  ;;  %v4617_v17 = vmax.f32 %v4553_v29, 0.0 }
 0x468   :  { %v4620_v33 = vmax.f32 %v4556_v12, 0.0  ;;  %v15354_v44 = vpop.permute.xlu0 %4393 }
 0x469   :  { %v4618_v6 = vmax.f32 %v4554_v18, 0.0  ;;  %6248 = vmatpush1.bf16.msra.mxu0 %v4674_v16  ;;  %12306 = vmatpush1.bf16.msra.mxu1 %v4674_v16 }
 0x46a   :  { %v4676_v43 = vpack.c.bf16 %v4620_v33, %v4619_v24  ;;  %6249 = vmatprep.subr.bf16.mxu0 %v17149_v28  ;;  %12291 = vmatprep.subr.bf16.mxu1 %v17149_v28 }
 0x46b   :  { %v4675_v14 = vpack.c.bf16 %v4618_v6, %v4617_v17  ;;  %v11979_v23 = vpop.f32.mrb[16].mxu1 }
 0x46c   :  { %v4559_v0 = vadd.f32 %v11979_v23, %v15289_v13  ;;  %v3902_v9 = vpop.f32.mrb[17].mxu1  ;;  %v15357_v13 = vpop.permute.xlu1 %4398 }
 0x46d   :  { %v4557_v27 = vadd.f32 %v15285_v63, %v3902_v9  ;;  %v11980_v19 = vpop.f32.mrb[18].mxu1  ;;  %6250 = vmatpush1.bf16.msra.mxu0 %v4675_v14  ;;  %12307 = vmatpush1.bf16.msra.mxu1 %v4675_v14  ;;  %v15362_v3 = vpop.permute.xlu0 %4403 }
 0x46e   :  { %v4560_v62 = vadd.f32 %v11980_v19, %v15291_v30  ;;  %v3905_v37 = vpop.f32.mrb[19].mxu1  ;;  %6251 = vmatprep.subr.bf16.mxu0 %v17149_v28  ;;  %12292 = vmatprep.subr.bf16.mxu1 %v17149_v28  ;;  %v4623_v51 = vmax.f32 %v4559_v0, 0.0 }
 0x46f   :  { %v4558_v48 = vadd.f32 %v15287_v8, %v3905_v37  ;;  %v4621_v34 = vmax.f32 %v4557_v27, 0.0 }
 0x470   :  { %v4624_v31 = vmax.f32 %v4560_v62, 0.0  ;;  %v15368_v25 = vpop.permute.xlu1 %4408 }
 0x471   :  { %v4622_v63 = vmax.f32 %v4558_v48, 0.0  ;;  %6252 = vmatpush1.bf16.msra.mxu0 %v4676_v43  ;;  %12308 = vmatpush1.bf16.msra.mxu1 %v4676_v43 }
 0x472   :  { %v4678_v54 = vpack.c.bf16 %v4624_v31, %v4623_v51  ;;  %6253 = vmatprep.subr.bf16.mxu0 %v17149_v28  ;;  %12293 = vmatprep.subr.bf16.mxu1 %v17149_v28 }
 0x473   :  { %v4677_v30 = vpack.c.bf16 %v4622_v63, %v4621_v34  ;;  %v11983_v60 = vpop.f32.mrb[20].mxu1 }
 0x474   :  { %v4563_v50 = vadd.f32 %v11983_v60, %v15297_v5  ;;  %v3918_v40 = vpop.f32.mrb[21].mxu1  ;;  %v15376_v16 = vpop.permute.xlu1 %4418 }
 0x475   :  { %v4561_v8 = vadd.f32 %v15293_v55, %v3918_v40  ;;  %v11984_v45 = vpop.f32.mrb[22].mxu1  ;;  %6254 = vmatpush1.bf16.msra.mxu0 %v4677_v30  ;;  %12309 = vmatpush1.bf16.msra.mxu1 %v4677_v30 }
 0x476   :  { %v4564_v4 = vadd.f32 %v11984_v45, %v15300_v11  ;;  %v3921_v46 = vpop.f32.mrb[23].mxu1  ;;  %6255 = vmatprep.subr.bf16.mxu0 %v17149_v28  ;;  %12294 = vmatprep.subr.bf16.mxu1 %v17149_v28  ;;  %v4627_v5 = vmax.f32 %v4563_v50, 0.0  ;;  %v15373_v11 = vpop.permute.xlu0 %4413 }
 0x477   :  { %v4562_v59 = vadd.f32 %v15295_v58, %v3921_v46  ;;  %v4625_v39 = vmax.f32 %v4561_v8, 0.0 }
 0x478   :  { %v4628_v38 = vmax.f32 %v4564_v4, 0.0 }
 0x479   :  { %v4626_v53 = vmax.f32 %v4562_v59, 0.0  ;;  %6256 = vmatpush1.bf16.msra.mxu0 %v4678_v54  ;;  %12310 = vmatpush1.bf16.msra.mxu1 %v4678_v54 }
 0x47a   :  { %v4680_v55 = vpack.c.bf16 %v4628_v38, %v4627_v5  ;;  %6257 = vmatprep.subr.bf16.mxu0 %v17149_v28  ;;  %12295 = vmatprep.subr.bf16.mxu1 %v17149_v28 }
 0x47b   :  { %v4679_v57 = vpack.c.bf16 %v4626_v53, %v4625_v39  ;;  %v11987_v49 = vpop.f32.mrb[24].mxu1 }
 0x47c   :  { %v4567_v20 = vadd.f32 %v11987_v49, %v15314_v36  ;;  %v3934_v22 = vpop.f32.mrb[25].mxu1  ;;  %v15383_v36 = vpop.permute.xlu0 %4423 }
 0x47d   :  { %v4565_v58 = vadd.f32 %v15305_v41, %v3934_v22  ;;  %v11988_v61 = vpop.f32.mrb[26].mxu1  ;;  %6258 = vmatpush1.bf16.msra.mxu0 %v4679_v57  ;;  %12311 = vmatpush1.bf16.msra.mxu1 %v4679_v57 }
 0x47e   :  { %v4568_v47 = vadd.f32 %v11988_v61, %v15317_v7  ;;  %v3937_v10 = vpop.f32.mrb[27].mxu1  ;;  %6259 = vmatprep.subr.bf16.mxu0 %v17149_v28  ;;  %12296 = vmatprep.subr.bf16.mxu1 %v17149_v28  ;;  %v4631_v29 = vmax.f32 %v4567_v20, 0.0  ;;  %v15387_v7 = vpop.permute.xlu1 %4428 }
 0x47f   :  { %v4566_v21 = vadd.f32 %v15307_v1, %v3937_v10  ;;  %v4629_v12 = vmax.f32 %v4565_v58, 0.0 }
 0x480   :  { %v4632_v35 = vmax.f32 %v4568_v47, 0.0  ;;  %v15394_v23 = vpop.permute.xlu0 %4433 }
 0x481   :  { %v4630_v15 = vmax.f32 %v4566_v21, 0.0  ;;  %6260 = vmatpush1.bf16.msra.mxu0 %v4680_v55  ;;  %12312 = vmatpush1.bf16.msra.mxu1 %v4680_v55 }
 0x482   :  { %v4682_v41 = vpack.c.bf16 %v4632_v35, %v4631_v29  ;;  %6261 = vmatprep.subr.bf16.mxu0 %v17149_v28  ;;  %12297 = vmatprep.subr.bf16.mxu1 %v17149_v28 }
 0x483   :  { %v4681_v18 = vpack.c.bf16 %v4630_v15, %v4629_v12  ;;  %v11991_v24 = vpop.f32.mrb[28].mxu1 }
 0x484   :  { %v4571_v33 = vadd.f32 %v11991_v24, %v15333_v26  ;;  %v3950_v1 = vpop.f32.mrb[29].mxu1  ;;  %v15397_v26 = vpop.permute.xlu1 %4438 }
 0x485   :  { %v4569_v17 = vadd.f32 %v15322_v52, %v3950_v1  ;;  %v11992_v6 = vpop.f32.mrb[30].mxu1  ;;  %6262 = vmatpush1.bf16.msra.mxu0 %v4681_v18  ;;  %12313 = vmatpush1.bf16.msra.mxu1 %v4681_v18  ;;  %v15402_v31 = vpop.permute.xlu0 %4443 }
 0x486   :  { %v4572_v43 = vadd.f32 %v11992_v6, %v15336_v2  ;;  %v3953_v14 = vpop.f32.mrb[31].mxu1  ;;  %6263 = vmatprep.subr.bf16.mxu0 %v17149_v28  ;;  %12298 = vmatprep.subr.bf16.mxu1 %v17149_v28  ;;  %v4635_v9 = vmax.f32 %v4571_v33, 0.0  ;;  %v13023_v6 = vld [vmem:[%s16964_s4 + $0x2e0] ss:$16 sps:$4 sm:$0xff]  }
 0x487   :  { %v4570_v0 = vadd.f32 %v15328_v42, %v3953_v14  ;;  %v4633_v19 = vmax.f32 %v4569_v17, 0.0 }
 0x488   :  { %v4636_v27 = vmax.f32 %v4572_v43, 0.0  ;;  %v15408_v30 = vpop.permute.xlu1 %4448 }
 0x489   :  { %v4634_v52 = vmax.f32 %v4570_v0, 0.0  ;;  %6264 = vmatpush1.bf16.msra.mxu0 %v4682_v41  ;;  %12314 = vmatpush1.bf16.msra.mxu1 %v4682_v41  ;;  %v4454_v4 = vpop.permute.xlu0 %4453 }
 0x48a   :  { %v4684_v62 = vpack.c.bf16 %v4636_v27, %v4635_v9  ;;  %6265 = vmatprep.subr.bf16.mxu0 %v17149_v28  ;;  %12299 = vmatprep.subr.bf16.mxu1 %v17149_v28 }
 0x48b   :  { %v4683_v2 = vpack.c.bf16 %v4634_v52, %v4633_v19  ;;  %v11995_v37 = vpop.f32.mrb[32].mxu1 }
 0x48c   :  { %v4575_v48 = vadd.f32 %v11995_v37, %v15354_v44  ;;  %v3966_v51 = vpop.f32.mrb[33].mxu1  ;;  %v4459_v38 = vpop.permute.xlu1 %4458 }
 0x48d   :  { %v4573_v42 = vadd.f32 %v15343_v32, %v3966_v51  ;;  %v11996_v34 = vpop.f32.mrb[34].mxu1  ;;  %6266 = vmatpush1.bf16.msra.mxu0 %v4683_v2  ;;  %12315 = vmatpush1.bf16.msra.mxu1 %v4683_v2  ;;  %v13015_v32 = vld [vmem:[%s16964_s4 + $0x2a0] ss:$16 sps:$4 sm:$0xff]   ;;  %v15426_v58 = vpop.permute.xlu0 %4463 }
 0x48e   :  { %v4576_v63 = vadd.f32 %v11996_v34, %v15357_v13  ;;  %v3969_v54 = vpop.f32.mrb[35].mxu1  ;;  %6267 = vmatprep.subr.bf16.mxu0 %v17149_v28  ;;  %12300 = vmatprep.subr.bf16.mxu1 %v17149_v28  ;;  %v4639_v44 = vmax.f32 %v4575_v48, 0.0  ;;  %v13018_v13 = vld [vmem:[%s16964_s4 + $0x2c4] ss:$16 sps:$4 sm:$0xff]  }
 0x48f   :  { %v4574_v60 = vadd.f32 %v15347_v56, %v3969_v54  ;;  %v4637_v40 = vmax.f32 %v4573_v42, 0.0 }
 0x490   :  { %v4640_v50 = vmax.f32 %v4576_v63, 0.0  ;;  %v15432_v10 = vpop.permute.xlu1 %4468  ;;  %v13026_v63 = vld [vmem:[%s16964_s4 + $0x300] ss:$16 sps:$4 sm:$0xff]  }
 0x491   :  { %v4638_v8 = vmax.f32 %v4574_v60, 0.0  ;;  %6268 = vmatpush1.bf16.msra.mxu0 %v4684_v62  ;;  %12316 = vmatpush1.bf16.msra.mxu1 %v4684_v62  ;;  %v4474_v24 = vpop.permute.xlu0 %4473 }
 0x492   :  { %v4686_v45 = vpack.c.bf16 %v4640_v50, %v4639_v44  ;;  %6782 = vmatprep.subr.bf16.mxu1 %v17149_v28 }
 0x493   :  { %v4685_v46 = vpack.c.bf16 %v4638_v8, %v4637_v40  ;;  %v11999_v56 = vpop.f32.mrb[36].mxu1 }
 0x494   :  { %v4579_v59 = vadd.f32 %v11999_v56, %v15373_v11  ;;  %v3982_v5 = vpop.f32.mrb[37].mxu1  ;;  %6438 = vmatmul.mubr.bf16.vlgmr.msra.gmra.mrb[64].mxu1 %v13015_v32  ;;  %v13020_v11 = vld [vmem:[%s16964_s4 + $0x2c0] ss:$16 sps:$4 sm:$0xff]   ;;  %v4479_v43 = vpop.permute.xlu1 %4478 }
 0x495   :  { %v4577_v39 = vadd.f32 %v15362_v3, %v3982_v5  ;;  %v12000_v53 = vpop.f32.mrb[38].mxu1  ;;  %6783 = vmatpush1.bf16.msra.mxu1 %v4685_v46  ;;  %6445 = vmatprep.mubr.bf16.mxu1 %v13018_v13  ;;  %v4484_v19 = vpop.permute.xlu0 %4483 }
 0x496   :  { %v4580_v55 = vadd.f32 %v12000_v53, %v15376_v16  ;;  %v3985_v57 = vpop.f32.mrb[39].mxu1  ;;  %6784 = vmatprep.subr.bf16.mxu1 %v17149_v28  ;;  %v4643_v20 = vmax.f32 %v4579_v59, 0.0  ;;  %v13021_v16 = vld [vmem:[%s16964_s4 + $0x2e4] ss:$16 sps:$4 sm:$0xff]  }
 0x497   :  { %v4578_v49 = vadd.f32 %v15368_v25, %v3985_v57  ;;  %v4641_v61 = vmax.f32 %v4577_v39, 0.0  ;;  %v13029_v39 = vld [vmem:[%s16964_s4 + $0x320] ss:$16 sps:$4 sm:$0xff]  }
 0x498   :  { %v4644_v22 = vmax.f32 %v4580_v55, 0.0  ;;  %v4489_v48 = vpop.permute.xlu1 %4488 }
 0x499   :  { %v4642_v3 = vmax.f32 %v4578_v49, 0.0  ;;  %6785 = vmatpush1.bf16.msra.mxu1 %v4686_v45  ;;  %v4494_v50 = vpop.permute.xlu0 %4493  ;;  %v13030_v49 = vld [vmem:[%s16964_s4 + $0x344] ss:$16 sps:$4 sm:$0xff]  }
 0x49a   :  { %v4688_v47 = vpack.c.bf16 %v4644_v22, %v4643_v20  ;;  %6786 = vmatprep.subr.bf16.mxu1 %v17149_v28 }
 0x49b   :  { %v4687_v25 = vpack.c.bf16 %v4642_v3, %v4641_v61  ;;  %v12003_v21 = vpop.f32.mrb[40].mxu1 }
 0x49c   :  { %v4583_v29 = vadd.f32 %v12003_v21, %v15394_v23  ;;  %v3998_v35 = vpop.f32.mrb[41].mxu1  ;;  %6446 = vmatmul.mubr.bf16.gmra.mrb[68].mxu1 %v13020_v11  ;;  %v13024_v23 = vld [vmem:[%s16964_s4 + $0x304] ss:$16 sps:$4 sm:$0xff]   ;;  %v4499_v13 = vpop.permute.xlu1 %4498 }
 0x49d   :  { %v4581_v12 = vadd.f32 %v15383_v36, %v3998_v35  ;;  %v12004_v15 = vpop.f32.mrb[42].mxu1  ;;  %6787 = vmatpush1.bf16.msra.mxu1 %v4687_v25  ;;  %6453 = vmatprep.mubr.bf16.mxu1 %v13021_v16  ;;  %v4504_v53 = vpop.permute.xlu0 %4503 }
 0x49e   :  { %v4584_v41 = vadd.f32 %v12004_v15, %v15397_v26  ;;  %v4001_v18 = vpop.f32.mrb[43].mxu1  ;;  %6788 = vmatprep.subr.bf16.mxu1 %v17149_v28  ;;  %v4647_v1 = vmax.f32 %v4583_v29, 0.0  ;;  %v13032_v15 = vld [vmem:[%s16964_s4 + $0x340] ss:$16 sps:$4 sm:$0xff]  }
 0x49f   :  { %v4582_v33 = vadd.f32 %v15387_v7, %v4001_v18  ;;  %v4645_v14 = vmax.f32 %v4581_v12, 0.0 }
 0x4a0   :  { %v4648_v17 = vmax.f32 %v4584_v41, 0.0  ;;  %v4509_v22 = vpop.permute.xlu1 %4508 }
 0x4a1   :  { %v4646_v36 = vmax.f32 %v4582_v33, 0.0  ;;  %6789 = vmatpush1.bf16.msra.mxu1 %v4688_v47  ;;  %v4514_v21 = vpop.permute.xlu0 %4513  ;;  %v13033_v33 = vld [vmem:[%s16964_s4 + $0x364] ss:$16 sps:$4 sm:$0xff]  }
 0x4a2   :  { %v4690_v0 = vpack.c.bf16 %v4648_v17, %v4647_v1  ;;  %6790 = vmatprep.subr.bf16.mxu1 %v17149_v28 }
 0x4a3   :  { %v4689_v9 = vpack.c.bf16 %v4646_v36, %v4645_v14  ;;  %v12007_v27 = vpop.f32.mrb[44].mxu1 }
 0x4a4   :  { %v4587_v7 = vadd.f32 %v12007_v27, %v4454_v4  ;;  %v4014_v26 = vpop.f32.mrb[45].mxu1  ;;  %6454 = vmatmul.mubr.bf16.gmra.mrb[72].mxu1 %v13023_v6  ;;  %v4519_v41 = vpop.permute.xlu1 %4518 }
 0x4a5   :  { %v4585_v52 = vadd.f32 %v15402_v31, %v4014_v26  ;;  %v12008_v62 = vpop.f32.mrb[46].mxu1  ;;  %6791 = vmatpush1.bf16.msra.mxu1 %v4689_v9  ;;  %6461 = vmatprep.mubr.bf16.mxu1 %v13024_v23  ;;  %v13027_v31 = vld [vmem:[%s16964_s4 + $0x324] ss:$16 sps:$4 sm:$0xff]   ;;  %v4524_v36 = vpop.permute.xlu0 %4523 }
 0x4a6   :  { %v4588_v2 = vadd.f32 %v12008_v62, %v4459_v38  ;;  %v4017_v37 = vpop.f32.mrb[47].mxu1  ;;  %6792 = vmatprep.subr.bf16.mxu1 %v17149_v28  ;;  %v4651_v42 = vmax.f32 %v4587_v7, 0.0  ;;  %v13035_v62 = vld [vmem:[%s16964_s4 + $0x360] ss:$16 sps:$4 sm:$0xff]  }
 0x4a7   :  { %v4586_v51 = vadd.f32 %v15408_v30, %v4017_v37  ;;  %v4649_v54 = vmax.f32 %v4585_v52, 0.0 }
 0x4a8   :  { %v4652_v34 = vmax.f32 %v4588_v2, 0.0  ;;  %v4529_v7 = vpop.permute.xlu1 %4528 }
 0x4a9   :  { %v4650_v60 = vmax.f32 %v4586_v51, 0.0  ;;  %6793 = vmatpush1.bf16.msra.mxu1 %v4690_v0 }
 0x4aa   :  { %v4692_v44 = vpack.c.bf16 %v4652_v34, %v4651_v42  ;;  %6794 = vmatprep.subr.bf16.mxu1 %v17149_v28  ;;  %v4534_v42 = vpop.permute.xlu0 %4533 }
 0x4ab   :  { %v4691_v32 = vpack.c.bf16 %v4650_v60, %v4649_v54  ;;  %v12011_v40 = vpop.f32.mrb[48].mxu1 }
 0x4ac   :  { %v4591_v30 = vadd.f32 %v12011_v40, %v4474_v24  ;;  %v4030_v8 = vpop.f32.mrb[49].mxu1  ;;  %6462 = vmatmul.mubr.bf16.gmra.mrb[76].mxu1 %v13026_v63 }
 0x4ad   :  { %v4589_v45 = vadd.f32 %v15426_v58, %v4030_v8  ;;  %v12012_v4 = vpop.f32.mrb[50].mxu1  ;;  %6795 = vmatpush1.bf16.msra.mxu1 %v4691_v32  ;;  %6469 = vmatprep.mubr.bf16.mxu1 %v13027_v31  ;;  %v4539_v31 = vpop.permute.xlu1 %4538 }
 0x4ae   :  { %v4592_v46 = vadd.f32 %v12012_v4, %v4479_v43  ;;  %v4033_v56 = vpop.f32.mrb[51].mxu1  ;;  %6796 = vmatprep.subr.bf16.mxu1 %v17149_v28  ;;  %v4655_v5 = vmax.f32 %v4591_v30, 0.0 }
 0x4af   :  { %v4590_v59 = vadd.f32 %v15432_v10, %v4033_v56  ;;  %v4653_v55 = vmax.f32 %v4589_v45, 0.0  ;;  %v13038_v45 = vld [vmem:[%s16964_s4 + $0x380] ss:$16 sps:$4 sm:$0xff]   ;;  %v13039_v56 = vld [vmem:[%s16964_s4 + $0x3a4] ss:$16 sps:$4 sm:$0xff]  }
 0x4b0   :  { %v4656_v38 = vmax.f32 %v4592_v46, 0.0 }
 0x4b1   :  { %v4654_v57 = vmax.f32 %v4590_v59, 0.0  ;;  %6797 = vmatpush1.bf16.msra.mxu1 %v4692_v44 }
 0x4b2   :  { %v4694_v20 = vpack.c.bf16 %v4656_v38, %v4655_v5  ;;  %6798 = vmatprep.subr.bf16.mxu1 %v17149_v28  ;;  %v13041_v38 = vld [vmem:[%s16964_s4 + $0x3a0] ss:$16 sps:$4 sm:$0xff]  }
 0x4b3   :  { %v4693_v11 = vpack.c.bf16 %v4654_v57, %v4653_v55  ;;  %v12015_v58 = vpop.f32.mrb[52].mxu1  ;;  %v13045_v55 = vld [vmem:[%s16964_s4 + $0x3e4] ss:$16 sps:$4 sm:$0xff]   ;;  %v13047_v57 = vld [vmem:[%s16964_s4 + $0x3e0] ss:$16 sps:$4 sm:$0xff]  }
 0x4b4   :  { %v4595_v61 = vadd.f32 %v12015_v58, %v4494_v50  ;;  %v4046_v3 = vpop.f32.mrb[53].mxu1  ;;  %6470 = vmatmul.mubr.bf16.gmra.mrb[80].mxu1 %v13029_v39  ;;  %v13042_v39 = vld [vmem:[%s16964_s4 + $0x3c4] ss:$16 sps:$4 sm:$0xff]  }
 0x4b5   :  { %v4593_v16 = vadd.f32 %v4484_v19, %v4046_v3  ;;  %v12016_v47 = vpop.f32.mrb[54].mxu1  ;;  %6799 = vmatpush1.bf16.msra.mxu1 %v4693_v11  ;;  %6477 = vmatprep.mubr.bf16.mxu1 %v13030_v49  ;;  %v13048_v49 = vld [vmem:[%s16964_s4 + $0x404] ss:$16 sps:$4 sm:$0xff]   ;;  %v13053_v11 = vld [vmem:[%s16964_s4 + $0x420] ss:$16 sps:$4 sm:$0xff]  }
 0x4b6   :  { %v4596_v10 = vadd.f32 %v12016_v47, %v4499_v13  ;;  %v4049_v25 = vpop.f32.mrb[55].mxu1  ;;  %6800 = vmatprep.subr.bf16.mxu1 %v17149_v28  ;;  %v4659_v35 = vmax.f32 %v4595_v61, 0.0  ;;  %v13054_v58 = vld [vmem:[%s16964_s4 + $0x444] ss:$16 sps:$4 sm:$0xff]   ;;  %v13056_v61 = vld [vmem:[%s16964_s4 + $0x440] ss:$16 sps:$4 sm:$0xff]  }
 0x4b7   :  { %v4594_v29 = vadd.f32 %v4489_v48, %v4049_v25  ;;  %v4657_v18 = vmax.f32 %v4593_v16, 0.0  ;;  %v13036_v48 = vld [vmem:[%s16964_s4 + $0x384] ss:$16 sps:$4 sm:$0xff]   ;;  %v13059_v16 = vld [vmem:[%s16964_s4 + $0x460] ss:$16 sps:$4 sm:$0xff]  }
 0x4b8   :  { %v4660_v12 = vmax.f32 %v4596_v10, 0.0  ;;  %v13057_v3 = vld [vmem:[%s16964_s4 + $0x464] ss:$16 sps:$4 sm:$0xff]   ;;  %v13062_v10 = vld [vmem:[%s16964_s4 + $0x480] ss:$16 sps:$4 sm:$0xff]  }
 0x4b9   :  { %v4658_v24 = vmax.f32 %v4594_v29, 0.0  ;;  %6801 = vmatpush1.bf16.msra.mxu1 %v4694_v20  ;;  %v13050_v20 = vld [vmem:[%s16964_s4 + $0x400] ss:$16 sps:$4 sm:$0xff]   ;;  %v13060_v47 = vld [vmem:[%s16964_s4 + $0x484] ss:$16 sps:$4 sm:$0xff]  }
 0x4ba   :  { %v4696_v1 = vpack.c.bf16 %v4660_v12, %v4659_v35  ;;  %6802 = vmatprep.subr.bf16.mxu1 %v17149_v28  ;;  %v13063_v25 = vld [vmem:[%s16964_s4 + $0x4a4] ss:$16 sps:$4 sm:$0xff]   ;;  %v13068_v35 = vld [vmem:[%s16964_s4 + $0x4c0] ss:$16 sps:$4 sm:$0xff]  }
 0x4bb   :  { %v4695_v17 = vpack.c.bf16 %v4658_v24, %v4657_v18  ;;  %v12019_v6 = vpop.f32.mrb[56].mxu1  ;;  %v13066_v29 = vld [vmem:[%s16964_s4 + $0x4c4] ss:$16 sps:$4 sm:$0xff]   ;;  %v13074_v18 = vld [vmem:[%s16964_s4 + $0x500] ss:$16 sps:$4 sm:$0xff]  }
 0x4bc   :  { %v4599_v43 = vadd.f32 %v12019_v6, %v4514_v21  ;;  %v4062_v14 = vpop.f32.mrb[57].mxu1  ;;  %6478 = vmatmul.mubr.bf16.gmra.mrb[84].mxu1 %v13032_v15  ;;  %v13065_v21 = vld [vmem:[%s16964_s4 + $0x4a0] ss:$16 sps:$4 sm:$0xff]   ;;  %v13069_v12 = vld [vmem:[%s16964_s4 + $0x4e4] ss:$16 sps:$4 sm:$0xff]  }
 0x4bd   :  { %v4597_v23 = vadd.f32 %v4504_v53, %v4062_v14  ;;  %v12020_v0 = vpop.f32.mrb[58].mxu1  ;;  %6803 = vmatpush1.bf16.msra.mxu1 %v4695_v17  ;;  %6485 = vmatprep.mubr.bf16.mxu1 %v13033_v33  ;;  %v13044_v53 = vld [vmem:[%s16964_s4 + $0x3c0] ss:$16 sps:$4 sm:$0xff]   ;;  %v13075_v24 = vld [vmem:[%s16964_s4 + $0x524] ss:$16 sps:$4 sm:$0xff]  }
 0x4be   :  { %v4600_v9 = vadd.f32 %v12020_v0, %v4519_v41  ;;  %v4065_v27 = vpop.f32.mrb[59].mxu1  ;;  %6804 = vmatprep.subr.bf16.mxu1 %v17149_v28  ;;  %v4663_v19 = vmax.f32 %v4599_v43, 0.0  ;;  %v13071_v15 = vld [vmem:[%s16964_s4 + $0x4e0] ss:$16 sps:$4 sm:$0xff]   ;;  %v13072_v41 = vld [vmem:[%s16964_s4 + $0x504] ss:$16 sps:$4 sm:$0xff]  }
 0x4bf   :  { %v4598_v26 = vadd.f32 %v4509_v22, %v4065_v27  ;;  %v4661_v2 = vmax.f32 %v4597_v23, 0.0  ;;  %v13051_v22 = vld [vmem:[%s16964_s4 + $0x424] ss:$16 sps:$4 sm:$0xff]   ;;  %v13077_v33 = vld [vmem:[%s16964_s4 + $0x520] ss:$16 sps:$4 sm:$0xff]  }
 0x4c0   :  { %v4664_v52 = vmax.f32 %v4600_v9, 0.0  ;;  %v13080_v17 = vld [vmem:[%s16964_s4 + $0x540] ss:$16 sps:$4 sm:$0xff]   ;;  %v13081_v6 = vld [vmem:[%s16964_s4 + $0x564] ss:$16 sps:$4 sm:$0xff]  }
 0x4c1   :  { %v4662_v37 = vmax.f32 %v4598_v26, 0.0  ;;  %6805 = vmatpush1.bf16.msra.mxu1 %v4696_v1  ;;  %v13078_v1 = vld [vmem:[%s16964_s4 + $0x544] ss:$16 sps:$4 sm:$0xff]   ;;  %v13083_v43 = vld [vmem:[%s16964_s4 + $0x560] ss:$16 sps:$4 sm:$0xff]  }
 0x4c2   :  { %v4698_v51 = vpack.c.bf16 %v4664_v52, %v4663_v19  ;;  %6806 = vmatprep.subr.bf16.mxu1 %v17149_v28  ;;  %v13084_v14 = vld [vmem:[%s16964_s4 + $0x584] ss:$16 sps:$4 sm:$0xff]   ;;  %v13089_v0 = vld [vmem:[%s16964_s4 + $0x5a0] ss:$16 sps:$4 sm:$0xff]  }
 0x4c3   :  { %v4697_v34 = vpack.c.bf16 %v4662_v37, %v4661_v2  ;;  %v12023_v63 = vpop.f32.mrb[60].mxu1  ;;  %v13087_v23 = vld [vmem:[%s16964_s4 + $0x5a4] ss:$16 sps:$4 sm:$0xff]   ;;  %v13092_v27 = vld [vmem:[%s16964_s4 + $0x5c0] ss:$16 sps:$4 sm:$0xff]  }
 0x4c4   :  { %v4603_v54 = vadd.f32 %v12023_v63, %v4534_v42  ;;  %v4078_v60 = vpop.f32.mrb[61].mxu1  ;;  %6486 = vmatmul.mubr.bf16.gmra.mrb[88].mxu1 %v13035_v62  ;;  %v13090_v9 = vld [vmem:[%s16964_s4 + $0x5c4] ss:$16 sps:$4 sm:$0xff]   ;;  %v13095_v26 = vld [vmem:[%s16964_s4 + $0x5e0] ss:$16 sps:$4 sm:$0xff]  }
 0x4c5   :  { %v4601_v44 = vadd.f32 %v4524_v36, %v4078_v60  ;;  %v12024_v50 = vpop.f32.mrb[62].mxu1  ;;  %6807 = vmatpush1.bf16.msra.mxu1 %v4697_v34  ;;  %6493 = vmatprep.mubr.bf16.mxu1 %v13036_v48  ;;  %v13086_v36 = vld [vmem:[%s16964_s4 + $0x580] ss:$16 sps:$4 sm:$0xff]   ;;  %v13096_v19 = vld [vmem:[%s16964_s4 + $0x604] ss:$16 sps:$4 sm:$0xff]  }
 0x4c6   :  { %v4604_v32 = vadd.f32 %v12024_v50, %v4539_v31  ;;  %v4081_v40 = vpop.f32.mrb[63].mxu1  ;;  %6808 = vmatprep.subr.bf16.mxu1 %v17149_v28  ;;  %v4667_v8 = vmax.f32 %v4603_v54, 0.0  ;;  %v13098_v52 = vld [vmem:[%s16964_s4 + $0x600] ss:$16 sps:$4 sm:$0xff]   ;;  %v13099_v62 = vld [vmem:[%s16964_s4 + $0x624] ss:$16 sps:$4 sm:$0xff]  }
 0x4c7   :  { %v4602_v30 = vadd.f32 %v4529_v7, %v4081_v40  ;;  %v4665_v4 = vmax.f32 %v4601_v44, 0.0  ;;  %v13093_v7 = vld [vmem:[%s16964_s4 + $0x5e4] ss:$16 sps:$4 sm:$0xff]   ;;  %v13147_v37 = vld [vmem:[%s16964_s4] ss:$16 sps:$4 sm:$0xff]  }
 0x4c8   :  { %v4668_v13 = vmax.f32 %v4604_v32, 0.0  ;;  %v13149_v2 = vld [vmem:[%s16964_s4 + $0x4] ss:$16 sps:$4 sm:$0xff]   ;;  %v13101_v48 = vld [vmem:[%s16964_s4 + $0x620] ss:$16 sps:$4 sm:$0xff]  }
 0x4c9   :  { %v4666_v46 = vmax.f32 %v4602_v30, 0.0  ;;  %6809 = vmatpush1.bf16.msra.mxu1 %v4698_v51  ;;  %6269 = vmatprep.mubr.bf16.mxu0 %v13149_v2  ;;  %v13102_v51 = vld [vmem:[%s16964_s4 + $0x644] ss:$16 sps:$4 sm:$0xff]   ;;  %v13153_v34 = vld [vmem:[%s16964_s4 + $0x20] ss:$16 sps:$4 sm:$0xff]  }
 0x4ca   :  { %v4700_v59 = vpack.c.bf16 %v4668_v13, %v4667_v8  ;;  %6810 = vmatprep.subr.bf16.mxu1 %v17149_v28  ;;  %6270 = vmatmul.mubr.bf16.vlgmr.msra.gmra.mrb[0].mxu0 %v13147_v37  ;;  %v13155_v42 = vld [vmem:[%s16964_s4 + $0x24] ss:$16 sps:$4 sm:$0xff]   ;;  %v13104_v63 = vld [vmem:[%s16964_s4 + $0x640] ss:$16 sps:$4 sm:$0xff]   ;;  %v13150_v2 = vld [vmem:[%s16964_s4 + $0x2c] ss:$16 sps:$4 sm:$0xff]  }
 0x4cb   :  { %v4699_v5 = vpack.c.bf16 %v4666_v46, %v4665_v4  ;;  %6277 = vmatprep.mubr.bf16.mxu0 %v13155_v42  ;;  %v13105_v54 = vld [vmem:[%s16964_s4 + $0x664] ss:$16 sps:$4 sm:$0xff]   ;;  %v13159_v31 = vld [vmem:[%s16964_s4 + $0x40] ss:$16 sps:$4 sm:$0xff]   ;;  %v13156_v42 = vld [vmem:[%s16964_s4 + $0x4c] ss:$16 sps:$4 sm:$0xff]  }
 0x4cc   :  { %6494 = vmatmul.mubr.bf16.gmra.mrb[92].mxu1 %v13038_v45  ;;  %v13161_v60 = vld [vmem:[%s16964_s4 + $0x44] ss:$16 sps:$4 sm:$0xff]   ;;  %v13107_v44 = vld [vmem:[%s16964_s4 + $0x660] ss:$16 sps:$4 sm:$0xff]  }
 0x4cd   :  { %6811 = vmatpush1.bf16.msra.mxu1 %v4699_v5  ;;  %6501 = vmatprep.mubr.bf16.mxu1 %v13039_v56  ;;  %v13108_v50 = vld [vmem:[%s16964_s4 + $0x684] ss:$16 sps:$4 sm:$0xff]   ;;  %v13165_v40 = vld [vmem:[%s16964_s4 + $0x60] ss:$16 sps:$4 sm:$0xff]  }
 0x4ce   :  { %6812 = vmatprep.subr.bf16.mxu1 %v17149_v28  ;;  %v13167_v32 = vld [vmem:[%s16964_s4 + $0x64] ss:$16 sps:$4 sm:$0xff]   ;;  %v13110_v30 = vld [vmem:[%s16964_s4 + $0x680] ss:$16 sps:$4 sm:$0xff]  }
 0x4cf   :  { %v13111_v8 = vld [vmem:[%s16964_s4 + $0x6a4] ss:$16 sps:$4 sm:$0xff]   ;;  %v13171_v45 = vld [vmem:[%s16964_s4 + $0x80] ss:$16 sps:$4 sm:$0xff]  }
 0x4d0   :  { %v13173_v13 = vld [vmem:[%s16964_s4 + $0x84] ss:$16 sps:$4 sm:$0xff]   ;;  %v13113_v4 = vld [vmem:[%s16964_s4 + $0x6a0] ss:$16 sps:$4 sm:$0xff]  }
 0x4d1   :  { %6813 = vmatpush1.bf16.msra.mxu1 %v4700_v59  ;;  %v13114_v46 = vld [vmem:[%s16964_s4 + $0x6c4] ss:$16 sps:$4 sm:$0xff]   ;;  %v13177_v59 = vld [vmem:[%s16964_s4 + $0xa0] ss:$16 sps:$4 sm:$0xff]  }
 0x4d2   :  { %6278 = vmatmul.mubr.bf16.gmra.mrb[4].mxu0 %v13153_v34  ;;  %v13179_v56 = vld [vmem:[%s16964_s4 + $0xa4] ss:$16 sps:$4 sm:$0xff]   ;;  %v13116_v5 = vld [vmem:[%s16964_s4 + $0x6c0] ss:$16 sps:$4 sm:$0xff]  }
 0x4d3   :  { %6285 = vmatprep.mubr.bf16.mxu0 %v13161_v60  ;;  %v13245_v37 = vld [vmem:[%s16964_s4 + $0x204] ss:$16 sps:$4 sm:$0xff]   ;;  %v13162_v60 = vld [vmem:[%s16964_s4 + $0x6c] ss:$16 sps:$4 sm:$0xff]  }
 0x4d4   :  { %6502 = vmatmul.mubr.bf16.gmra.mrb[96].mxu1 %v13041_v38  ;;  %v13117_v38 = vld [vmem:[%s16964_s4 + $0x6e4] ss:$16 sps:$4 sm:$0xff]  }
 0x4d5   :  { %6509 = vmatprep.mubr.bf16.mxu1 %v13042_v39  ;;  %v13185_v39 = vld [vmem:[%s16964_s4 + $0xc4] ss:$16 sps:$4 sm:$0xff]  }
 0x4d6   :  { %v13251_v34 = vld [vmem:[%s16964_s4 + $0x224] ss:$16 sps:$4 sm:$0xff]  }
 0x4da   :  { %6286 = vmatmul.mubr.bf16.gmra.mrb[8].mxu0 %v13159_v31  ;;  %v13257_v31 = vld [vmem:[%s16964_s4 + $0x244] ss:$16 sps:$4 sm:$0xff]  }
 0x4db   :  { %6293 = vmatprep.mubr.bf16.mxu0 %v13167_v32  ;;  %v13168_v32 = vld [vmem:[%s16964_s4 + $0x8c] ss:$16 sps:$4 sm:$0xff]  }
 0x4dc   :  { %6510 = vmatmul.mubr.bf16.gmra.mrb[100].mxu1 %v13044_v53  ;;  %v13183_v53 = vld [vmem:[%s16964_s4 + $0xc0] ss:$16 sps:$4 sm:$0xff]  }
 0x4dd   :  { %6517 = vmatprep.mubr.bf16.mxu1 %v13045_v55  ;;  %v13119_v55 = vld [vmem:[%s16964_s4 + $0x6e0] ss:$16 sps:$4 sm:$0xff]  }
 0x4e2   :  { %6294 = vmatmul.mubr.bf16.gmra.mrb[12].mxu0 %v13165_v40  ;;  %v13263_v40 = vld [vmem:[%s16964_s4 + $0x264] ss:$16 sps:$4 sm:$0xff]  }
 0x4e3   :  { %6301 = vmatprep.mubr.bf16.mxu0 %v13173_v13  ;;  %v13176_v13 = vld [vmem:[%s16964_s4 + $0xac] ss:$16 sps:$4 sm:$0xff]  }
 0x4e4   :  { %6518 = vmatmul.mubr.bf16.gmra.mrb[104].mxu1 %v13047_v57  ;;  %v13120_v57 = vld [vmem:[%s16964_s4 + $0x704] ss:$16 sps:$4 sm:$0xff]  }
 0x4e5   :  { %6525 = vmatprep.mubr.bf16.mxu1 %v13048_v49  ;;  %v13191_v49 = vld [vmem:[%s16964_s4 + $0xe4] ss:$16 sps:$4 sm:$0xff]  }
 0x4ea   :  { %6302 = vmatmul.mubr.bf16.gmra.mrb[16].mxu0 %v13171_v45  ;;  %v13269_v45 = vld [vmem:[%s16964_s4 + $0x284] ss:$16 sps:$4 sm:$0xff]  }
 0x4eb   :  { %6309 = vmatprep.mubr.bf16.mxu0 %v13179_v56  ;;  %v13182_v56 = vld [vmem:[%s16964_s4 + $0xcc] ss:$16 sps:$4 sm:$0xff]  }
 0x4ec   :  { %6526 = vmatmul.mubr.bf16.gmra.mrb[108].mxu1 %v13050_v20  ;;  %v13189_v20 = vld [vmem:[%s16964_s4 + $0xe0] ss:$16 sps:$4 sm:$0xff]  }
 0x4ed   :  { %6533 = vmatprep.mubr.bf16.mxu1 %v13051_v22  ;;  %v13122_v22 = vld [vmem:[%s16964_s4 + $0x700] ss:$16 sps:$4 sm:$0xff]  }
 0x4f2   :  { %6310 = vmatmul.mubr.bf16.gmra.mrb[20].mxu0 %v13177_v59  ;;  %v13180_v59 = vld [vmem:[%s16964_s4 + $0xc8] ss:$16 sps:$4 sm:$0xff]  }
 0x4f3   :  { %6317 = vmatprep.mubr.bf16.mxu0 %v13185_v39  ;;  %v13194_v39 = vld [vmem:[%s16964_s4 + $0x10c] ss:$16 sps:$4 sm:$0xff]  }
 0x4f4   :  { %6534 = vmatmul.mubr.bf16.gmra.mrb[112].mxu1 %v13053_v11  ;;  %v13123_v11 = vld [vmem:[%s16964_s4 + $0x724] ss:$16 sps:$4 sm:$0xff]  }
 0x4f5   :  { %6541 = vmatprep.mubr.bf16.mxu1 %v13054_v58  ;;  %v13197_v58 = vld [vmem:[%s16964_s4 + $0x104] ss:$16 sps:$4 sm:$0xff]  }
 0x4fa   :  { %6318 = vmatmul.mubr.bf16.gmra.mrb[24].mxu0 %v13183_v53  ;;  %v13192_v53 = vld [vmem:[%s16964_s4 + $0x108] ss:$16 sps:$4 sm:$0xff]  }
 0x4fb   :  { %6325 = vmatprep.mubr.bf16.mxu0 %v13191_v49  ;;  %v13206_v49 = vld [vmem:[%s16964_s4 + $0x14c] ss:$16 sps:$4 sm:$0xff]  }
 0x4fc   :  { %6542 = vmatmul.mubr.bf16.gmra.mrb[116].mxu1 %v13056_v61  ;;  %v13195_v61 = vld [vmem:[%s16964_s4 + $0x100] ss:$16 sps:$4 sm:$0xff]  }
 0x4fd   :  { %6549 = vmatprep.mubr.bf16.mxu1 %v13057_v3  ;;  %v13125_v3 = vld [vmem:[%s16964_s4 + $0x720] ss:$16 sps:$4 sm:$0xff]  }
 0x502   :  { %6326 = vmatmul.mubr.bf16.gmra.mrb[28].mxu0 %v13189_v20  ;;  %v13204_v20 = vld [vmem:[%s16964_s4 + $0x148] ss:$16 sps:$4 sm:$0xff]  }
 0x503   :  { %6333 = vmatprep.mubr.bf16.mxu0 %v13197_v58  ;;  %v13210_v58 = vld [vmem:[%s16964_s4 + $0x168] ss:$16 sps:$4 sm:$0xff]  }
 0x504   :  { %6550 = vmatmul.mubr.bf16.gmra.mrb[120].mxu1 %v13059_v16  ;;  %v13126_v16 = vld [vmem:[%s16964_s4 + $0x744] ss:$16 sps:$4 sm:$0xff]  }
 0x505   :  { %6557 = vmatprep.mubr.bf16.mxu1 %v13060_v47  ;;  %v13203_v47 = vld [vmem:[%s16964_s4 + $0x124] ss:$16 sps:$4 sm:$0xff]  }
 0x50a   :  { %6334 = vmatmul.mubr.bf16.gmra.mrb[32].mxu0 %v13195_v61 }
 0x50b   :  { %6341 = vmatprep.mubr.bf16.mxu0 %v13203_v47 }
 0x50c   :  { %6558 = vmatmul.mubr.bf16.gmra.mrb[124].mxu1 %v13062_v10  ;;  %v13201_v10 = vld [vmem:[%s16964_s4 + $0x120] ss:$16 sps:$4 sm:$0xff]  }
 0x50d   :  { %6565 = vmatprep.mubr.bf16.mxu1 %v13063_v25  ;;  %v13128_v25 = vld [vmem:[%s16964_s4 + $0x740] ss:$16 sps:$4 sm:$0xff]  }
 0x512   :  { %6342 = vmatmul.mubr.bf16.gmra.mrb[36].mxu0 %v13201_v10 }
 0x514   :  { %6566 = vmatmul.mubr.bf16.gmra.mrb[128].mxu1 %v13065_v21  ;;  %v13129_v21 = vld [vmem:[%s16964_s4 + $0x764] ss:$16 sps:$4 sm:$0xff]  }
 0x515   :  { %6573 = vmatprep.mubr.bf16.mxu1 %v13066_v29  ;;  %v13209_v29 = vld [vmem:[%s16964_s4 + $0x144] ss:$16 sps:$4 sm:$0xff]  }
 0x516   :  { %6349 = vmatprep.mubr.bf16.mxu0 %v13209_v29  ;;  %v13224_v29 = vld [vmem:[%s16964_s4 + $0x1ac] ss:$16 sps:$4 sm:$0xff]  }
 0x51c   :  { %6574 = vmatmul.mubr.bf16.gmra.mrb[132].mxu1 %v13068_v35  ;;  %v13207_v35 = vld [vmem:[%s16964_s4 + $0x140] ss:$16 sps:$4 sm:$0xff]  }
 0x51d   :  { %6581 = vmatprep.mubr.bf16.mxu1 %v13069_v12  ;;  %6350 = vmatmul.mubr.bf16.gmra.mrb[40].mxu0 %v13207_v35  ;;  %v13131_v12 = vld [vmem:[%s16964_s4 + $0x760] ss:$16 sps:$4 sm:$0xff]  }
 0x524   :  { %6582 = vmatmul.mubr.bf16.gmra.mrb[136].mxu1 %v13071_v15  ;;  %v13132_v15 = vld [vmem:[%s16964_s4 + $0x784] ss:$16 sps:$4 sm:$0xff]  }
 0x525   :  { %6589 = vmatprep.mubr.bf16.mxu1 %v13072_v41  ;;  %v13215_v41 = vld [vmem:[%s16964_s4 + $0x164] ss:$16 sps:$4 sm:$0xff]  }
 0x526   :  { %6357 = vmatprep.mubr.bf16.mxu0 %v13215_v41  ;;  %v13222_v41 = vld [vmem:[%s16964_s4 + $0x1a8] ss:$16 sps:$4 sm:$0xff]  }
 0x52c   :  { %6590 = vmatmul.mubr.bf16.gmra.mrb[140].mxu1 %v13074_v18  ;;  %v13213_v18 = vld [vmem:[%s16964_s4 + $0x160] ss:$16 sps:$4 sm:$0xff]  }
 0x52d   :  { %6597 = vmatprep.mubr.bf16.mxu1 %v13075_v24  ;;  %6358 = vmatmul.mubr.bf16.gmra.mrb[44].mxu0 %v13213_v18  ;;  %v13134_v24 = vld [vmem:[%s16964_s4 + $0x780] ss:$16 sps:$4 sm:$0xff]  }
 0x534   :  { %6598 = vmatmul.mubr.bf16.gmra.mrb[144].mxu1 %v13077_v33  ;;  %v13135_v33 = vld [vmem:[%s16964_s4 + $0x7a4] ss:$16 sps:$4 sm:$0xff]  }
 0x535   :  { %6605 = vmatprep.mubr.bf16.mxu1 %v13078_v1  ;;  %v13221_v1 = vld [vmem:[%s16964_s4 + $0x184] ss:$16 sps:$4 sm:$0xff]  }
 0x536   :  { %6365 = vmatprep.mubr.bf16.mxu0 %v13221_v1 }
 0x53c   :  { %6606 = vmatmul.mubr.bf16.gmra.mrb[148].mxu1 %v13080_v17  ;;  %v13219_v17 = vld [vmem:[%s16964_s4 + $0x180] ss:$16 sps:$4 sm:$0xff]  }
 0x53d   :  { %6613 = vmatprep.mubr.bf16.mxu1 %v13081_v6  ;;  %6366 = vmatmul.mubr.bf16.gmra.mrb[48].mxu0 %v13219_v17  ;;  %v13137_v6 = vld [vmem:[%s16964_s4 + $0x7a0] ss:$16 sps:$4 sm:$0xff]  }
 0x544   :  { %6614 = vmatmul.mubr.bf16.gmra.mrb[152].mxu1 %v13083_v43  ;;  %v13138_v43 = vld [vmem:[%s16964_s4 + $0x7c4] ss:$16 sps:$4 sm:$0xff]  }
 0x545   :  { %6621 = vmatprep.mubr.bf16.mxu1 %v13084_v14  ;;  %v13227_v14 = vld [vmem:[%s16964_s4 + $0x1a4] ss:$16 sps:$4 sm:$0xff]  }
 0x546   :  { %6373 = vmatprep.mubr.bf16.mxu0 %v13227_v14  ;;  %v13236_v14 = vld [vmem:[%s16964_s4 + $0x1ec] ss:$16 sps:$4 sm:$0xff]  }
 0x54c   :  { %6622 = vmatmul.mubr.bf16.gmra.mrb[156].mxu1 %v13086_v36  ;;  %v13225_v36 = vld [vmem:[%s16964_s4 + $0x1a0] ss:$16 sps:$4 sm:$0xff]  }
 0x54d   :  { %6629 = vmatprep.mubr.bf16.mxu1 %v13087_v23  ;;  %6374 = vmatmul.mubr.bf16.gmra.mrb[52].mxu0 %v13225_v36  ;;  %v13140_v23 = vld [vmem:[%s16964_s4 + $0x7c0] ss:$16 sps:$4 sm:$0xff]  }
 0x554   :  { %6630 = vmatmul.mubr.bf16.gmra.mrb[160].mxu1 %v13089_v0  ;;  %v13141_v0 = vld [vmem:[%s16964_s4 + $0x7e4] ss:$16 sps:$4 sm:$0xff]  }
 0x555   :  { %6637 = vmatprep.mubr.bf16.mxu1 %v13090_v9  ;;  %v13233_v9 = vld [vmem:[%s16964_s4 + $0x1c4] ss:$16 sps:$4 sm:$0xff]  }
 0x556   :  { %6381 = vmatprep.mubr.bf16.mxu0 %v13233_v9  ;;  %v13234_v9 = vld [vmem:[%s16964_s4 + $0x1e8] ss:$16 sps:$4 sm:$0xff]  }
 0x55c   :  { %6638 = vmatmul.mubr.bf16.gmra.mrb[164].mxu1 %v13092_v27  ;;  %v13231_v27 = vld [vmem:[%s16964_s4 + $0x1c0] ss:$16 sps:$4 sm:$0xff]  }
 0x55d   :  { %6645 = vmatprep.mubr.bf16.mxu1 %v13093_v7  ;;  %6382 = vmatmul.mubr.bf16.gmra.mrb[56].mxu0 %v13231_v27  ;;  %v13143_v7 = vld [vmem:[%s16964_s4 + $0x7e0] ss:$16 sps:$4 sm:$0xff]  }
 0x564   :  { %6646 = vmatmul.mubr.bf16.gmra.mrb[168].mxu1 %v13095_v26  ;;  %v13146_v26 = vld [vmem:[%s16964_s4 + $0xc] ss:$16 sps:$4 sm:$0xff]  }
 0x565   :  { %6653 = vmatprep.mubr.bf16.mxu1 %v13096_v19  ;;  %v13239_v19 = vld [vmem:[%s16964_s4 + $0x1e4] ss:$16 sps:$4 sm:$0xff]  }
 0x566   :  { %6389 = vmatprep.mubr.bf16.mxu0 %v13239_v19 }
 0x56c   :  { %6654 = vmatmul.mubr.bf16.gmra.mrb[172].mxu1 %v13098_v52  ;;  %v13237_v52 = vld [vmem:[%s16964_s4 + $0x1e0] ss:$16 sps:$4 sm:$0xff]  }
 0x56d   :  { %6661 = vmatprep.mubr.bf16.mxu1 %v13099_v62  ;;  %6390 = vmatmul.mubr.bf16.gmra.mrb[60].mxu0 %v13237_v52  ;;  %v13144_v62 = vld [vmem:[%s16964_s4 + $0x8] ss:$16 sps:$4 sm:$0xff]  }
 0x56e   :  { %6397 = vmatprep.mubr.bf16.mxu0 %v13245_v37  ;;  %v13248_v37 = vld [vmem:[%s16964_s4 + $0x22c] ss:$16 sps:$4 sm:$0xff]  }
 0x574   :  { %6662 = vmatmul.mubr.bf16.gmra.mrb[176].mxu1 %v13101_v48  ;;  %v13243_v48 = vld [vmem:[%s16964_s4 + $0x200] ss:$16 sps:$4 sm:$0xff]  }
 0x575   :  { %6669 = vmatprep.mubr.bf16.mxu1 %v13102_v51  ;;  %6398 = vmatmul.mubr.bf16.gmra.mrb[64].mxu0 %v13243_v48  ;;  %v13152_v51 = vld [vmem:[%s16964_s4 + $0x28] ss:$16 sps:$4 sm:$0xff]  }
 0x576   :  { %6405 = vmatprep.mubr.bf16.mxu0 %v13251_v34  ;;  %v13246_v34 = vld [vmem:[%s16964_s4 + $0x228] ss:$16 sps:$4 sm:$0xff]  }
 0x57c   :  { %6670 = vmatmul.mubr.bf16.gmra.mrb[180].mxu1 %v13104_v63  ;;  %v13249_v63 = vld [vmem:[%s16964_s4 + $0x220] ss:$16 sps:$4 sm:$0xff]  }
 0x57d   :  { %6677 = vmatprep.mubr.bf16.mxu1 %v13105_v54  ;;  %6406 = vmatmul.mubr.bf16.gmra.mrb[68].mxu0 %v13249_v63  ;;  %v13158_v54 = vld [vmem:[%s16964_s4 + $0x48] ss:$16 sps:$4 sm:$0xff]  }
 0x57e   :  { %6413 = vmatprep.mubr.bf16.mxu0 %v13257_v31 }
 0x584   :  { %6678 = vmatmul.mubr.bf16.gmra.mrb[184].mxu1 %v13107_v44  ;;  %v13255_v44 = vld [vmem:[%s16964_s4 + $0x240] ss:$16 sps:$4 sm:$0xff]  }
 0x585   :  { %6685 = vmatprep.mubr.bf16.mxu1 %v13108_v50  ;;  %6414 = vmatmul.mubr.bf16.gmra.mrb[72].mxu0 %v13255_v44  ;;  %v13164_v50 = vld [vmem:[%s16964_s4 + $0x68] ss:$16 sps:$4 sm:$0xff]  }
 0x586   :  { %6421 = vmatprep.mubr.bf16.mxu0 %v13263_v40  ;;  %v13260_v40 = vld [vmem:[%s16964_s4 + $0x26c] ss:$16 sps:$4 sm:$0xff]  }
 0x58c   :  { %6686 = vmatmul.mubr.bf16.gmra.mrb[188].mxu1 %v13110_v30  ;;  %v13261_v30 = vld [vmem:[%s16964_s4 + $0x260] ss:$16 sps:$4 sm:$0xff]  }
 0x58d   :  { %6693 = vmatprep.mubr.bf16.mxu1 %v13111_v8  ;;  %6422 = vmatmul.mubr.bf16.gmra.mrb[76].mxu0 %v13261_v30  ;;  %v13170_v8 = vld [vmem:[%s16964_s4 + $0x88] ss:$16 sps:$4 sm:$0xff]  }
 0x58e   :  { %6429 = vmatprep.mubr.bf16.mxu0 %v13269_v45  ;;  %v13258_v45 = vld [vmem:[%s16964_s4 + $0x268] ss:$16 sps:$4 sm:$0xff]  }
 0x594   :  { %6694 = vmatmul.mubr.bf16.gmra.mrb[192].mxu1 %v13113_v4  ;;  %v13267_v4 = vld [vmem:[%s16964_s4 + $0x280] ss:$16 sps:$4 sm:$0xff]  }
 0x595   :  { %6701 = vmatprep.mubr.bf16.mxu1 %v13114_v46  ;;  %6430 = vmatmul.mubr.bf16.gmra.mrb[80].mxu0 %v13267_v4  ;;  %v13174_v46 = vld [vmem:[%s16964_s4 + $0xa8] ss:$16 sps:$4 sm:$0xff]  }
 0x59c   :  { %6702 = vmatmul.mubr.bf16.gmra.mrb[196].mxu1 %v13116_v5  ;;  %v13188_v5 = vld [vmem:[%s16964_s4 + $0xec] ss:$16 sps:$4 sm:$0xff]  }
 0x59d   :  { %6709 = vmatprep.mubr.bf16.mxu1 %v13117_v38  ;;  %v13186_v38 = vld [vmem:[%s16964_s4 + $0xe8] ss:$16 sps:$4 sm:$0xff]  }
 0x5a4   :  { %6710 = vmatmul.mubr.bf16.gmra.mrb[200].mxu1 %v13119_v55  ;;  %v13200_v55 = vld [vmem:[%s16964_s4 + $0x12c] ss:$16 sps:$4 sm:$0xff]  }
 0x5a5   :  { %6717 = vmatprep.mubr.bf16.mxu1 %v13120_v57  ;;  %v13198_v57 = vld [vmem:[%s16964_s4 + $0x128] ss:$16 sps:$4 sm:$0xff]  }
 0x5ac   :  { %6718 = vmatmul.mubr.bf16.gmra.mrb[204].mxu1 %v13122_v22  ;;  %v13212_v22 = vld [vmem:[%s16964_s4 + $0x16c] ss:$16 sps:$4 sm:$0xff]  }
 0x5ad   :  { %6725 = vmatprep.mubr.bf16.mxu1 %v13123_v11  ;;  %v15893_v11 = vpop.f32.mrb[0].mxu0 }
 0x5ae   :  { %v6273_v61 = vpop.f32.mrb[1].mxu0 }
 0x5b4   :  { %6726 = vmatmul.mubr.bf16.gmra.mrb[208].mxu1 %v13125_v3  ;;  %v13218_v3 = vld [vmem:[%s16964_s4 + $0x18c] ss:$16 sps:$4 sm:$0xff]  }
 0x5b5   :  { %6733 = vmatprep.mubr.bf16.mxu1 %v13126_v16  ;;  %v15901_v16 = vpop.f32.mrb[2].mxu0 }
 0x5b6   :  { %v6276_v47 = vpop.f32.mrb[3].mxu0 }
 0x5b7   :  { %v15903_v10 = vpop.f32.mrb[4].mxu0 }
 0x5bc   :  { %6734 = vmatmul.mubr.bf16.gmra.mrb[212].mxu1 %v13128_v25  ;;  %v13216_v25 = vld [vmem:[%s16964_s4 + $0x188] ss:$16 sps:$4 sm:$0xff]  }
 0x5bd   :  { %6741 = vmatprep.mubr.bf16.mxu1 %v13129_v21  ;;  %v6281_v21 = vpop.f32.mrb[5].mxu0 }
 0x5be   :  { %v15911_v35 = vpop.f32.mrb[6].mxu0 }
 0x5c4   :  { %6742 = vmatmul.mubr.bf16.gmra.mrb[216].mxu1 %v13131_v12  ;;  %v6284_v12 = vpop.f32.mrb[7].mxu0 }
 0x5c5   :  { %6749 = vmatprep.mubr.bf16.mxu1 %v13132_v15  ;;  %v15913_v15 = vpop.f32.mrb[8].mxu0 }
 0x5c6   :  { %v6289_v18 = vpop.f32.mrb[9].mxu0 }
 0x5cc   :  { %6750 = vmatmul.mubr.bf16.gmra.mrb[220].mxu1 %v13134_v24  ;;  %v13230_v24 = vld [vmem:[%s16964_s4 + $0x1cc] ss:$16 sps:$4 sm:$0xff]  }
 0x5cd   :  { %6757 = vmatprep.mubr.bf16.mxu1 %v13135_v33  ;;  %v15921_v33 = vpop.f32.mrb[10].mxu0 }
 0x5ce   :  { %v6292_v1 = vpop.f32.mrb[11].mxu0 }
 0x5cf   :  { %v15923_v17 = vpop.f32.mrb[12].mxu0 }
 0x5d4   :  { %6758 = vmatmul.mubr.bf16.gmra.mrb[224].mxu1 %v13137_v6  ;;  %v13228_v6 = vld [vmem:[%s16964_s4 + $0x1c8] ss:$16 sps:$4 sm:$0xff]  }
 0x5d5   :  { %6765 = vmatprep.mubr.bf16.mxu1 %v13138_v43  ;;  %v6297_v43 = vpop.f32.mrb[13].mxu0 }
 0x5d6   :  { %v15931_v36 = vpop.f32.mrb[14].mxu0 }
 0x5dc   :  { %6766 = vmatmul.mubr.bf16.gmra.mrb[228].mxu1 %v13140_v23  ;;  %v6300_v23 = vpop.f32.mrb[15].mxu0 }
 0x5dd   :  { %6773 = vmatprep.mubr.bf16.mxu1 %v13141_v0  ;;  %v15933_v0 = vpop.f32.mrb[16].mxu0 }
 0x5de   :  { %v6305_v27 = vpop.f32.mrb[17].mxu0 }
 0x5e4   :  { %6774 = vmatmul.mubr.bf16.gmra.mrb[232].mxu1 %v13143_v7  ;;  %v13242_v7 = vld [vmem:[%s16964_s4 + $0x20c] ss:$16 sps:$4 sm:$0xff]  }
 0x5e5   :  { %6814 = vmatprep.mubr.bf16.mxu1 %v13146_v26  ;;  %v15941_v26 = vpop.f32.mrb[18].mxu0 }
 0x5e6   :  { %v6308_v19 = vpop.f32.mrb[19].mxu0 }
 0x5e7   :  { %v15943_v52 = vpop.f32.mrb[20].mxu0 }
 0x5ec   :  { %6815 = vmatmul.mubr.bf16.vlgmr.msra.gmra.mrb[236].mxu1 %v13144_v62  ;;  %v13240_v62 = vld [vmem:[%s16964_s4 + $0x208] ss:$16 sps:$4 sm:$0xff]  }
 0x5ed   :  { %6822 = vmatprep.mubr.bf16.mxu1 %v13150_v2  ;;  %v6313_v2 = vpop.f32.mrb[21].mxu0 }
 0x5ee   :  { %v15951_v48 = vpop.f32.mrb[22].mxu0 }
 0x5f4   :  { %6823 = vmatmul.mubr.bf16.gmra.mrb[240].mxu1 %v13152_v51  ;;  %v6316_v51 = vpop.f32.mrb[23].mxu0 }
 0x5f5   :  { %6830 = vmatprep.mubr.bf16.mxu1 %v13156_v42  ;;  %v15953_v42 = vpop.f32.mrb[24].mxu0 }
 0x5f6   :  { %v6321_v63 = vpop.f32.mrb[25].mxu0 }
 0x5fc   :  { %6831 = vmatmul.mubr.bf16.gmra.mrb[244].mxu1 %v13158_v54  ;;  %v13254_v54 = vld [vmem:[%s16964_s4 + $0x24c] ss:$16 sps:$4 sm:$0xff]  }
 0x5fd   :  { %6838 = vmatprep.mubr.bf16.mxu1 %v13162_v60  ;;  %v15961_v60 = vpop.f32.mrb[26].mxu0 }
 0x5fe   :  { %v6324_v31 = vpop.f32.mrb[27].mxu0 }
 0x5ff   :  { %v15963_v44 = vpop.f32.mrb[28].mxu0 }
 0x604   :  { %6839 = vmatmul.mubr.bf16.gmra.mrb[248].mxu1 %v13164_v50  ;;  %v13252_v50 = vld [vmem:[%s16964_s4 + $0x248] ss:$16 sps:$4 sm:$0xff]  }
 0x605   :  { %6846 = vmatprep.mubr.bf16.mxu1 %v13168_v32  ;;  %v6329_v32 = vpop.f32.mrb[29].mxu0 }
 0x606   :  { %v15971_v30 = vpop.f32.mrb[30].mxu0 }
 0x60c   :  { %6847 = vmatmul.mubr.bf16.gmra.mrb[252].mxu1 %v13170_v8  ;;  %v6332_v8 = vpop.f32.mrb[31].mxu0 }
 0x60d   :  { %6854 = vmatprep.mubr.bf16.mxu1 %v13176_v13  ;;  %v15973_v13 = vpop.f32.mrb[32].mxu0 }
 0x60e   :  { %v6337_v4 = vpop.f32.mrb[33].mxu0 }
 0x614   :  { %6855 = vmatmul.mubr.bf16.gmra.mrb[0].mxu1 %v13174_v46  ;;  %v13266_v46 = vld [vmem:[%s16964_s4 + $0x28c] ss:$16 sps:$4 sm:$0xff]  }
 0x615   :  { %6862 = vmatprep.mubr.bf16.mxu1 %v13182_v56  ;;  %v15981_v56 = vpop.f32.mrb[34].mxu0 }
 0x61c   :  { %6863 = vmatmul.mubr.bf16.gmra.mrb[4].mxu1 %v13180_v59  ;;  %v6340_v59 = vpop.f32.mrb[35].mxu0 }
 0x61d   :  { %6870 = vmatprep.mubr.bf16.mxu1 %v13188_v5  ;;  %v15983_v5 = vpop.f32.mrb[36].mxu0  ;;  %v13290_v59 = vld [vmem:[%s16964_s4 + $0x368] ss:$16 sps:$4 sm:$0xff]  }
 0x624   :  { %6871 = vmatmul.mubr.bf16.gmra.mrb[8].mxu1 %v13186_v38  ;;  %v13264_v38 = vld [vmem:[%s16964_s4 + $0x288] ss:$16 sps:$4 sm:$0xff]  }
 0x625   :  { %6878 = vmatprep.mubr.bf16.mxu1 %v13194_v39  ;;  %v6345_v39 = vpop.f32.mrb[37].mxu0 }
 0x62c   :  { %6879 = vmatmul.mubr.bf16.gmra.mrb[12].mxu1 %v13192_v53  ;;  %v13270_v53 = vld [vmem:[%s16964_s4 + $0x2ac] ss:$16 sps:$4 sm:$0xff]  }
 0x62d   :  { %6886 = vmatprep.mubr.bf16.mxu1 %v13200_v55  ;;  %v15991_v55 = vpop.f32.mrb[38].mxu0 }
 0x634   :  { %6887 = vmatmul.mubr.bf16.gmra.mrb[16].mxu1 %v13198_v57  ;;  %v6348_v57 = vpop.f32.mrb[39].mxu0 }
 0x635   :  { %6894 = vmatprep.mubr.bf16.mxu1 %v13206_v49  ;;  %v15993_v49 = vpop.f32.mrb[40].mxu0  ;;  %v13291_v57 = vld [vmem:[%s16964_s4 + $0x38c] ss:$16 sps:$4 sm:$0xff]  }
 0x63c   :  { %6895 = vmatmul.mubr.bf16.gmra.mrb[20].mxu1 %v13204_v20  ;;  %v13272_v20 = vld [vmem:[%s16964_s4 + $0x2a8] ss:$16 sps:$4 sm:$0xff]  }
 0x63d   :  { %6902 = vmatprep.mubr.bf16.mxu1 %v13212_v22  ;;  %v6353_v22 = vpop.f32.mrb[41].mxu0 }
 0x63e   :  { %v16001_v61 = vpop.f32.mrb[42].mxu0 }
 0x644   :  { %6903 = vmatmul.mubr.bf16.gmra.mrb[24].mxu1 %v13210_v58  ;;  %v13273_v58 = vld [vmem:[%s16964_s4 + $0x2cc] ss:$16 sps:$4 sm:$0xff]  }
 0x645   :  { %6910 = vmatprep.mubr.bf16.mxu1 %v13218_v3  ;;  %v6356_v3 = vpop.f32.mrb[43].mxu0 }
 0x646   :  { %v16003_v47 = vpop.f32.mrb[44].mxu0 }
 0x647   :  { %v6361_v21 = vpop.f32.mrb[45].mxu0 }
 0x648   :  { %v16011_v12 = vpop.f32.mrb[46].mxu0 }
 0x64c   :  { %6911 = vmatmul.mubr.bf16.gmra.mrb[28].mxu1 %v13216_v25  ;;  %v13275_v25 = vld [vmem:[%s16964_s4 + $0x2c8] ss:$16 sps:$4 sm:$0xff]  }
 0x64d   :  { %6918 = vmatprep.mubr.bf16.mxu1 %v13224_v29  ;;  %v13276_v29 = vld [vmem:[%s16964_s4 + $0x2ec] ss:$16 sps:$4 sm:$0xff]  }
 0x654   :  { %6919 = vmatmul.mubr.bf16.gmra.mrb[32].mxu1 %v13222_v41  ;;  %v6364_v41 = vpop.f32.mrb[47].mxu0 }
 0x655   :  { %6926 = vmatprep.mubr.bf16.mxu1 %v13230_v24  ;;  %v16013_v18 = vpop.f32.mrb[48].mxu0  ;;  %v13278_v24 = vld [vmem:[%s16964_s4 + $0x2e8] ss:$16 sps:$4 sm:$0xff]  }
 0x656   :  { %v6369_v1 = vpop.f32.mrb[49].mxu0  ;;  %v13293_v41 = vld [vmem:[%s16964_s4 + $0x388] ss:$16 sps:$4 sm:$0xff]  }
 0x657   :  { %v16021_v43 = vpop.f32.mrb[50].mxu0 }
 0x65c   :  { %6927 = vmatmul.mubr.bf16.gmra.mrb[36].mxu1 %v13228_v6  ;;  %v13279_v6 = vld [vmem:[%s16964_s4 + $0x30c] ss:$16 sps:$4 sm:$0xff]  }
 0x65d   :  { %6934 = vmatprep.mubr.bf16.mxu1 %v13236_v14  ;;  %v6372_v14 = vpop.f32.mrb[51].mxu0 }
 0x65e   :  { %v16023_v23 = vpop.f32.mrb[52].mxu0 }
 0x65f   :  { %v6377_v27 = vpop.f32.mrb[53].mxu0 }
 0x660   :  { %v16031_v19 = vpop.f32.mrb[54].mxu0  ;;  %v10914_v27 = vld [vmem:[%s16966_s6 + $0x4] sm:$0xf] }
 0x661   :  { %12871 = vmatprep.subr.msk.bf16.mxu0 %vm7411_vm3, %v10914_v27 }
 0x664   :  { %6935 = vmatmul.mubr.bf16.gmra.mrb[40].mxu1 %v13234_v9  ;;  %v13281_v9 = vld [vmem:[%s16964_s4 + $0x308] ss:$16 sps:$4 sm:$0xff]  }
 0x665   :  { %6942 = vmatprep.mubr.bf16.mxu1 %v13242_v7  ;;  %v13282_v7 = vld [vmem:[%s16964_s4 + $0x32c] ss:$16 sps:$4 sm:$0xff]  }
 0x66c   :  { %6943 = vmatmul.mubr.bf16.gmra.mrb[44].mxu1 %v13240_v62  ;;  %v6380_v62 = vpop.f32.mrb[55].mxu0 }
 0x66d   :  { %6950 = vmatprep.mubr.bf16.mxu1 %v13248_v37  ;;  %v16033_v2 = vpop.f32.mrb[56].mxu0  ;;  %v13284_v37 = vld [vmem:[%s16964_s4 + $0x328] ss:$16 sps:$4 sm:$0xff]  }
 0x66e   :  { %v6385_v51 = vpop.f32.mrb[57].mxu0 }
 0x66f   :  { %v16041_v63 = vpop.f32.mrb[58].mxu0 }
 0x674   :  { %6951 = vmatmul.mubr.bf16.gmra.mrb[48].mxu1 %v13246_v34  ;;  %v13285_v34 = vld [vmem:[%s16964_s4 + $0x34c] ss:$16 sps:$4 sm:$0xff]  }
 0x675   :  { %6958 = vmatprep.mubr.bf16.mxu1 %v13254_v54  ;;  %v6388_v54 = vpop.f32.mrb[59].mxu0 }
 0x676   :  { %v16043_v31 = vpop.f32.mrb[60].mxu0 }
 0x677   :  { %v6393_v32 = vpop.f32.mrb[61].mxu0 }
 0x678   :  { %v16051_v8 = vpop.f32.mrb[62].mxu0 }
 0x67c   :  { %6959 = vmatmul.mubr.bf16.gmra.mrb[52].mxu1 %v13252_v50  ;;  %v13287_v50 = vld [vmem:[%s16964_s4 + $0x348] ss:$16 sps:$4 sm:$0xff]  }
 0x67d   :  { %6966 = vmatprep.mubr.bf16.mxu1 %v13260_v40  ;;  %v13288_v40 = vld [vmem:[%s16964_s4 + $0x36c] ss:$16 sps:$4 sm:$0xff]  }
 0x684   :  { %6967 = vmatmul.mubr.bf16.gmra.mrb[56].mxu1 %v13258_v45  ;;  %v6396_v45 = vpop.f32.mrb[63].mxu0 }
 0x685   :  { %6974 = vmatprep.mubr.bf16.mxu1 %v13266_v46  ;;  %v16053_v46 = vpop.f32.mrb[64].mxu0  ;;  %v13297_v45 = vld [vmem:[%s16964_s4 + $0x3cc] ss:$16 sps:$4 sm:$0xff]  }
 0x686   :  { %v6401_v39 = vpop.f32.mrb[65].mxu0 }
 0x687   :  { %v16064_v22 = vpop.f32.mrb[66].mxu0 }
 0x688   :  { %v6404_v3 = vpop.f32.mrb[67].mxu0 }
 0x689   :  { %v13299_v3 = vld [vmem:[%s16964_s4 + $0x3c8] ss:$16 sps:$4 sm:$0xff]  }
 0x68c   :  { %6975 = vmatmul.mubr.bf16.gmra.mrb[60].mxu1 %v13264_v38 }
 0x68d   :  { %6982 = vmatprep.mubr.bf16.mxu1 %v13270_v53 }
 0x694   :  { %6983 = vmatmul.mubr.bf16.gmra.mrb[64].mxu1 %v13272_v20 }
 0x695   :  { %6990 = vmatprep.mubr.bf16.mxu1 %v13273_v58 }
 0x69c   :  { %6991 = vmatmul.mubr.bf16.gmra.mrb[68].mxu1 %v13275_v25 }
 0x69d   :  { %6998 = vmatprep.mubr.bf16.mxu1 %v13276_v29 }
 0x6a4   :  { %6999 = vmatmul.mubr.bf16.gmra.mrb[72].mxu1 %v13278_v24  ;;  %v13294_v24 = vld [vmem:[%s16964_s4 + $0x3ac] ss:$16 sps:$4 sm:$0xff]  }
 0x6a5   :  { %7006 = vmatprep.mubr.bf16.mxu1 %v13279_v6 }
 0x6ac   :  { %7007 = vmatmul.mubr.bf16.gmra.mrb[76].mxu1 %v13281_v9 }
 0x6ad   :  { %7014 = vmatprep.mubr.bf16.mxu1 %v13282_v7 }
 0x6b4   :  { %7015 = vmatmul.mubr.bf16.gmra.mrb[80].mxu1 %v13284_v37 }
 0x6b5   :  { %7022 = vmatprep.mubr.bf16.mxu1 %v13285_v34 }
 0x6bc   :  { %7023 = vmatmul.mubr.bf16.gmra.mrb[84].mxu1 %v13287_v50 }
 0x6bd   :  { %7030 = vmatprep.mubr.bf16.mxu1 %v13288_v40 }
 0x6bf   :  { %v6816_v4 = vpop.f32.mrb[236].mxu1 }
 0x6c0   :  { %v6818_v38 = vpop.f32.mrb[237].mxu1  ;;  %v16059_v53 = vadd.f32 %v6816_v4, %v15893_v11  ;;  %v16071_v11 = vpop.f32.mrb[68].mxu0 }
 0x6c1   :  { %v6819_v20 = vpop.f32.mrb[238].mxu1  ;;  %v6409_v6 = vpop.f32.mrb[69].mxu0 }
 0x6c2   :  { %v6821_v58 = vpop.f32.mrb[239].mxu1  ;;  %v16067_v25 = vadd.f32 %v6819_v20, %v15901_v16  ;;  %v16082_v9 = vpop.f32.mrb[70].mxu0 }
 0x6c3   :  { %v6412_v37 = vpop.f32.mrb[71].mxu0 }
 0x6c4   :  { %7031 = vmatmul.mubr.bf16.gmra.mrb[88].mxu1 %v13290_v59  ;;  %v16094_v54 = vpop.f32.mrb[72].mxu0 }
 0x6c5   :  { %7038 = vmatprep.mubr.bf16.mxu1 %v13291_v57  ;;  %v6417_v40 = vpop.f32.mrb[73].mxu0 }
 0x6c6   :  { %v16105_v59 = vpop.f32.mrb[74].mxu0  ;;  %v13303_v40 = vld [vmem:[%s16964_s4 + $0x40c] ss:$16 sps:$4 sm:$0xff]  }
 0x6c7   :  { %v6824_v29 = vpop.f32.mrb[240].mxu1  ;;  %v6420_v57 = vpop.f32.mrb[75].mxu0 }
 0x6c8   :  { %v16080_v1 = vadd.f32 %v6824_v29, %v15903_v10  ;;  %v6826_v16 = vpop.f32.mrb[241].mxu1  ;;  %v7413_v10 = vsel %vm7411_vm3, %v10914_v27, 0  ;;  %v16112_v58 = vpop.f32.mrb[76].mxu0 }
 0x6c9   :  { %v6827_v14 = vpop.f32.mrb[242].mxu1  ;;  %12026 = vmatpush3.bf16.msra.mxu0 %v7413_v10 }
 0x6ca   :  { %v16088_v7 = vadd.f32 %v6827_v14, %v15911_v35  ;;  %v6829_v62 = vpop.f32.mrb[243].mxu1  ;;  %v13296_v35 = vld [vmem:[%s16964_s4 + $0x3a8] ss:$16 sps:$4 sm:$0xff]  }
 0x6cc   :  { %7039 = vmatmul.mubr.bf16.gmra.mrb[92].mxu1 %v13293_v41 }
 0x6cd   :  { %7046 = vmatprep.mubr.bf16.mxu1 %v13294_v24  ;;  %v13300_v24 = vld [vmem:[%s16964_s4 + $0x3ec] ss:$16 sps:$4 sm:$0xff]  }
 0x6cf   :  { %v6832_v34 = vpop.f32.mrb[244].mxu1 }
 0x6d0   :  { %v16100_v50 = vadd.f32 %v6832_v34, %v15913_v15  ;;  %v6834_v32 = vpop.f32.mrb[245].mxu1  ;;  %v13302_v34 = vld [vmem:[%s16964_s4 + $0x3e8] ss:$16 sps:$4 sm:$0xff]  }
 0x6d1   :  { %v6835_v4 = vpop.f32.mrb[246].mxu1 }
 0x6d2   :  { %v16108_v38 = vadd.f32 %v6835_v4, %v15921_v33  ;;  %v6837_v39 = vpop.f32.mrb[247].mxu1  ;;  %v6425_v33 = vpop.f32.mrb[77].mxu0 }
 0x6d3   :  { %v16123_v6 = vpop.f32.mrb[78].mxu0 }
 0x6d4   :  { %7047 = vmatmul.mubr.bf16.gmra.mrb[96].mxu1 %v13296_v35  ;;  %v6428_v62 = vpop.f32.mrb[79].mxu0 }
 0x6d5   :  { %7054 = vmatprep.mubr.bf16.mxu1 %v13297_v45  ;;  %v16130_v10 = vpop.f32.mrb[80].mxu0 }
 0x6d7   :  { %v6840_v15 = vpop.f32.mrb[248].mxu1 }
 0x6d8   :  { %v16118_v29 = vadd.f32 %v6840_v15, %v15923_v17  ;;  %v6842_v41 = vpop.f32.mrb[249].mxu1 }
 0x6d9   :  { %v6843_v16 = vpop.f32.mrb[250].mxu1  ;;  %v13305_v41 = vld [vmem:[%s16964_s4 + $0x408] ss:$16 sps:$4 sm:$0xff]  }
 0x6da   :  { %v16126_v14 = vadd.f32 %v6843_v16, %v15931_v36  ;;  %v6845_v27 = vpop.f32.mrb[251].mxu1  ;;  %v6433_v36 = vpop.f32.mrb[81].mxu0 }
 0x6db   :  { %v16141_v4 = vpop.f32.mrb[82].mxu0 }
 0x6dc   :  { %7055 = vmatmul.mubr.bf16.gmra.mrb[100].mxu1 %v13299_v3  ;;  %v6436_v15 = vpop.f32.mrb[83].mxu0 }
 0x6dd   :  { %7062 = vmatprep.mubr.bf16.mxu1 %v13300_v24 }
 0x6df   :  { %v6848_v17 = vpop.f32.mrb[252].mxu1 }
 0x6e0   :  { %v16136_v35 = vadd.f32 %v6848_v17, %v15933_v0  ;;  %v6850_v32 = vpop.f32.mrb[253].mxu1 }
 0x6e1   :  { %v6851_v45 = vpop.f32.mrb[254].mxu1 }
 0x6e2   :  { %v16144_v39 = vadd.f32 %v6851_v45, %v15941_v26  ;;  %v6853_v57 = vpop.f32.mrb[255].mxu1  ;;  %v13306_v26 = vld [vmem:[%s16964_s4 + $0x42c] ss:$16 sps:$4 sm:$0xff]  }
 0x6e4   :  { %7063 = vmatmul.mubr.bf16.gmra.mrb[104].mxu1 %v13302_v34 }
 0x6e5   :  { %7070 = vmatprep.mubr.bf16.mxu1 %v13303_v40 }
 0x6e7   :  { %v6856_v0 = vpop.f32.mrb[0].mxu1 }
 0x6e8   :  { %v16152_v33 = vadd.f32 %v6856_v0, %v15943_v52  ;;  %v6858_v24 = vpop.f32.mrb[1].mxu1  ;;  %v13308_v52 = vld [vmem:[%s16964_s4 + $0x428] ss:$16 sps:$4 sm:$0xff]  }
 0x6e9   :  { %v6859_v16 = vpop.f32.mrb[2].mxu1 }
 0x6ea   :  { %v16158_v27 = vadd.f32 %v6859_v16, %v15951_v48  ;;  %v6861_v62 = vpop.f32.mrb[3].mxu1  ;;  %v13309_v48 = vld [vmem:[%s16964_s4 + $0x44c] ss:$16 sps:$4 sm:$0xff]  }
 0x6ec   :  { %7071 = vmatmul.mubr.bf16.gmra.mrb[108].mxu1 %v13305_v41 }
 0x6ed   :  { %7078 = vmatprep.mubr.bf16.mxu1 %v13306_v26 }
 0x6ef   :  { %v6864_v34 = vpop.f32.mrb[4].mxu1 }
 0x6f0   :  { %v16166_v32 = vadd.f32 %v6864_v34, %v15953_v42  ;;  %v6866_v36 = vpop.f32.mrb[5].mxu1  ;;  %v13311_v42 = vld [vmem:[%s16964_s4 + $0x448] ss:$16 sps:$4 sm:$0xff]  }
 0x6f1   :  { %v6867_v40 = vpop.f32.mrb[6].mxu1 }
 0x6f2   :  { %v16172_v45 = vadd.f32 %v6867_v40, %v15961_v60  ;;  %v6869_v57 = vpop.f32.mrb[7].mxu1  ;;  %v13312_v60 = vld [vmem:[%s16964_s4 + $0x46c] ss:$16 sps:$4 sm:$0xff]  }
 0x6f4   :  { %7079 = vmatmul.mubr.bf16.gmra.mrb[112].mxu1 %v13308_v52 }
 0x6f5   :  { %7086 = vmatprep.mubr.bf16.mxu1 %v13309_v48 }
 0x6f7   :  { %v6872_v0 = vpop.f32.mrb[8].mxu1 }
 0x6f8   :  { %v16180_v41 = vadd.f32 %v6872_v0, %v15963_v44  ;;  %v6874_v24 = vpop.f32.mrb[9].mxu1  ;;  %v13314_v44 = vld [vmem:[%s16964_s4 + $0x468] ss:$16 sps:$4 sm:$0xff]  }
 0x6f9   :  { %v6875_v26 = vpop.f32.mrb[10].mxu1 }
 0x6fa   :  { %v16186_v16 = vadd.f32 %v6875_v26, %v15971_v30  ;;  %v6877_v62 = vpop.f32.mrb[11].mxu1  ;;  %v13315_v30 = vld [vmem:[%s16964_s4 + $0x48c] ss:$16 sps:$4 sm:$0xff]  }
 0x6fc   :  { %7087 = vmatmul.mubr.bf16.gmra.mrb[116].mxu1 %v13311_v42 }
 0x6fd   :  { %7094 = vmatprep.mubr.bf16.mxu1 %v13312_v60 }
 0x6ff   :  { %v6880_v52 = vpop.f32.mrb[12].mxu1 }
 0x700   :  { %v16194_v36 = vadd.f32 %v6880_v52, %v15973_v13  ;;  %v6882_v48 = vpop.f32.mrb[13].mxu1  ;;  %v13317_v13 = vld [vmem:[%s16964_s4 + $0x488] ss:$16 sps:$4 sm:$0xff]  }
 0x701   :  { %v6883_v40 = vpop.f32.mrb[14].mxu1 }
 0x702   :  { %v16200_v57 = vadd.f32 %v6883_v40, %v15981_v56  ;;  %v6885_v0 = vpop.f32.mrb[15].mxu1  ;;  %v13318_v56 = vld [vmem:[%s16964_s4 + $0x4ac] ss:$16 sps:$4 sm:$0xff]  }
 0x704   :  { %7095 = vmatmul.mubr.bf16.gmra.mrb[120].mxu1 %v13314_v44 }
 0x705   :  { %7102 = vmatprep.mubr.bf16.mxu1 %v13315_v30 }
 0x707   :  { %v6888_v24 = vpop.f32.mrb[16].mxu1 }
 0x708   :  { %v16208_v60 = vadd.f32 %v6888_v24, %v15983_v5  ;;  %v6890_v26 = vpop.f32.mrb[17].mxu1  ;;  %v13320_v5 = vld [vmem:[%s16964_s4 + $0x4a8] ss:$16 sps:$4 sm:$0xff]  }
 0x709   :  { %v6891_v62 = vpop.f32.mrb[18].mxu1 }
 0x70a   :  { %v16214_v52 = vadd.f32 %v6891_v62, %v15991_v55  ;;  %v6893_v44 = vpop.f32.mrb[19].mxu1  ;;  %v13321_v55 = vld [vmem:[%s16964_s4 + $0x4cc] ss:$16 sps:$4 sm:$0xff]  }
 0x70c   :  { %7103 = vmatmul.mubr.bf16.gmra.mrb[124].mxu1 %v13317_v13 }
 0x70d   :  { %7110 = vmatprep.mubr.bf16.mxu1 %v13318_v56  ;;  %v13339_v56 = vld [vmem:[%s16964_s4 + $0x58c] ss:$16 sps:$4 sm:$0xff]  }
 0x70f   :  { %v6896_v30 = vpop.f32.mrb[20].mxu1 }
 0x710   :  { %v16222_v40 = vadd.f32 %v6896_v30, %v15993_v49  ;;  %v6898_v0 = vpop.f32.mrb[21].mxu1  ;;  %v13323_v49 = vld [vmem:[%s16964_s4 + $0x4c8] ss:$16 sps:$4 sm:$0xff]  }
 0x711   :  { %v6899_v24 = vpop.f32.mrb[22].mxu1 }
 0x712   :  { %v16228_v13 = vadd.f32 %v6899_v24, %v16001_v61  ;;  %v6901_v26 = vpop.f32.mrb[23].mxu1  ;;  %v13324_v61 = vld [vmem:[%s16964_s4 + $0x4ec] ss:$16 sps:$4 sm:$0xff]  }
 0x714   :  { %7111 = vmatmul.mubr.bf16.gmra.mrb[128].mxu1 %v13320_v5 }
 0x715   :  { %7118 = vmatprep.mubr.bf16.mxu1 %v13321_v55 }
 0x717   :  { %v6904_v62 = vpop.f32.mrb[24].mxu1 }
 0x718   :  { %v16236_v44 = vadd.f32 %v6904_v62, %v16003_v47  ;;  %v6906_v30 = vpop.f32.mrb[25].mxu1  ;;  %v13326_v47 = vld [vmem:[%s16964_s4 + $0x4e8] ss:$16 sps:$4 sm:$0xff]  }
 0x719   :  { %v6907_v0 = vpop.f32.mrb[26].mxu1 }
 0x71a   :  { %v16242_v5 = vadd.f32 %v6907_v0, %v16011_v12  ;;  %v6909_v24 = vpop.f32.mrb[27].mxu1  ;;  %v13327_v12 = vld [vmem:[%s16964_s4 + $0x50c] ss:$16 sps:$4 sm:$0xff]  }
 0x71c   :  { %7119 = vmatmul.mubr.bf16.gmra.mrb[132].mxu1 %v13323_v49 }
 0x71d   :  { %7126 = vmatprep.mubr.bf16.mxu1 %v13324_v61 }
 0x71f   :  { %v6912_v26 = vpop.f32.mrb[28].mxu1 }
 0x720   :  { %v16250_v62 = vadd.f32 %v6912_v26, %v16013_v18  ;;  %v6914_v30 = vpop.f32.mrb[29].mxu1  ;;  %v13329_v18 = vld [vmem:[%s16964_s4 + $0x508] ss:$16 sps:$4 sm:$0xff]  }
 0x721   :  { %v6915_v0 = vpop.f32.mrb[30].mxu1 }
 0x722   :  { %v16256_v49 = vadd.f32 %v6915_v0, %v16021_v43  ;;  %v6917_v24 = vpop.f32.mrb[31].mxu1  ;;  %v13330_v43 = vld [vmem:[%s16964_s4 + $0x52c] ss:$16 sps:$4 sm:$0xff]  }
 0x724   :  { %7127 = vmatmul.mubr.bf16.gmra.mrb[136].mxu1 %v13326_v47 }
 0x725   :  { %7134 = vmatprep.mubr.bf16.mxu1 %v13327_v12 }
 0x727   :  { %v6920_v55 = vpop.f32.mrb[32].mxu1 }
 0x728   :  { %v16264_v26 = vadd.f32 %v6920_v55, %v16023_v23  ;;  %v6922_v30 = vpop.f32.mrb[33].mxu1  ;;  %v13332_v23 = vld [vmem:[%s16964_s4 + $0x528] ss:$16 sps:$4 sm:$0xff]  }
 0x729   :  { %v6923_v0 = vpop.f32.mrb[34].mxu1 }
 0x72a   :  { %v16270_v47 = vadd.f32 %v6923_v0, %v16031_v19  ;;  %v6925_v24 = vpop.f32.mrb[35].mxu1  ;;  %v13333_v19 = vld [vmem:[%s16964_s4 + $0x54c] ss:$16 sps:$4 sm:$0xff]  }
 0x72c   :  { %7135 = vmatmul.mubr.bf16.gmra.mrb[140].mxu1 %v13329_v18 }
 0x72d   :  { %7142 = vmatprep.mubr.bf16.mxu1 %v13330_v43 }
 0x72f   :  { %v6928_v61 = vpop.f32.mrb[36].mxu1 }
 0x730   :  { %v16278_v55 = vadd.f32 %v6928_v61, %v16033_v2  ;;  %v6930_v30 = vpop.f32.mrb[37].mxu1  ;;  %v13335_v2 = vld [vmem:[%s16964_s4 + $0x548] ss:$16 sps:$4 sm:$0xff]  }
 0x731   :  { %v6931_v0 = vpop.f32.mrb[38].mxu1 }
 0x732   :  { %v16284_v18 = vadd.f32 %v6931_v0, %v16041_v63  ;;  %v6933_v24 = vpop.f32.mrb[39].mxu1  ;;  %v13336_v63 = vld [vmem:[%s16964_s4 + $0x56c] ss:$16 sps:$4 sm:$0xff]  }
 0x734   :  { %7143 = vmatmul.mubr.bf16.gmra.mrb[144].mxu1 %v13332_v23 }
 0x735   :  { %7150 = vmatprep.mubr.bf16.mxu1 %v13333_v19  ;;  %v13342_v19 = vld [vmem:[%s16964_s4 + $0x5ac] ss:$16 sps:$4 sm:$0xff]  }
 0x737   :  { %v6936_v12 = vpop.f32.mrb[40].mxu1 }
 0x738   :  { %v16292_v61 = vadd.f32 %v6936_v12, %v16043_v31  ;;  %v6938_v30 = vpop.f32.mrb[41].mxu1  ;;  %v13338_v31 = vld [vmem:[%s16964_s4 + $0x568] ss:$16 sps:$4 sm:$0xff]  }
 0x739   :  { %v6939_v0 = vpop.f32.mrb[42].mxu1 }
 0x73a   :  { %v16298_v23 = vadd.f32 %v6939_v0, %v16051_v8  ;;  %v6941_v24 = vpop.f32.mrb[43].mxu1 }
 0x73c   :  { %7151 = vmatmul.mubr.bf16.gmra.mrb[148].mxu1 %v13335_v2 }
 0x73d   :  { %7158 = vmatprep.mubr.bf16.mxu1 %v13336_v63 }
 0x73f   :  { %v6944_v43 = vpop.f32.mrb[44].mxu1 }
 0x740   :  { %v6945_v12 = vadd.f32 %v6944_v43, %v16053_v46  ;;  %v6946_v30 = vpop.f32.mrb[45].mxu1  ;;  %v13341_v46 = vld [vmem:[%s16964_s4 + $0x588] ss:$16 sps:$4 sm:$0xff]  }
 0x741   :  { %v6947_v8 = vpop.f32.mrb[46].mxu1 }
 0x742   :  { %v6948_v0 = vadd.f32 %v6947_v8, %v16064_v22  ;;  %v6949_v2 = vpop.f32.mrb[47].mxu1 }
 0x744   :  { %7159 = vmatmul.mubr.bf16.gmra.mrb[152].mxu1 %v13338_v31  ;;  %v7344_v24 = vpack.c.bf16 %v6948_v0, %v6945_v12  ;;  %v13344_v0 = vld [vmem:[%s16964_s4 + $0x5a8] ss:$16 sps:$4 sm:$0xff]  }
 0x745   :  { %7166 = vmatprep.mubr.bf16.mxu1 %v13339_v56 }
 0x746   :  { %12027 = vmatprep.mubr.msk.bf16.mxu0 %vm7362_vm4, %v7344_v24 }
 0x747   :  { %v6952_v63 = vpop.f32.mrb[48].mxu1 }
 0x748   :  { %v6953_v43 = vadd.f32 %v6952_v63, %v16071_v11  ;;  %v6954_v30 = vpop.f32.mrb[49].mxu1  ;;  %v13345_v63 = vld [vmem:[%s16964_s4 + $0x5cc] ss:$16 sps:$4 sm:$0xff]  }
 0x749   :  { %v6955_v22 = vpop.f32.mrb[50].mxu1  ;;  %v13347_v30 = vld [vmem:[%s16964_s4 + $0x5c8] ss:$16 sps:$4 sm:$0xff]  }
 0x74a   :  { %v6956_v8 = vadd.f32 %v6955_v22, %v16082_v9  ;;  %v6957_v31 = vpop.f32.mrb[51].mxu1 }
 0x74b   :  { %v13348_v31 = vld [vmem:[%s16964_s4 + $0x5ec] ss:$16 sps:$4 sm:$0xff]  }
 0x74c   :  { %7167 = vmatmul.mubr.bf16.gmra.mrb[156].mxu1 %v13341_v46  ;;  %v7345_v56 = vpack.c.bf16 %v6956_v8, %v6953_v43 }
 0x74d   :  { %7174 = vmatprep.mubr.bf16.mxu1 %v13342_v19 }
 0x74e   :  { %12028 = vmatmul.mubr.msk.bf16.vlgmr.msra.gmra.mrb[84].mxu0 %vm7362_vm4, %v7345_v56 }
 0x74f   :  { %v6960_v12 = vpop.f32.mrb[52].mxu1 }
 0x750   :  { %v6961_v11 = vadd.f32 %v6960_v12, %v16094_v54  ;;  %v6962_v2 = vpop.f32.mrb[53].mxu1 }
 0x751   :  { %v6963_v24 = vpop.f32.mrb[54].mxu1 }
 0x752   :  { %v6964_v9 = vadd.f32 %v6963_v24, %v16105_v59  ;;  %v6965_v46 = vpop.f32.mrb[55].mxu1 }
 0x754   :  { %7175 = vmatmul.mubr.bf16.gmra.mrb[160].mxu1 %v13344_v0  ;;  %v7346_v19 = vpack.c.bf16 %v6964_v9, %v6961_v11 }
 0x755   :  { %7182 = vmatprep.mubr.bf16.mxu1 %v13345_v63  ;;  %v13351_v63 = vld [vmem:[%s16964_s4 + $0x60c] ss:$16 sps:$4 sm:$0xff]  }
 0x756   :  { %12031 = vmatprep.mubr.msk.bf16.mxu0 %vm7362_vm4, %v7346_v19 }
 0x757   :  { %v6968_v43 = vpop.f32.mrb[56].mxu1 }
 0x758   :  { %v6969_v54 = vadd.f32 %v6968_v43, %v16112_v58  ;;  %v6970_v22 = vpop.f32.mrb[57].mxu1  ;;  %v13350_v58 = vld [vmem:[%s16964_s4 + $0x5e8] ss:$16 sps:$4 sm:$0xff]  }
 0x759   :  { %v6971_v8 = vpop.f32.mrb[58].mxu1  ;;  %v13353_v43 = vld [vmem:[%s16964_s4 + $0x608] ss:$16 sps:$4 sm:$0xff]  }
 0x75a   :  { %v6972_v59 = vadd.f32 %v6971_v8, %v16123_v6  ;;  %v6973_v56 = vpop.f32.mrb[59].mxu1 }
 0x75c   :  { %7183 = vmatmul.mubr.bf16.gmra.mrb[164].mxu1 %v13347_v30  ;;  %v7347_v12 = vpack.c.bf16 %v6972_v59, %v6969_v54  ;;  %v13354_v54 = vld [vmem:[%s16964_s4 + $0x62c] ss:$16 sps:$4 sm:$0xff]   ;;  %v13356_v59 = vld [vmem:[%s16964_s4 + $0x628] ss:$16 sps:$4 sm:$0xff]  }
 0x75d   :  { %7190 = vmatprep.mubr.bf16.mxu1 %v13348_v31 }
 0x75e   :  { %12032 = vmatmul.mubr.msk.bf16.gmra.mrb[88].mxu0 %vm7362_vm4, %v7347_v12  ;;  %v13357_v12 = vld [vmem:[%s16964_s4 + $0x64c] ss:$16 sps:$4 sm:$0xff]  }
 0x75f   :  { %v6976_v0 = vpop.f32.mrb[60].mxu1 }
 0x760   :  { %v6977_v11 = vadd.f32 %v6976_v0, %v16130_v10  ;;  %v6978_v2 = vpop.f32.mrb[61].mxu1 }
 0x761   :  { %v6979_v24 = vpop.f32.mrb[62].mxu1 }
 0x762   :  { %v6980_v6 = vadd.f32 %v6979_v24, %v16141_v4  ;;  %v6981_v9 = vpop.f32.mrb[63].mxu1  ;;  %v13359_v24 = vld [vmem:[%s16964_s4 + $0x648] ss:$16 sps:$4 sm:$0xff]  }
 0x764   :  { %7191 = vmatmul.mubr.bf16.gmra.mrb[168].mxu1 %v13350_v58  ;;  %v7348_v46 = vpack.c.bf16 %v6980_v6, %v6977_v11  ;;  %v13360_v6 = vld [vmem:[%s16964_s4 + $0x66c] ss:$16 sps:$4 sm:$0xff]  }
 0x765   :  { %7198 = vmatprep.mubr.bf16.mxu1 %v13351_v63 }
 0x766   :  { %12035 = vmatprep.mubr.msk.bf16.mxu0 %vm7362_vm4, %v7348_v46 }
 0x767   :  { %v6984_v19 = vpop.f32.mrb[64].mxu1 }
 0x768   :  { %v6986_v10 = vpop.f32.mrb[65].mxu1 }
 0x769   :  { %v6987_v30 = vpop.f32.mrb[66].mxu1 }
 0x76a   :  { %v7349_v22 = vpack.c.bf16 %v6987_v30, %v6984_v19  ;;  %v6989_v8 = vpop.f32.mrb[67].mxu1 }
 0x76c   :  { %7199 = vmatmul.mubr.bf16.gmra.mrb[172].mxu1 %v13353_v43  ;;  %12036 = vmatmul.mubr.msk.bf16.gmra.mrb[92].mxu0 %vm7362_vm4, %v7349_v22  ;;  %v13362_v43 = vld [vmem:[%s16964_s4 + $0x668] ss:$16 sps:$4 sm:$0xff]  }
 0x76d   :  { %7206 = vmatprep.mubr.bf16.mxu1 %v13354_v54  ;;  %v13363_v54 = vld [vmem:[%s16964_s4 + $0x68c] ss:$16 sps:$4 sm:$0xff]  }
 0x76f   :  { %v6992_v4 = vpop.f32.mrb[68].mxu1 }
 0x770   :  { %v6994_v31 = vpop.f32.mrb[69].mxu1 }
 0x771   :  { %v6995_v56 = vpop.f32.mrb[70].mxu1 }
 0x772   :  { %v7350_v0 = vpack.c.bf16 %v6995_v56, %v6992_v4  ;;  %v6997_v11 = vpop.f32.mrb[71].mxu1 }
 0x774   :  { %7207 = vmatmul.mubr.bf16.gmra.mrb[176].mxu1 %v13356_v59  ;;  %12039 = vmatprep.mubr.msk.bf16.mxu0 %vm7362_vm4, %v7350_v0  ;;  %v13365_v59 = vld [vmem:[%s16964_s4 + $0x688] ss:$16 sps:$4 sm:$0xff]  }
 0x775   :  { %7214 = vmatprep.mubr.bf16.mxu1 %v13357_v12  ;;  %v13366_v12 = vld [vmem:[%s16964_s4 + $0x6ac] ss:$16 sps:$4 sm:$0xff]  }
 0x777   :  { %v7000_v2 = vpop.f32.mrb[72].mxu1 }
 0x778   :  { %v7002_v58 = vpop.f32.mrb[73].mxu1 }
 0x779   :  { %v7003_v63 = vpop.f32.mrb[74].mxu1 }
 0x77a   :  { %v7351_v9 = vpack.c.bf16 %v7003_v63, %v7000_v2  ;;  %v7005_v46 = vpop.f32.mrb[75].mxu1 }
 0x77c   :  { %7215 = vmatmul.mubr.bf16.gmra.mrb[180].mxu1 %v13359_v24  ;;  %12040 = vmatmul.mubr.msk.bf16.gmra.mrb[96].mxu0 %vm7362_vm4, %v7351_v9  ;;  %v13368_v24 = vld [vmem:[%s16964_s4 + $0x6a8] ss:$16 sps:$4 sm:$0xff]  }
 0x77d   :  { %7222 = vmatprep.mubr.bf16.mxu1 %v13360_v6  ;;  %v13369_v6 = vld [vmem:[%s16964_s4 + $0x6cc] ss:$16 sps:$4 sm:$0xff]  }
 0x77f   :  { %v7008_v19 = vpop.f32.mrb[76].mxu1 }
 0x780   :  { %v7010_v10 = vpop.f32.mrb[77].mxu1 }
 0x781   :  { %v7011_v30 = vpop.f32.mrb[78].mxu1 }
 0x782   :  { %v7352_v22 = vpack.c.bf16 %v7011_v30, %v7008_v19  ;;  %v7013_v8 = vpop.f32.mrb[79].mxu1 }
 0x784   :  { %7223 = vmatmul.mubr.bf16.gmra.mrb[184].mxu1 %v13362_v43  ;;  %12043 = vmatprep.mubr.msk.bf16.mxu0 %vm7362_vm4, %v7352_v22  ;;  %v13371_v43 = vld [vmem:[%s16964_s4 + $0x6c8] ss:$16 sps:$4 sm:$0xff]  }
 0x785   :  { %7230 = vmatprep.mubr.bf16.mxu1 %v13363_v54  ;;  %v13372_v54 = vld [vmem:[%s16964_s4 + $0x6ec] ss:$16 sps:$4 sm:$0xff]  }
 0x787   :  { %v7016_v4 = vpop.f32.mrb[80].mxu1 }
 0x788   :  { %v7018_v31 = vpop.f32.mrb[81].mxu1 }
 0x789   :  { %v7019_v56 = vpop.f32.mrb[82].mxu1 }
 0x78a   :  { %v7353_v0 = vpack.c.bf16 %v7019_v56, %v7016_v4  ;;  %v7021_v11 = vpop.f32.mrb[83].mxu1 }
 0x78c   :  { %7231 = vmatmul.mubr.bf16.gmra.mrb[188].mxu1 %v13365_v59  ;;  %12044 = vmatmul.mubr.msk.bf16.gmra.mrb[100].mxu0 %vm7362_vm4, %v7353_v0  ;;  %v13374_v59 = vld [vmem:[%s16964_s4 + $0x6e8] ss:$16 sps:$4 sm:$0xff]  }
 0x78d   :  { %7238 = vmatprep.mubr.bf16.mxu1 %v13366_v12  ;;  %v13375_v12 = vld [vmem:[%s16964_s4 + $0x70c] ss:$16 sps:$4 sm:$0xff]  }
 0x78f   :  { %v7024_v2 = vpop.f32.mrb[84].mxu1 }
 0x790   :  { %v7026_v58 = vpop.f32.mrb[85].mxu1 }
 0x791   :  { %v7027_v63 = vpop.f32.mrb[86].mxu1 }
 0x792   :  { %v7354_v9 = vpack.c.bf16 %v7027_v63, %v7024_v2  ;;  %v7029_v46 = vpop.f32.mrb[87].mxu1 }
 0x794   :  { %7239 = vmatmul.mubr.bf16.gmra.mrb[192].mxu1 %v13368_v24  ;;  %12047 = vmatprep.mubr.msk.bf16.mxu0 %vm7362_vm4, %v7354_v9  ;;  %v13377_v24 = vld [vmem:[%s16964_s4 + $0x708] ss:$16 sps:$4 sm:$0xff]  }
 0x795   :  { %7246 = vmatprep.mubr.bf16.mxu1 %v13369_v6  ;;  %v13378_v6 = vld [vmem:[%s16964_s4 + $0x72c] ss:$16 sps:$4 sm:$0xff]  }
 0x797   :  { %v7032_v19 = vpop.f32.mrb[88].mxu1 }
 0x798   :  { %v7034_v10 = vpop.f32.mrb[89].mxu1 }
 0x799   :  { %v7035_v30 = vpop.f32.mrb[90].mxu1 }
 0x79a   :  { %v7355_v22 = vpack.c.bf16 %v7035_v30, %v7032_v19  ;;  %v7037_v8 = vpop.f32.mrb[91].mxu1 }
 0x79c   :  { %7247 = vmatmul.mubr.bf16.gmra.mrb[196].mxu1 %v13371_v43  ;;  %12048 = vmatmul.mubr.msk.bf16.gmra.mrb[104].mxu0 %vm7362_vm4, %v7355_v22  ;;  %v13380_v43 = vld [vmem:[%s16964_s4 + $0x728] ss:$16 sps:$4 sm:$0xff]  }
 0x79d   :  { %7254 = vmatprep.mubr.bf16.mxu1 %v13372_v54  ;;  %v13381_v54 = vld [vmem:[%s16964_s4 + $0x74c] ss:$16 sps:$4 sm:$0xff]  }
 0x79f   :  { %v7040_v4 = vpop.f32.mrb[92].mxu1 }
 0x7a0   :  { %v7042_v31 = vpop.f32.mrb[93].mxu1 }
 0x7a1   :  { %v7043_v56 = vpop.f32.mrb[94].mxu1 }
 0x7a2   :  { %v7356_v0 = vpack.c.bf16 %v7043_v56, %v7040_v4  ;;  %v7045_v11 = vpop.f32.mrb[95].mxu1 }
 0x7a4   :  { %7255 = vmatmul.mubr.bf16.gmra.mrb[200].mxu1 %v13374_v59  ;;  %12051 = vmatprep.mubr.msk.bf16.mxu0 %vm7362_vm4, %v7356_v0  ;;  %v13383_v59 = vld [vmem:[%s16964_s4 + $0x748] ss:$16 sps:$4 sm:$0xff]  }
 0x7a5   :  { %7262 = vmatprep.mubr.bf16.mxu1 %v13375_v12  ;;  %v13384_v12 = vld [vmem:[%s16964_s4 + $0x76c] ss:$16 sps:$4 sm:$0xff]  }
 0x7a7   :  { %v7048_v2 = vpop.f32.mrb[96].mxu1 }
 0x7a8   :  { %v7050_v58 = vpop.f32.mrb[97].mxu1 }
 0x7a9   :  { %v7051_v63 = vpop.f32.mrb[98].mxu1 }
 0x7aa   :  { %v7357_v9 = vpack.c.bf16 %v7051_v63, %v7048_v2  ;;  %v7053_v46 = vpop.f32.mrb[99].mxu1 }
 0x7ac   :  { %7263 = vmatmul.mubr.bf16.gmra.mrb[204].mxu1 %v13377_v24  ;;  %12052 = vmatmul.mubr.msk.bf16.gmra.mrb[108].mxu0 %vm7362_vm4, %v7357_v9  ;;  %v13386_v24 = vld [vmem:[%s16964_s4 + $0x768] ss:$16 sps:$4 sm:$0xff]  }
 0x7ad   :  { %7270 = vmatprep.mubr.bf16.mxu1 %v13378_v6  ;;  %v13387_v6 = vld [vmem:[%s16964_s4 + $0x78c] ss:$16 sps:$4 sm:$0xff]  }
 0x7af   :  { %v7056_v19 = vpop.f32.mrb[100].mxu1 }
 0x7b0   :  { %v7058_v10 = vpop.f32.mrb[101].mxu1 }
 0x7b1   :  { %v7059_v30 = vpop.f32.mrb[102].mxu1  ;;  %v10932_v10 = vld [vmem:[%s16966_s6 + $0xc] sm:$0xf] }
 0x7b2   :  { %v7358_v22 = vpack.c.bf16 %v7059_v30, %v7056_v19  ;;  %v7061_v8 = vpop.f32.mrb[103].mxu1  ;;  %v13389_v30 = vld [vmem:[%s16964_s4 + $0x788] ss:$16 sps:$4 sm:$0xff]   ;;  %12872 = vmatprep.subr.msk.bf16.mxu0 %vm7411_vm3, %v10932_v10 }
 0x7b3   :  { %v13390_v8 = vld [vmem:[%s16964_s4 + $0x7ac] ss:$16 sps:$4 sm:$0xff]  }
 0x7b4   :  { %7271 = vmatmul.mubr.bf16.gmra.mrb[208].mxu1 %v13380_v43  ;;  %12055 = vmatprep.mubr.msk.bf16.mxu0 %vm7362_vm4, %v7358_v22 }
 0x7b5   :  { %7278 = vmatprep.mubr.bf16.mxu1 %v13381_v54  ;;  %v7661_v54 = vsel %vm7411_vm3, %v10932_v10, 0  ;;  %v13395_v10 = vld [vmem:[%s16964_s4 + $0x7c8] ss:$16 sps:$4 sm:$0xff]  }
 0x7b6   :  { %12060 = vmatpush3.bf16.msra.mxu0 %v7661_v54 }
 0x7b7   :  { %v7064_v4 = vpop.f32.mrb[104].mxu1 }
 0x7b8   :  { %v7066_v31 = vpop.f32.mrb[105].mxu1 }
 0x7b9   :  { %v7067_v56 = vpop.f32.mrb[106].mxu1 }
 0x7ba   :  { %v7359_v0 = vpack.c.bf16 %v7067_v56, %v7064_v4  ;;  %v7069_v11 = vpop.f32.mrb[107].mxu1 }
 0x7bb   :  { %v13393_v11 = vld [vmem:[%s16964_s4 + $0x7cc] ss:$16 sps:$4 sm:$0xff]  }
 0x7bc   :  { %7279 = vmatmul.mubr.bf16.gmra.mrb[212].mxu1 %v13383_v59  ;;  %12056 = vmatmul.mubr.msk.bf16.gmra.mrb[112].mxu0 %vm7362_vm4, %v7359_v0 }
 0x7bd   :  { %7286 = vmatprep.mubr.bf16.mxu1 %v13384_v12  ;;  %v13392_v12 = vld [vmem:[%s16964_s4 + $0x7a8] ss:$16 sps:$4 sm:$0xff]  }
 0x7bf   :  { %v16424_v2 = vpop.f32.mrb[108].mxu1 }
 0x7c0   :  { %v7074_v58 = vpop.f32.mrb[109].mxu1 }
 0x7c1   :  { %v16429_v63 = vpop.f32.mrb[110].mxu1 }
 0x7c2   :  { %v7077_v46 = vpop.f32.mrb[111].mxu1 }
 0x7c4   :  { %7287 = vmatmul.mubr.bf16.gmra.mrb[216].mxu1 %v13386_v24 }
 0x7c5   :  { %7294 = vmatprep.mubr.bf16.mxu1 %v13387_v6 }
 0x7c7   :  { %v16436_v19 = vpop.f32.mrb[112].mxu1 }
 0x7c8   :  { %v7082_v43 = vpop.f32.mrb[113].mxu1 }
 0x7c9   :  { %v16446_v22 = vpop.f32.mrb[114].mxu1 }
 0x7ca   :  { %v7085_v31 = vpop.f32.mrb[115].mxu1 }
 0x7cc   :  { %7295 = vmatmul.mubr.bf16.gmra.mrb[220].mxu1 %v13389_v30  ;;  %v13396_v30 = vld [vmem:[%s16964_s4 + $0x7ec] ss:$16 sps:$4 sm:$0xff]  }
 0x7cd   :  { %7302 = vmatprep.mubr.bf16.mxu1 %v13390_v8 }
 0x7cf   :  { %v16453_v59 = vpop.f32.mrb[116].mxu1 }
 0x7d0   :  { %v7090_v56 = vpop.f32.mrb[117].mxu1 }
 0x7d1   :  { %v16458_v0 = vpop.f32.mrb[118].mxu1 }
 0x7d2   :  { %v7093_v24 = vpop.f32.mrb[119].mxu1 }
 0x7d4   :  { %7303 = vmatmul.mubr.bf16.gmra.mrb[224].mxu1 %v13392_v12  ;;  %v13398_v12 = vld [vmem:[%s16964_s4 + $0x7e8] ss:$16 sps:$4 sm:$0xff]  }
 0x7d5   :  { %7310 = vmatprep.mubr.bf16.mxu1 %v13393_v11 }
 0x7d7   :  { %v16465_v6 = vpop.f32.mrb[120].mxu1 }
 0x7d8   :  { %v7098_v46 = vpop.f32.mrb[121].mxu1 }
 0x7d9   :  { %v16470_v43 = vpop.f32.mrb[122].mxu1 }
 0x7da   :  { %v7101_v8 = vpop.f32.mrb[123].mxu1 }
 0x7dc   :  { %7311 = vmatmul.mubr.bf16.gmra.mrb[228].mxu1 %v13395_v10 }
 0x7dd   :  { %7318 = vmatprep.mubr.bf16.mxu1 %v13396_v30 }
 0x7df   :  { %v16477_v31 = vpop.f32.mrb[124].mxu1 }
 0x7e0   :  { %v7106_v56 = vpop.f32.mrb[125].mxu1 }
 0x7e1   :  { %v16482_v11 = vpop.f32.mrb[126].mxu1 }
 0x7e2   :  { %v7109_v46 = vpop.f32.mrb[127].mxu1 }
 0x7e4   :  { %7319 = vmatmul.mubr.bf16.gmra.mrb[232].mxu1 %v13398_v12 }
 0x7e7   :  { %v16486_v58 = vpop.f32.mrb[128].mxu1 }
 0x7e8   :  { %v7114_v54 = vpop.f32.mrb[129].mxu1 }
 0x7e9   :  { %v16488_v8 = vpop.f32.mrb[130].mxu1 }
 0x7ea   :  { %v7117_v30 = vpop.f32.mrb[131].mxu1 }
 0x7ef   :  { %v16492_v56 = vpop.f32.mrb[132].mxu1 }
 0x7f0   :  { %v7122_v4 = vpop.f32.mrb[133].mxu1 }
 0x7f1   :  { %v16494_v9 = vpop.f32.mrb[134].mxu1 }
 0x7f2   :  { %v7125_v24 = vpop.f32.mrb[135].mxu1 }
 0x7f7   :  { %v16498_v46 = vpop.f32.mrb[136].mxu1 }
 0x7f8   :  { %17287 = vst [vmem:[#allocation8_spill] sm:$0xff] %v16498_v46  ;;  %v7130_v12 = vpop.f32.mrb[137].mxu1 }
 0x7f9   :  { %v16500_v42 = vpop.f32.mrb[138].mxu1 }
 0x7fa   :  { %17288 = vst [vmem:[#allocation12_spill] sm:$0xff] %v16500_v42  ;;  %v7133_v34 = vpop.f32.mrb[139].mxu1 }
 0x7ff   :  { %v16504_v10 = vpop.f32.mrb[140].mxu1 }
 0x800   :  { %17289 = vst [vmem:[#allocation10_spill] sm:$0xff] %v16504_v10  ;;  %v7138_v30 = vpop.f32.mrb[141].mxu1 }
 0x801   :  { %v16506_v15 = vpop.f32.mrb[142].mxu1 }
 0x802   :  { %17290 = vst [vmem:[#allocation11_spill] sm:$0xff] %v16506_v15  ;;  %v7141_v17 = vpop.f32.mrb[143].mxu1 }
 0x807   :  { %v16510_v48 = vpop.f32.mrb[144].mxu1 }
 0x808   :  { %17291 = vst [vmem:[#allocation9_spill] sm:$0xff] %v16510_v48  ;;  %v7146_v24 = vpop.f32.mrb[145].mxu1 }
 0x809   :  { %v16512_v3 = vpop.f32.mrb[146].mxu1 }
 0x80a   :  { %17292 = vst [vmem:[#allocation16_spill] sm:$0xff] %v16512_v3  ;;  %v7149_v37 = vpop.f32.mrb[147].mxu1 }
 0x80f   :  { %v16516_v54 = vpop.f32.mrb[148].mxu1 }
 0x810   :  { %17293 = vst [vmem:[#allocation14_spill] sm:$0xff] %v16516_v54  ;;  %v7154_v34 = vpop.f32.mrb[149].mxu1 }
 0x811   :  { %v16518_v20 = vpop.f32.mrb[150].mxu1 }
 0x812   :  { %17294 = vst [vmem:[#allocation15_spill] sm:$0xff] %v16518_v20  ;;  %v7157_v51 = vpop.f32.mrb[151].mxu1 }
 0x817   :  { %v16522_v4 = vpop.f32.mrb[152].mxu1 }
 0x818   :  { %17295 = vst [vmem:[#allocation13_spill] sm:$0xff] %v16522_v4  ;;  %v7162_v17 = vpop.f32.mrb[153].mxu1 }
 0x819   :  { %v16524_v21 = vpop.f32.mrb[154].mxu1 }
 0x81a   :  { %17296 = vst [vmem:[#allocation20_spill] sm:$0xff] %v16524_v21  ;;  %v7165_v10 = vpop.f32.mrb[155].mxu1 }
 0x81f   :  { %v16528_v12 = vpop.f32.mrb[156].mxu1 }
 0x820   :  { %17297 = vst [vmem:[#allocation18_spill] sm:$0xff] %v16528_v12  ;;  %v7170_v37 = vpop.f32.mrb[157].mxu1 }
 0x821   :  { %v16530_v48 = vpop.f32.mrb[158].mxu1 }
 0x822   :  { %17298 = vst [vmem:[#allocation19_spill] sm:$0xff] %v16530_v48  ;;  %v7173_v3 = vpop.f32.mrb[159].mxu1 }
 0x827   :  { %v16534_v30 = vpop.f32.mrb[160].mxu1 }
 0x828   :  { %17299 = vst [vmem:[#allocation17_spill] sm:$0xff] %v16534_v30  ;;  %v7178_v51 = vpop.f32.mrb[161].mxu1 }
 0x829   :  { %v16536_v54 = vpop.f32.mrb[162].mxu1 }
 0x82a   :  { %17300 = vst [vmem:[#allocation24_spill] sm:$0xff] %v16536_v54  ;;  %v7181_v20 = vpop.f32.mrb[163].mxu1 }
 0x82b   :  { %v7343_v20 = vld [vmem:[%s16966_s6] sm:$0xf] }
 0x82c   :  { %12873 = vmatprep.subr.msk.bf16.mxu0 %vm7411_vm3, %v7343_v20 }
 0x82f   :  { %v16540_v24 = vpop.f32.mrb[164].mxu1 }
 0x830   :  { %17301 = vst [vmem:[#allocation22_spill] sm:$0xff] %v16540_v24  ;;  %v7186_v10 = vpop.f32.mrb[165].mxu1 }
 0x831   :  { %v16542_v4 = vpop.f32.mrb[166].mxu1 }
 0x832   :  { %17302 = vst [vmem:[#allocation23_spill] sm:$0xff] %v16542_v4  ;;  %v7189_v21 = vpop.f32.mrb[167].mxu1 }
 0x837   :  { %v16546_v34 = vpop.f32.mrb[168].mxu1 }
 0x838   :  { %17303 = vst [vmem:[#allocation21_spill] sm:$0xff] %v16546_v34  ;;  %v7194_v3 = vpop.f32.mrb[169].mxu1 }
 0x839   :  { %v16548_v12 = vpop.f32.mrb[170].mxu1 }
 0x83a   :  { %17304 = vst [vmem:[#allocation28_spill] sm:$0xff] %v16548_v12  ;;  %v7197_v48 = vpop.f32.mrb[171].mxu1 }
 0x83b   :  { %v7873_v48 = vsel %vm7411_vm3, %v7343_v20, 0 }
 0x83f   :  { %v7200_v10 = vpop.f32.mrb[172].mxu1 }
 0x840   :  { %v7202_v17 = vpop.f32.mrb[173].mxu1 }
 0x841   :  { %v7203_v30 = vpop.f32.mrb[174].mxu1 }
 0x842   :  { %v7594_v37 = vpack.c.bf16 %v7203_v30, %v7200_v10  ;;  %v7205_v21 = vpop.f32.mrb[175].mxu1 }
 0x844   :  { %12061 = vmatprep.mubr.msk.bf16.mxu0 %vm7362_vm4, %v7594_v37 }
 0x847   :  { %v7208_v3 = vpop.f32.mrb[176].mxu1 }
 0x848   :  { %v7210_v24 = vpop.f32.mrb[177].mxu1 }
 0x849   :  { %v7211_v4 = vpop.f32.mrb[178].mxu1 }
 0x84a   :  { %v7595_v54 = vpack.c.bf16 %v7211_v4, %v7208_v3  ;;  %v7213_v15 = vpop.f32.mrb[179].mxu1 }
 0x84c   :  { %12062 = vmatmul.mubr.msk.bf16.vlgmr.msra.gmra.mrb[84].mxu0 %vm7362_vm4, %v7595_v54 }
 0x84d   :  { %12094 = vmatpush3.bf16.msra.mxu0 %v7873_v48 }
 0x84f   :  { %v7216_v51 = vpop.f32.mrb[180].mxu1 }
 0x850   :  { %v7218_v34 = vpop.f32.mrb[181].mxu1 }
 0x851   :  { %v7219_v12 = vpop.f32.mrb[182].mxu1 }
 0x852   :  { %v7596_v46 = vpack.c.bf16 %v7219_v12, %v7216_v51  ;;  %v7221_v17 = vpop.f32.mrb[183].mxu1 }
 0x854   :  { %12065 = vmatprep.mubr.msk.bf16.mxu0 %vm7362_vm4, %v7596_v46 }
 0x857   :  { %v7224_v30 = vpop.f32.mrb[184].mxu1 }
 0x858   :  { %v7226_v10 = vpop.f32.mrb[185].mxu1 }
 0x859   :  { %v7227_v37 = vpop.f32.mrb[186].mxu1 }
 0x85a   :  { %v7597_v21 = vpack.c.bf16 %v7227_v37, %v7224_v30  ;;  %v7229_v24 = vpop.f32.mrb[187].mxu1 }
 0x85c   :  { %12066 = vmatmul.mubr.msk.bf16.gmra.mrb[88].mxu0 %vm7362_vm4, %v7597_v21 }
 0x85f   :  { %v7232_v15 = vpop.f32.mrb[188].mxu1 }
 0x860   :  { %v7234_v4 = vpop.f32.mrb[189].mxu1 }
 0x861   :  { %v7235_v20 = vpop.f32.mrb[190].mxu1 }
 0x862   :  { %v7598_v3 = vpack.c.bf16 %v7235_v20, %v7232_v15  ;;  %v7237_v54 = vpop.f32.mrb[191].mxu1 }
 0x864   :  { %12069 = vmatprep.mubr.msk.bf16.mxu0 %vm7362_vm4, %v7598_v3  ;;  %v10931_v3 = vld [vmem:[%s16966_s6 + $0x8] sm:$0xf]  ;;  %s10259_s6 = sshll.u32 %s13566_s16, 4  ;;  %s10260_s6 = int_to_ptr.vmem [resolvable:$true] %s10259_s6 }
 0x865   :  { %12874 = vmatprep.subr.msk.bf16.mxu0 %vm7411_vm3, %v10931_v3  ;;  %s13533_s17 = scalar_lea.vmem %s10260_s6, 128  ;;  %p13538_p9 = scmp.lt.s32.totalorder %s10260_s6, %s10260_s6 }
 0x866   :  { %p13534_p8 = scmp.ne.s32.totalorder %s10260_s6, %s13533_s17  ;;  %p13539_p10 = scmp.lt.s32.totalorder %s13533_s17, %s13533_s17 }
 0x867   :  { %v7240_v34 = vpop.f32.mrb[192].mxu1 }
 0x868   :  { %v7242_v48 = vpop.f32.mrb[193].mxu1  ;;  %p13540_p11 = por %p13539_p10, %p13538_p9 }
 0x869   :  { %v7243_v12 = vpop.f32.mrb[194].mxu1 }
 0x86a   :  { %v7599_v51 = vpack.c.bf16 %v7243_v12, %v7240_v34  ;;  %v7245_v17 = vpop.f32.mrb[195].mxu1  ;;  %p13541_p12 = pnand %p13540_p11, %p13534_p8 }
 0x86c   :  { %12070 = vmatmul.mubr.msk.bf16.gmra.mrb[92].mxu0 %vm7362_vm4, %v7599_v51 }
 0x86f   :  { %v7248_v46 = vpop.f32.mrb[196].mxu1 }
 0x870   :  { %v7250_v10 = vpop.f32.mrb[197].mxu1 }
 0x871   :  { %v7251_v30 = vpop.f32.mrb[198].mxu1 }
 0x872   :  { %v7600_v37 = vpack.c.bf16 %v7251_v30, %v7248_v46  ;;  %v7253_v24 = vpop.f32.mrb[199].mxu1 }
 0x874   :  { %12073 = vmatprep.mubr.msk.bf16.mxu0 %vm7362_vm4, %v7600_v37 }
 0x877   :  { %v7256_v21 = vpop.f32.mrb[200].mxu1 }
 0x878   :  { %v7258_v4 = vpop.f32.mrb[201].mxu1 }
 0x879   :  { %v7259_v15 = vpop.f32.mrb[202].mxu1 }
 0x87a   :  { %v7601_v20 = vpack.c.bf16 %v7259_v15, %v7256_v21  ;;  %v7261_v54 = vpop.f32.mrb[203].mxu1 }
 0x87c   :  { %12074 = vmatmul.mubr.msk.bf16.gmra.mrb[96].mxu0 %vm7362_vm4, %v7601_v20 }
 0x87f   :  { %v7264_v34 = vpop.f32.mrb[204].mxu1 }
 0x880   :  { %v7266_v48 = vpop.f32.mrb[205].mxu1 }
 0x881   :  { %v7267_v12 = vpop.f32.mrb[206].mxu1 }
 0x882   :  { %v7602_v51 = vpack.c.bf16 %v7267_v12, %v7264_v34  ;;  %v7269_v17 = vpop.f32.mrb[207].mxu1 }
 0x884   :  { %12077 = vmatprep.mubr.msk.bf16.mxu0 %vm7362_vm4, %v7602_v51 }
 0x887   :  { %v7272_v46 = vpop.f32.mrb[208].mxu1 }
 0x888   :  { %v7274_v10 = vpop.f32.mrb[209].mxu1 }
 0x889   :  { %v7275_v30 = vpop.f32.mrb[210].mxu1 }
 0x88a   :  { %v7603_v37 = vpack.c.bf16 %v7275_v30, %v7272_v46  ;;  %v7277_v24 = vpop.f32.mrb[211].mxu1 }
 0x88c   :  { %12078 = vmatmul.mubr.msk.bf16.gmra.mrb[100].mxu0 %vm7362_vm4, %v7603_v37 }
 0x88f   :  { %v7280_v21 = vpop.f32.mrb[212].mxu1 }
 0x890   :  { %v7282_v4 = vpop.f32.mrb[213].mxu1 }
 0x891   :  { %v7283_v15 = vpop.f32.mrb[214].mxu1 }
 0x892   :  { %v7604_v20 = vpack.c.bf16 %v7283_v15, %v7280_v21  ;;  %v7285_v54 = vpop.f32.mrb[215].mxu1 }
 0x894   :  { %12081 = vmatprep.mubr.msk.bf16.mxu0 %vm7362_vm4, %v7604_v20 }
 0x897   :  { %v7288_v48 = vpop.f32.mrb[216].mxu1 }
 0x898   :  { %v7290_v42 = vpop.f32.mrb[217].mxu1 }
 0x899   :  { %v7291_v34 = vpop.f32.mrb[218].mxu1 }
 0x89a   :  { %v7605_v12 = vpack.c.bf16 %v7291_v34, %v7288_v48  ;;  %v7293_v17 = vpop.f32.mrb[219].mxu1 }
 0x89c   :  { %12082 = vmatmul.mubr.msk.bf16.gmra.mrb[104].mxu0 %vm7362_vm4, %v7605_v12 }
 0x89f   :  { %v7296_v51 = vpop.f32.mrb[220].mxu1 }
 0x8a0   :  { %v7298_v10 = vpop.f32.mrb[221].mxu1 }
 0x8a1   :  { %v7299_v46 = vpop.f32.mrb[222].mxu1 }
 0x8a2   :  { %v7606_v30 = vpack.c.bf16 %v7299_v46, %v7296_v51  ;;  %v7301_v24 = vpop.f32.mrb[223].mxu1 }
 0x8a4   :  { %12085 = vmatprep.mubr.msk.bf16.mxu0 %vm7362_vm4, %v7606_v30  ;;  %v17305_v30 = vpack.c.bf16 %v16067_v25, %v16059_v53  ;;  %v17308_v53 = vpack.c.bf16 %v16126_v14, %v16118_v29  ;;  %v17309_v25 = vpack.c.bf16 %v16144_v39, %v16136_v35  ;;  %v17314_v29 = vpack.c.bf16 %v16214_v52, %v16208_v60 }
 0x8a5   :  { %v17315_v14 = vpack.c.bf16 %v16228_v13, %v16222_v40  ;;  %v17316_v35 = vpack.c.bf16 %v16242_v5, %v16236_v44  ;;  %v17317_v39 = vpack.c.bf16 %v16256_v49, %v16250_v62  ;;  %v17326_v60 = vpack.c.bf16 %v16488_v8, %v16486_v58  ;;  %v17328_v40 = vld [vmem:[#allocation12_spill] sm:$0xff]  ;;  %v17331_v5 = vld [vmem:[#allocation11_spill] sm:$0xff]  ;;  %v17332_v62 = vld [vmem:[#allocation10_spill] sm:$0xff] }
 0x8a6   :  { %v17327_v52 = vpack.c.bf16 %v16494_v9, %v16492_v56  ;;  %v17329_v13 = vld [vmem:[#allocation8_spill] sm:$0xff]  ;;  %v17333_v49 = vpack.c.bf16 %v17331_v5, %v17332_v62  ;;  %v17347_v58 = vld [vmem:[#allocation17_spill] sm:$0xff] }
 0x8a7   :  { %v7304_v37 = vpop.f32.mrb[224].mxu1  ;;  %v17330_v44 = vpack.c.bf16 %v17328_v40, %v17329_v13  ;;  %v17352_v8 = vld [vmem:[#allocation28_spill] sm:$0xff]  ;;  %v17353_v56 = vld [vmem:[#allocation21_spill] sm:$0xff] }
 0x8a8   :  { %v7306_v4 = vpop.f32.mrb[225].mxu1 }
 0x8a9   :  { %v7307_v21 = vpop.f32.mrb[226].mxu1  ;;  %v17306_v4 = vpack.c.bf16 %v16088_v7, %v16080_v1  ;;  %v17310_v1 = vpack.c.bf16 %v16158_v27, %v16152_v33  ;;  %v17311_v7 = vpack.c.bf16 %v16172_v45, %v16166_v32  ;;  %v17318_v33 = vpack.c.bf16 %v16270_v47, %v16264_v26  ;;  %v17334_v26 = vld [vmem:[#allocation16_spill] sm:$0xff]  ;;  %v17335_v47 = vld [vmem:[#allocation9_spill] sm:$0xff] }
 0x8aa   :  { %v7607_v15 = vpack.c.bf16 %v7307_v21, %v7304_v37  ;;  %v7309_v54 = vpop.f32.mrb[227].mxu1  ;;  %v8085_v37 = vsel %vm7411_vm3, %v10931_v3, 0  ;;  %v17307_v21 = vpack.c.bf16 %v16108_v38, %v16100_v50  ;;  %v17312_v50 = vpack.c.bf16 %v16186_v16, %v16180_v41 }
 0x8ab   :  { %v17313_v38 = vpack.c.bf16 %v16200_v57, %v16194_v36  ;;  %v17319_v27 = vpack.c.bf16 %v16284_v18, %v16278_v55  ;;  %v17320_v32 = vpack.c.bf16 %v16298_v23, %v16292_v61  ;;  %v17321_v45 = vpack.c.bf16 %v16429_v63, %v16424_v2  ;;  %v17337_v18 = vld [vmem:[#allocation15_spill] sm:$0xff]  ;;  %v17338_v61 = vld [vmem:[#allocation14_spill] sm:$0xff]  ;;  %v17340_v2 = vld [vmem:[#allocation20_spill] sm:$0xff]  ;;  %v8315_v54 = vpop.permute.xlu0 %8314 }
 0x8ac   :  { %12086 = vmatmul.mubr.msk.bf16.gmra.mrb[108].mxu0 %vm7362_vm4, %v7607_v15  ;;  %v17322_v41 = vpack.c.bf16 %v16446_v22, %v16436_v19  ;;  %v17323_v16 = vpack.c.bf16 %v16458_v0, %v16453_v59  ;;  %v17324_v36 = vpack.c.bf16 %v16470_v43, %v16465_v6  ;;  %v17325_v57 = vpack.c.bf16 %v16482_v11, %v16477_v31  ;;  %v17341_v63 = vld [vmem:[#allocation13_spill] sm:$0xff]  ;;  %v17343_v19 = vld [vmem:[#allocation19_spill] sm:$0xff]  ;;  %v17344_v22 = vld [vmem:[#allocation18_spill] sm:$0xff] }
 0x8ad   :  { %v17336_v55 = vpack.c.bf16 %v17334_v26, %v17335_v47  ;;  %v17339_v23 = vpack.c.bf16 %v17337_v18, %v17338_v61  ;;  %v17342_v9 = vpack.c.bf16 %v17340_v2, %v17341_v63  ;;  %v17345_v59 = vpack.c.bf16 %v17343_v19, %v17344_v22  ;;  %v17346_v0 = vld [vmem:[#allocation24_spill] sm:$0xff]  ;;  %v17349_v43 = vld [vmem:[#allocation23_spill] sm:$0xff]  ;;  %v17350_v31 = vld [vmem:[#allocation22_spill] sm:$0xff] }
 0x8ae   :  { %v17348_v6 = vpack.c.bf16 %v17346_v0, %v17347_v58  ;;  %v17351_v11 = vpack.c.bf16 %v17349_v43, %v17350_v31  ;;  %v17354_v3 = vpack.c.bf16 %v17352_v8, %v17353_v56  ;;  %v13401_v15 = vld [vmem:[#allocation2 + $0x4] ss:$8 sps:$4 sm:$0xff]  }
 0x8af   :  { %v7312_v42 = vpop.f32.mrb[228].mxu1 }
 0x8b0   :  { %v7314_v20 = vpop.f32.mrb[229].mxu1 }
 0x8b1   :  { %v7315_v48 = vpop.f32.mrb[230].mxu1  ;;  %v8325_v20 = vpop.permute.xlu0 %8324 }
 0x8b2   :  { %v7608_v34 = vpack.c.bf16 %v7315_v48, %v7312_v42  ;;  %v7317_v17 = vpop.f32.mrb[231].mxu1  ;;  %v8320_v42 = vpop.permute.xlu1 %8319 }
 0x8b4   :  { %12089 = vmatprep.mubr.msk.bf16.mxu0 %vm7362_vm4, %v7608_v34 }
 0x8b5   :  { %v8335_v34 = vpop.permute.xlu0 %8334 }
 0x8b6   :  { %v8330_v48 = vpop.permute.xlu1 %8329 }
 0x8b7   :  { %v7320_v12 = vpop.f32.mrb[232].mxu1 }
 0x8b8   :  { %v7322_v10 = vpop.f32.mrb[233].mxu1 }
 0x8b9   :  { %v7323_v51 = vpop.f32.mrb[234].mxu1 }
 0x8ba   :  { %v7609_v46 = vpack.c.bf16 %v7323_v51, %v7320_v12  ;;  %v7325_v24 = vpop.f32.mrb[235].mxu1  ;;  %v8340_v17 = vpop.permute.xlu1 %8339 }
 0x8bb   :  { %v8345_v12 = vpop.permute.xlu0 %8344 }
 0x8bc   :  { %12090 = vmatmul.mubr.msk.bf16.gmra.mrb[112].mxu0 %vm7362_vm4, %v7609_v46 }
 0x8bd   :  { %12095 = vmatprep.mubr.msk.bf16.mxu0 %vm7362_vm4, %v17305_v30 }
 0x8be   :  { %v8350_v10 = vpop.permute.xlu1 %8349 }
 0x8bf   :  { %v8355_v51 = vpop.permute.xlu0 %8354 }
 0x8c2   :  { %v8360_v46 = vpop.permute.xlu1 %8359 }
 0x8c3   :  { %v8365_v24 = vpop.permute.xlu0 %8364 }
 0x8c4   :  { %12096 = vmatmul.mubr.msk.bf16.vlgmr.msra.gmra.mrb[84].mxu0 %vm7362_vm4, %v17306_v4 }
 0x8c5   :  { %12099 = vmatprep.mubr.msk.bf16.mxu0 %vm7362_vm4, %v17307_v21  ;;  %12128 = vmatpush3.bf16.msra.mxu0 %v8085_v37 }
 0x8c6   :  { %8936 = vmatprep.subr.bf16.mxu0 %v17149_v28  ;;  %v8370_v30 = vpop.permute.xlu1 %8369 }
 0x8cc   :  { %12100 = vmatmul.mubr.msk.bf16.gmra.mrb[88].mxu0 %vm7362_vm4, %v17308_v53  ;;  %v8375_v53 = vpop.permute.xlu0 %8374 }
 0x8cd   :  { %12103 = vmatprep.mubr.msk.bf16.mxu0 %vm7362_vm4, %v17309_v25 }
 0x8d4   :  { %12104 = vmatmul.mubr.msk.bf16.gmra.mrb[92].mxu0 %vm7362_vm4, %v17310_v1 }
 0x8d5   :  { %12107 = vmatprep.mubr.msk.bf16.mxu0 %vm7362_vm4, %v17311_v7 }
 0x8dc   :  { %12108 = vmatmul.mubr.msk.bf16.gmra.mrb[96].mxu0 %vm7362_vm4, %v17312_v50 }
 0x8dd   :  { %12111 = vmatprep.mubr.msk.bf16.mxu0 %vm7362_vm4, %v17313_v38  ;;  %v8380_v38 = vpop.permute.xlu1 %8379 }
 0x8e4   :  { %12112 = vmatmul.mubr.msk.bf16.gmra.mrb[100].mxu0 %vm7362_vm4, %v17314_v29 }
 0x8e5   :  { %12115 = vmatprep.mubr.msk.bf16.mxu0 %vm7362_vm4, %v17315_v14 }
 0x8ec   :  { %12116 = vmatmul.mubr.msk.bf16.gmra.mrb[104].mxu0 %vm7362_vm4, %v17316_v35 }
 0x8ed   :  { %12119 = vmatprep.mubr.msk.bf16.mxu0 %vm7362_vm4, %v17317_v39 }
 0x8f4   :  { %12120 = vmatmul.mubr.msk.bf16.gmra.mrb[108].mxu0 %vm7362_vm4, %v17318_v33 }
 0x8f5   :  { %12123 = vmatprep.mubr.msk.bf16.mxu0 %vm7362_vm4, %v17319_v27 }
 0x8fc   :  { %12124 = vmatmul.mubr.msk.bf16.gmra.mrb[112].mxu0 %vm7362_vm4, %v17320_v32  ;;  %v8385_v32 = vpop.permute.xlu0 %8384 }
 0x8fd   :  { %12129 = vmatprep.mubr.msk.bf16.mxu0 %vm7362_vm4, %v17321_v45 }
 0x904   :  { %12130 = vmatmul.mubr.msk.bf16.vlgmr.msra.gmra.mrb[84].mxu0 %vm7362_vm4, %v17322_v41 }
 0x905   :  { %12133 = vmatprep.mubr.msk.bf16.mxu0 %vm7362_vm4, %v17323_v16 }
 0x90c   :  { %12134 = vmatmul.mubr.msk.bf16.gmra.mrb[88].mxu0 %vm7362_vm4, %v17324_v36 }
 0x90d   :  { %12137 = vmatprep.mubr.msk.bf16.mxu0 %vm7362_vm4, %v17325_v57  ;;  %v8390_v57 = vpop.permute.xlu1 %8389 }
 0x911   :  { %v8400_v18 = vpop.permute.xlu1 %8399 }
 0x914   :  { %12138 = vmatmul.mubr.msk.bf16.gmra.mrb[92].mxu0 %vm7362_vm4, %v17326_v60 }
 0x915   :  { %12141 = vmatprep.mubr.msk.bf16.mxu0 %vm7362_vm4, %v17327_v52  ;;  %v8410_v31 = vpop.permute.xlu1 %8409 }
 0x91c   :  { %12142 = vmatmul.mubr.msk.bf16.gmra.mrb[96].mxu0 %vm7362_vm4, %v17330_v44 }
 0x91d   :  { %12145 = vmatprep.mubr.msk.bf16.mxu0 %vm7362_vm4, %v17333_v49  ;;  %v8395_v49 = vpop.permute.xlu0 %8394 }
 0x921   :  { %v8405_v0 = vpop.permute.xlu0 %8404 }
 0x924   :  { %12146 = vmatmul.mubr.msk.bf16.gmra.mrb[100].mxu0 %vm7362_vm4, %v17336_v55 }
 0x925   :  { %12149 = vmatprep.mubr.msk.bf16.mxu0 %vm7362_vm4, %v17339_v23 }
 0x92c   :  { %12150 = vmatmul.mubr.msk.bf16.gmra.mrb[104].mxu0 %vm7362_vm4, %v17342_v9 }
 0x92d   :  { %12153 = vmatprep.mubr.msk.bf16.mxu0 %vm7362_vm4, %v17345_v59 }
 0x934   :  { %12154 = vmatmul.mubr.msk.bf16.gmra.mrb[108].mxu0 %vm7362_vm4, %v17348_v6 }
 0x935   :  { %12157 = vmatprep.mubr.msk.bf16.mxu0 %vm7362_vm4, %v17351_v11 }
 0x93c   :  { %12158 = vmatmul.mubr.msk.bf16.gmra.mrb[112].mxu0 %vm7362_vm4, %v17354_v3 }
 0x93d   :  { %8968 = vmatprep.mubr.bf16.mxu0 %v13401_v15 }
 0x9d7   :  { %v12131_v37 = vpop.f32.mrb[84].mxu0 }
 0x9d8   :  { %v8474_v4 = vadd.f32 %v12131_v37, %v8325_v20  ;;  %v8121_v21 = vpop.f32.mrb[85].mxu0  ;;  %v8415_v20 = vpop.permute.xlu0 %8414 }
 0x9d9   :  { %v8472_v25 = vadd.f32 %v8315_v54, %v8121_v21  ;;  %v12132_v1 = vpop.f32.mrb[86].mxu0 }
 0x9da   :  { %v8475_v7 = vadd.f32 %v12132_v1, %v8330_v48  ;;  %v8124_v50 = vpop.f32.mrb[87].mxu0  ;;  %v8506_v14 = vmax.f32 %v8474_v4, 0.0 }
 0x9db   :  { %v8473_v29 = vadd.f32 %v8320_v42, %v8124_v50  ;;  %v8504_v39 = vmax.f32 %v8472_v25, 0.0 }
 0x9dc   :  { %v8507_v35 = vmax.f32 %v8475_v7, 0.0  ;;  %v8425_v21 = vpop.permute.xlu0 %8424 }
 0x9dd   :  { %v8505_v33 = vmax.f32 %v8473_v29, 0.0 }
 0x9de   :  { %v8537_v27 = vpack.c.bf16 %v8507_v35, %v8506_v14 }
 0x9df   :  { %v8536_v45 = vpack.c.bf16 %v8505_v33, %v8504_v39  ;;  %v12135_v41 = vpop.f32.mrb[88].mxu0 }
 0x9e0   :  { %v8478_v16 = vadd.f32 %v12135_v41, %v8345_v12  ;;  %v8137_v36 = vpop.f32.mrb[89].mxu0 }
 0x9e1   :  { %v8476_v60 = vadd.f32 %v8335_v34, %v8137_v36  ;;  %v12136_v52 = vpop.f32.mrb[90].mxu0  ;;  %8937 = vmatpush1.bf16.msra.mxu0 %v8536_v45 }
 0x9e2   :  { %v8479_v40 = vadd.f32 %v12136_v52, %v8350_v10  ;;  %v8140_v13 = vpop.f32.mrb[91].mxu0  ;;  %8938 = vmatprep.subr.bf16.mxu0 %v17149_v28  ;;  %v8510_v5 = vmax.f32 %v8478_v16, 0.0  ;;  %v8420_v10 = vpop.permute.xlu1 %8419 }
 0x9e3   :  { %v8477_v44 = vadd.f32 %v8340_v17, %v8140_v13  ;;  %v8508_v26 = vmax.f32 %v8476_v60, 0.0 }
 0x9e4   :  { %v8511_v62 = vmax.f32 %v8479_v40, 0.0 }
 0x9e5   :  { %v8509_v47 = vmax.f32 %v8477_v44, 0.0  ;;  %8939 = vmatpush1.bf16.msra.mxu0 %v8537_v27 }
 0x9e6   :  { %v8539_v55 = vpack.c.bf16 %v8511_v62, %v8510_v5  ;;  %8940 = vmatprep.subr.bf16.mxu0 %v17149_v28  ;;  %v8430_v50 = vpop.permute.xlu1 %8429 }
 0x9e7   :  { %v8538_v61 = vpack.c.bf16 %v8509_v47, %v8508_v26  ;;  %v12139_v23 = vpop.f32.mrb[92].mxu0 }
 0x9e8   :  { %v8482_v2 = vadd.f32 %v12139_v23, %v8365_v24  ;;  %v8153_v63 = vpop.f32.mrb[93].mxu0 }
 0x9e9   :  { %v8480_v9 = vadd.f32 %v8355_v51, %v8153_v63  ;;  %v12140_v19 = vpop.f32.mrb[94].mxu0  ;;  %8941 = vmatpush1.bf16.msra.mxu0 %v8538_v61 }
 0x9ea   :  { %v8483_v22 = vadd.f32 %v12140_v19, %v8370_v30  ;;  %v8156_v59 = vpop.f32.mrb[95].mxu0  ;;  %8942 = vmatprep.subr.bf16.mxu0 %v17149_v28  ;;  %v8514_v6 = vmax.f32 %v8482_v2, 0.0  ;;  %v8440_v36 = vpop.permute.xlu1 %8439 }
 0x9eb   :  { %v8481_v58 = vadd.f32 %v8360_v46, %v8156_v59  ;;  %v8512_v11 = vmax.f32 %v8480_v9, 0.0 }
 0x9ec   :  { %v8515_v43 = vmax.f32 %v8483_v22, 0.0 }
 0x9ed   :  { %v8513_v8 = vmax.f32 %v8481_v58, 0.0  ;;  %8943 = vmatpush1.bf16.msra.mxu0 %v8539_v55 }
 0x9ee   :  { %v8541_v56 = vpack.c.bf16 %v8515_v43, %v8514_v6  ;;  %8944 = vmatprep.subr.bf16.mxu0 %v17149_v28 }
 0x9ef   :  { %v8540_v3 = vpack.c.bf16 %v8513_v8, %v8512_v11  ;;  %v12143_v15 = vpop.f32.mrb[96].mxu0 }
 0x9f0   :  { %v8486_v54 = vadd.f32 %v12143_v15, %v8385_v32  ;;  %v8169_v42 = vpop.f32.mrb[97].mxu0  ;;  %v8435_v32 = vpop.permute.xlu0 %8434 }
 0x9f1   :  { %v8484_v48 = vadd.f32 %v8375_v53, %v8169_v42  ;;  %v12144_v34 = vpop.f32.mrb[98].mxu0  ;;  %8945 = vmatpush1.bf16.msra.mxu0 %v8540_v3 }
 0x9f2   :  { %v8487_v17 = vadd.f32 %v12144_v34, %v8390_v57  ;;  %v8172_v12 = vpop.f32.mrb[99].mxu0  ;;  %8946 = vmatprep.subr.bf16.mxu0 %v17149_v28  ;;  %v8518_v46 = vmax.f32 %v8486_v54, 0.0 }
 0x9f3   :  { %v8485_v51 = vadd.f32 %v8380_v38, %v8172_v12  ;;  %v8516_v30 = vmax.f32 %v8484_v48, 0.0 }
 0x9f4   :  { %v8519_v24 = vmax.f32 %v8487_v17, 0.0 }
 0x9f5   :  { %v8517_v37 = vmax.f32 %v8485_v51, 0.0  ;;  %8947 = vmatpush1.bf16.msra.mxu0 %v8541_v56 }
 0x9f6   :  { %v8543_v4 = vpack.c.bf16 %v8519_v24, %v8518_v46  ;;  %8948 = vmatprep.subr.bf16.mxu0 %v17149_v28 }
 0x9f7   :  { %v8542_v25 = vpack.c.bf16 %v8517_v37, %v8516_v30  ;;  %v12147_v1 = vpop.f32.mrb[100].mxu0 }
 0x9f8   :  { %v8490_v53 = vadd.f32 %v12147_v1, %v8405_v0  ;;  %v8185_v7 = vpop.f32.mrb[101].mxu0 }
 0x9f9   :  { %v8488_v29 = vadd.f32 %v8395_v49, %v8185_v7  ;;  %v12148_v14 = vpop.f32.mrb[102].mxu0  ;;  %8949 = vmatpush1.bf16.msra.mxu0 %v8542_v25  ;;  %v8445_v49 = vpop.permute.xlu0 %8444  ;;  %v13399_v7 = vld [vmem:[#allocation2] ss:$8 sps:$4 sm:$0xff]  }
 0x9fa   :  { %v8491_v35 = vadd.f32 %v12148_v14, %v8410_v31  ;;  %v8188_v39 = vpop.f32.mrb[103].mxu0  ;;  %8950 = vmatprep.subr.bf16.mxu0 %v17149_v28  ;;  %v8522_v33 = vmax.f32 %v8490_v53, 0.0  ;;  %v13407_v14 = vld [vmem:[#allocation2 + $0x24] ss:$8 sps:$4 sm:$0xff]  }
 0x9fb   :  { %v8489_v38 = vadd.f32 %v8400_v18, %v8188_v39  ;;  %v8520_v45 = vmax.f32 %v8488_v29, 0.0  ;;  %v8450_v18 = vpop.permute.xlu1 %8449  ;;  %v13402_v29 = vld [vmem:[#allocation2 + $0x10] ss:$8 sps:$4 sm:$0xff]   ;;  %v13410_v39 = vld [vmem:[#allocation2 + $0x34] ss:$8 sps:$4 sm:$0xff]  }
 0x9fc   :  { %v8523_v27 = vmax.f32 %v8491_v35, 0.0  ;;  %v13405_v35 = vld [vmem:[#allocation2 + $0x20] ss:$8 sps:$4 sm:$0xff]  }
 0x9fd   :  { %v8521_v41 = vmax.f32 %v8489_v38, 0.0  ;;  %8951 = vmatpush1.bf16.msra.mxu0 %v8543_v4  ;;  %v8455_v59 = vpop.permute.xlu0 %8454  ;;  %v13408_v38 = vld [vmem:[#allocation2 + $0x30] ss:$8 sps:$4 sm:$0xff]  }
 0x9fe   :  { %v8545_v16 = vpack.c.bf16 %v8523_v27, %v8522_v33  ;;  %8952 = vmatprep.subr.bf16.mxu0 %v17149_v28  ;;  %v13413_v33 = vld [vmem:[#allocation2 + $0x44] ss:$8 sps:$4 sm:$0xff]   ;;  %v13411_v27 = vld [vmem:[#allocation2 + $0x40] ss:$8 sps:$4 sm:$0xff]  }
 0x9ff   :  { %v8544_v57 = vpack.c.bf16 %v8521_v41, %v8520_v45  ;;  %v12151_v60 = vpop.f32.mrb[104].mxu0  ;;  %v8460_v31 = vpop.permute.xlu1 %8459  ;;  %v13419_v45 = vld [vmem:[#allocation2 + $0x64] ss:$8 sps:$4 sm:$0xff]   ;;  %v13417_v41 = vld [vmem:[#allocation2 + $0x60] ss:$8 sps:$4 sm:$0xff]  }
 0xa00   :  { %v8494_v52 = vadd.f32 %v12151_v60, %v8425_v21  ;;  %v8201_v40 = vpop.f32.mrb[105].mxu0  ;;  %v13423_v60 = vld [vmem:[#allocation2 + $0x80] ss:$8 sps:$4 sm:$0xff]  }
 0xa01   :  { %v8492_v13 = vadd.f32 %v8415_v20, %v8201_v40  ;;  %v12152_v44 = vpop.f32.mrb[106].mxu0  ;;  %8953 = vmatpush1.bf16.msra.mxu0 %v8544_v57  ;;  %v8465_v42 = vpop.permute.xlu0 %8464  ;;  %v13425_v57 = vld [vmem:[#allocation2 + $0x84] ss:$8 sps:$4 sm:$0xff]   ;;  %v13426_v40 = vld [vmem:[#allocation2 + $0x90] ss:$8 sps:$4 sm:$0xff]  }
 0xa02   :  { %v8495_v5 = vadd.f32 %v12152_v44, %v8430_v50  ;;  %v8204_v62 = vpop.f32.mrb[107].mxu0  ;;  %8954 = vmatprep.subr.bf16.mxu0 %v17149_v28  ;;  %v8526_v47 = vmax.f32 %v8494_v52, 0.0  ;;  %v13404_v50 = vld [vmem:[#allocation2 + $0x14] ss:$8 sps:$4 sm:$0xff]   ;;  %v13429_v44 = vld [vmem:[#allocation2 + $0xa0] ss:$8 sps:$4 sm:$0xff]  }
 0xa03   :  { %v8493_v26 = vadd.f32 %v8420_v10, %v8204_v62  ;;  %v8524_v61 = vmax.f32 %v8492_v13, 0.0  ;;  %v8470_v12 = vpop.permute.xlu1 %8469  ;;  %v13428_v52 = vld [vmem:[#allocation2 + $0x94] ss:$8 sps:$4 sm:$0xff]   ;;  %v13431_v13 = vld [vmem:[#allocation2 + $0xa4] ss:$8 sps:$4 sm:$0xff]  }
 0xa04   :  { %v8527_v55 = vmax.f32 %v8495_v5, 0.0  ;;  %v13434_v5 = vld [vmem:[#allocation2 + $0xb4] ss:$8 sps:$4 sm:$0xff]   ;;  %v13432_v62 = vld [vmem:[#allocation2 + $0xb0] ss:$8 sps:$4 sm:$0xff]  }
 0xa05   :  { %v8525_v23 = vmax.f32 %v8493_v26, 0.0  ;;  %8955 = vmatpush1.bf16.msra.mxu0 %v8545_v16  ;;  %v13422_v16 = vld [vmem:[#allocation2 + $0x74] ss:$8 sps:$4 sm:$0xff]   ;;  %v13483_v26 = vld [vmem:[%s16969_s9 + $0x8] sm:$0xff]  }
 0xa06   :  { %v8547_v2 = vpack.c.bf16 %v8527_v55, %v8526_v47  ;;  %8956 = vmatprep.subr.bf16.mxu0 %v17149_v28  ;;  %v13435_v47 = vld [vmem:[#allocation2 + $0xc0] ss:$8 sps:$4 sm:$0xff]   ;;  %v13440_v55 = vld [vmem:[#allocation2 + $0xd4] ss:$8 sps:$4 sm:$0xff]  }
 0xa07   :  { %v8546_v63 = vpack.c.bf16 %v8525_v23, %v8524_v61  ;;  %v12155_v9 = vpop.f32.mrb[108].mxu0  ;;  %v13443_v61 = vld [vmem:[#allocation2 + $0xe4] ss:$8 sps:$4 sm:$0xff]   ;;  %v13441_v23 = vld [vmem:[#allocation2 + $0xe0] ss:$8 sps:$4 sm:$0xff]  }
 0xa08   :  { %v8498_v19 = vadd.f32 %v12155_v9, %v8445_v49  ;;  %v8217_v22 = vpop.f32.mrb[109].mxu0  ;;  %v13437_v49 = vld [vmem:[#allocation2 + $0xc4] ss:$8 sps:$4 sm:$0xff]  }
 0xa09   :  { %v8496_v0 = vadd.f32 %v8435_v32, %v8217_v22  ;;  %v12156_v58 = vpop.f32.mrb[110].mxu0  ;;  %8957 = vmatpush1.bf16.msra.mxu0 %v8546_v63  ;;  %v13416_v32 = vld [vmem:[#allocation2 + $0x54] ss:$8 sps:$4 sm:$0xff]   ;;  %v13444_v63 = vld [vmem:[#allocation2 + $0xf0] ss:$8 sps:$4 sm:$0xff]  }
 0xa0a   :  { %v8499_v6 = vadd.f32 %v12156_v58, %v8450_v18  ;;  %v8220_v43 = vpop.f32.mrb[111].mxu0  ;;  %8958 = vmatprep.subr.bf16.mxu0 %v17149_v28  ;;  %v8530_v8 = vmax.f32 %v8498_v19, 0.0  ;;  %v13438_v18 = vld [vmem:[#allocation2 + $0xd0] ss:$8 sps:$4 sm:$0xff]   ;;  %v13449_v9 = vld [vmem:[#allocation2 + $0x104] ss:$8 sps:$4 sm:$0xff]  }
 0xa0b   :  { %v8497_v11 = vadd.f32 %v8440_v36, %v8220_v43  ;;  %v8528_v3 = vmax.f32 %v8496_v0, 0.0  ;;  %v13420_v36 = vld [vmem:[#allocation2 + $0x70] ss:$8 sps:$4 sm:$0xff]   ;;  %v13447_v19 = vld [vmem:[#allocation2 + $0x100] ss:$8 sps:$4 sm:$0xff]  }
 0xa0c   :  { %v8531_v56 = vmax.f32 %v8499_v6, 0.0  ;;  %v13452_v22 = vld [vmem:[#allocation2 + $0x114] ss:$8 sps:$4 sm:$0xff]   ;;  %v13455_v0 = vld [vmem:[#allocation2 + $0x124] ss:$8 sps:$4 sm:$0xff]  }
 0xa0d   :  { %v8529_v15 = vmax.f32 %v8497_v11, 0.0  ;;  %8959 = vmatpush1.bf16.msra.mxu0 %v8547_v2  ;;  %v13446_v2 = vld [vmem:[#allocation2 + $0xf4] ss:$8 sps:$4 sm:$0xff]   ;;  %v13453_v58 = vld [vmem:[#allocation2 + $0x120] ss:$8 sps:$4 sm:$0xff]  }
 0xa0e   :  { %v8549_v54 = vpack.c.bf16 %v8531_v56, %v8530_v8  ;;  %8960 = vmatprep.subr.bf16.mxu0 %v17149_v28  ;;  %v13458_v6 = vld [vmem:[#allocation2 + $0x134] ss:$8 sps:$4 sm:$0xff]   ;;  %v13456_v43 = vld [vmem:[#allocation2 + $0x130] ss:$8 sps:$4 sm:$0xff]   ;;  %v13459_v11 = vld [vmem:[#allocation2 + $0x140] ss:$8 sps:$4 sm:$0xff]  }
 0xa0f   :  { %v8548_v20 = vpack.c.bf16 %v8529_v15, %v8528_v3  ;;  %v12159_v48 = vpop.f32.mrb[112].mxu0  ;;  %v13464_v8 = vld [vmem:[#allocation2 + $0x154] ss:$8 sps:$4 sm:$0xff]   ;;  %v13462_v56 = vld [vmem:[#allocation2 + $0x150] ss:$8 sps:$4 sm:$0xff]  }
 0xa10   :  { %v8502_v34 = vadd.f32 %v12159_v48, %v8465_v42  ;;  %v8233_v17 = vpop.f32.mrb[113].mxu0  ;;  %v13467_v3 = vld [vmem:[#allocation2 + $0x164] ss:$8 sps:$4 sm:$0xff]   ;;  %v13465_v15 = vld [vmem:[#allocation2 + $0x160] ss:$8 sps:$4 sm:$0xff]  }
 0xa11   :  { %v8500_v10 = vadd.f32 %v8455_v59, %v8233_v17  ;;  %v12160_v51 = vpop.f32.mrb[114].mxu0  ;;  %8961 = vmatpush1.bf16.msra.mxu0 %v8548_v20  ;;  %v13450_v59 = vld [vmem:[#allocation2 + $0x110] ss:$8 sps:$4 sm:$0xff]   ;;  %v13473_v20 = vld [vmem:[#allocation2 + $0x184] ss:$8 sps:$4 sm:$0xff]  }
 0xa12   :  { %v8503_v46 = vadd.f32 %v12160_v51, %v8470_v12  ;;  %v8236_v24 = vpop.f32.mrb[115].mxu0  ;;  %8962 = vmatprep.subr.bf16.mxu0 %v17149_v28  ;;  %v8534_v37 = vmax.f32 %v8502_v34, 0.0  ;;  %v13468_v42 = vld [vmem:[#allocation2 + $0x170] ss:$8 sps:$4 sm:$0xff]   ;;  %v13471_v48 = vld [vmem:[#allocation2 + $0x180] ss:$8 sps:$4 sm:$0xff]  }
 0xa13   :  { %v8501_v30 = vadd.f32 %v8460_v31, %v8236_v24  ;;  %v8532_v21 = vmax.f32 %v8500_v10, 0.0  ;;  %v13461_v31 = vld [vmem:[#allocation2 + $0x144] ss:$8 sps:$4 sm:$0xff]   ;;  %v13476_v34 = vld [vmem:[#allocation2 + $0x194] ss:$8 sps:$4 sm:$0xff]  }
 0xa14   :  { %v8535_v4 = vmax.f32 %v8503_v46, 0.0  ;;  %v13474_v17 = vld [vmem:[#allocation2 + $0x190] ss:$8 sps:$4 sm:$0xff]   ;;  %v13479_v12 = vld [vmem:[#allocation2 + $0x1a4] ss:$8 sps:$4 sm:$0xff]  }
 0xa15   :  { %v8533_v25 = vmax.f32 %v8501_v30, 0.0  ;;  %8963 = vmatpush1.bf16.msra.mxu0 %v8549_v54  ;;  %v13470_v54 = vld [vmem:[#allocation2 + $0x174] ss:$8 sps:$4 sm:$0xff]   ;;  %v13477_v10 = vld [vmem:[#allocation2 + $0x1a0] ss:$8 sps:$4 sm:$0xff]  }
 0xa16   :  { %v8551_v1 = vpack.c.bf16 %v8535_v4, %v8534_v37  ;;  %8964 = vmatprep.subr.bf16.mxu0 %v17149_v28  ;;  %v13482_v51 = vld [vmem:[#allocation2 + $0x1b4] ss:$8 sps:$4 sm:$0xff]   ;;  %v13480_v24 = vld [vmem:[#allocation2 + $0x1b0] ss:$8 sps:$4 sm:$0xff]   ;;  %v13486_v37 = vld [vmem:[#allocation2 + $0x1c4] ss:$8 sps:$4 sm:$0xff]  }
 0xa17   :  { %v8550_v53 = vpack.c.bf16 %v8533_v25, %v8532_v21 }
 0xa19   :  { %8965 = vmatpush1.bf16.msra.mxu0 %v8550_v53  ;;  %v13484_v53 = vld [vmem:[#allocation2 + $0x1c0] ss:$8 sps:$4 sm:$0xff]  }
 0xa1a   :  { %8966 = vmatprep.subr.bf16.mxu0 %v17149_v28  ;;  %v13414_v28 = vld [vmem:[#allocation2 + $0x50] ss:$8 sps:$4 sm:$0xff]  }
 0xa1d   :  { %8967 = vmatpush1.bf16.msra.mxu0 %v8551_v1 }
 0xa1e   :  { %12161 = vmatprep.subr.bf16.mxu0 %v13483_v26 }
 0xa20   :  { %8969 = vmatmul.mubr.bf16.vlgmr.msra.gmra.mrb[116].mxu0 %v13399_v7 }
 0xa21   :  { %8976 = vmatprep.mubr.bf16.mxu0 %v13404_v50  ;;  %12162 = vmatpush3.bf16.msra.mxu0 %v13483_v26  ;;  %v13489_v50 = vld [vmem:[#allocation2 + $0x1d4] ss:$8 sps:$4 sm:$0xff]  }
 0xa28   :  { %8977 = vmatmul.mubr.bf16.gmra.mrb[120].mxu0 %v13402_v29 }
 0xa29   :  { %8984 = vmatprep.mubr.bf16.mxu0 %v13407_v14 }
 0xa30   :  { %8985 = vmatmul.mubr.bf16.gmra.mrb[124].mxu0 %v13405_v35 }
 0xa31   :  { %8992 = vmatprep.mubr.bf16.mxu0 %v13410_v39 }
 0xa38   :  { %8993 = vmatmul.mubr.bf16.gmra.mrb[128].mxu0 %v13408_v38  ;;  %v13487_v38 = vld [vmem:[#allocation2 + $0x1d0] ss:$8 sps:$4 sm:$0xff]  }
 0xa39   :  { %9000 = vmatprep.mubr.bf16.mxu0 %v13413_v33 }
 0xa40   :  { %9001 = vmatmul.mubr.bf16.gmra.mrb[132].mxu0 %v13411_v27  ;;  %v13492_v27 = vld [vmem:[#allocation2 + $0x1e4] ss:$8 sps:$4 sm:$0xff]  }
 0xa41   :  { %9008 = vmatprep.mubr.bf16.mxu0 %v13416_v32 }
 0xa48   :  { %9009 = vmatmul.mubr.bf16.gmra.mrb[136].mxu0 %v13414_v28 }
 0xa49   :  { %9016 = vmatprep.mubr.bf16.mxu0 %v13419_v45 }
 0xa50   :  { %9017 = vmatmul.mubr.bf16.gmra.mrb[140].mxu0 %v13417_v41 }
 0xa51   :  { %9024 = vmatprep.mubr.bf16.mxu0 %v13422_v16  ;;  %v13490_v16 = vld [vmem:[#allocation2 + $0x1e0] ss:$8 sps:$4 sm:$0xff]  }
 0xa58   :  { %9025 = vmatmul.mubr.bf16.gmra.mrb[144].mxu0 %v13420_v36 }
 0xa59   :  { %9032 = vmatprep.mubr.bf16.mxu0 %v13425_v57  ;;  %v13495_v57 = vld [vmem:[#allocation2 + $0x1f4] ss:$8 sps:$4 sm:$0xff]  }
 0xa60   :  { %9033 = vmatmul.mubr.bf16.gmra.mrb[148].mxu0 %v13423_v60 }
 0xa61   :  { %9040 = vmatprep.mubr.bf16.mxu0 %v13428_v52 }
 0xa68   :  { %9041 = vmatmul.mubr.bf16.gmra.mrb[152].mxu0 %v13426_v40 }
 0xa69   :  { %9048 = vmatprep.mubr.bf16.mxu0 %v13431_v13 }
 0xa70   :  { %9049 = vmatmul.mubr.bf16.gmra.mrb[156].mxu0 %v13429_v44  ;;  %v13493_v44 = vld [vmem:[#allocation2 + $0x1f0] ss:$8 sps:$4 sm:$0xff]  }
 0xa71   :  { %9056 = vmatprep.mubr.bf16.mxu0 %v13434_v5 }
 0xa78   :  { %9057 = vmatmul.mubr.bf16.gmra.mrb[160].mxu0 %v13432_v62 }
 0xa79   :  { %9064 = vmatprep.mubr.bf16.mxu0 %v13437_v49 }
 0xa80   :  { %9065 = vmatmul.mubr.bf16.gmra.mrb[164].mxu0 %v13435_v47 }
 0xa81   :  { %9072 = vmatprep.mubr.bf16.mxu0 %v13440_v55 }
 0xa88   :  { %9073 = vmatmul.mubr.bf16.gmra.mrb[168].mxu0 %v13438_v18 }
 0xa89   :  { %9080 = vmatprep.mubr.bf16.mxu0 %v13443_v61 }
 0xa90   :  { %9081 = vmatmul.mubr.bf16.gmra.mrb[172].mxu0 %v13441_v23 }
 0xa91   :  { %9088 = vmatprep.mubr.bf16.mxu0 %v13446_v2 }
 0xa98   :  { %9089 = vmatmul.mubr.bf16.gmra.mrb[176].mxu0 %v13444_v63 }
 0xa99   :  { %9096 = vmatprep.mubr.bf16.mxu0 %v13449_v9 }
 0xaa0   :  { %9097 = vmatmul.mubr.bf16.gmra.mrb[180].mxu0 %v13447_v19 }
 0xaa1   :  { %9104 = vmatprep.mubr.bf16.mxu0 %v13452_v22 }
 0xaa8   :  { %9105 = vmatmul.mubr.bf16.gmra.mrb[184].mxu0 %v13450_v59 }
 0xaa9   :  { %9112 = vmatprep.mubr.bf16.mxu0 %v13455_v0 }
 0xab0   :  { %9113 = vmatmul.mubr.bf16.gmra.mrb[188].mxu0 %v13453_v58 }
 0xab1   :  { %9120 = vmatprep.mubr.bf16.mxu0 %v13458_v6 }
 0xab8   :  { %9121 = vmatmul.mubr.bf16.gmra.mrb[192].mxu0 %v13456_v43 }
 0xab9   :  { %9128 = vmatprep.mubr.bf16.mxu0 %v13461_v31 }
 0xac0   :  { %9129 = vmatmul.mubr.bf16.gmra.mrb[196].mxu0 %v13459_v11 }
 0xac1   :  { %9136 = vmatprep.mubr.bf16.mxu0 %v13464_v8 }
 0xac8   :  { %9137 = vmatmul.mubr.bf16.gmra.mrb[200].mxu0 %v13462_v56 }
 0xac9   :  { %9144 = vmatprep.mubr.bf16.mxu0 %v13467_v3 }
 0xad0   :  { %9145 = vmatmul.mubr.bf16.gmra.mrb[204].mxu0 %v13465_v15  ;;  %v13496_v15 = vld [vmem:[%s16969_s9 + $0x18] sm:$0xff]  }
 0xad1   :  { %9152 = vmatprep.mubr.bf16.mxu0 %v13470_v54  ;;  %12179 = vmatprep.subr.bf16.mxu0 %v13496_v15 }
 0xad8   :  { %9153 = vmatmul.mubr.bf16.gmra.mrb[208].mxu0 %v13468_v42 }
 0xad9   :  { %9160 = vmatprep.mubr.bf16.mxu0 %v13473_v20 }
 0xae0   :  { %9161 = vmatmul.mubr.bf16.gmra.mrb[212].mxu0 %v13471_v48 }
 0xae1   :  { %9168 = vmatprep.mubr.bf16.mxu0 %v13476_v34 }
 0xae8   :  { %9169 = vmatmul.mubr.bf16.gmra.mrb[216].mxu0 %v13474_v17 }
 0xae9   :  { %9176 = vmatprep.mubr.bf16.mxu0 %v13479_v12 }
 0xaf0   :  { %9177 = vmatmul.mubr.bf16.gmra.mrb[220].mxu0 %v13477_v10 }
 0xaf1   :  { %9184 = vmatprep.mubr.bf16.mxu0 %v13482_v51 }
 0xaf3   :  { %v16725_v46 = vpop.f32.mrb[116].mxu0 }
 0xaf4   :  { %v8972_v30 = vpop.f32.mrb[117].mxu0 }
 0xaf5   :  { %v16727_v4 = vpop.f32.mrb[118].mxu0 }
 0xaf6   :  { %v9225_v21 = vpack.c.bf16 %v16727_v4, %v16725_v46  ;;  %v8975_v25 = vpop.f32.mrb[119].mxu0  ;;  %v13499_v4 = vld [vmem:[%s16970_s10] sm:$0xff]  }
 0xaf8   :  { %9185 = vmatmul.mubr.bf16.gmra.mrb[224].mxu0 %v13480_v24 }
 0xaf9   :  { %9192 = vmatprep.mubr.bf16.mxu0 %v13486_v37 }
 0xafb   :  { %v16731_v1 = vpop.f32.mrb[120].mxu0 }
 0xafc   :  { %v8980_v7 = vpop.f32.mrb[121].mxu0 }
 0xafd   :  { %v16733_v29 = vpop.f32.mrb[122].mxu0 }
 0xafe   :  { %v9226_v14 = vpack.c.bf16 %v16733_v29, %v16731_v1  ;;  %v8983_v35 = vpop.f32.mrb[123].mxu0  ;;  %v9817_v1 = vpop.permute.xlu1 %9816 }
 0xb00   :  { %9193 = vmatmul.mubr.bf16.gmra.mrb[228].mxu0 %v13484_v53 }
 0xb01   :  { %9200 = vmatprep.mubr.bf16.mxu0 %v13489_v50 }
 0xb03   :  { %v16737_v39 = vpop.f32.mrb[124].mxu0 }
 0xb04   :  { %v8988_v33 = vpop.f32.mrb[125].mxu0 }
 0xb05   :  { %v16739_v32 = vpop.f32.mrb[126].mxu0 }
 0xb06   :  { %v9227_v28 = vpack.c.bf16 %v16739_v32, %v16737_v39  ;;  %v8991_v45 = vpop.f32.mrb[127].mxu0 }
 0xb08   :  { %9201 = vmatmul.mubr.bf16.gmra.mrb[232].mxu0 %v13487_v38 }
 0xb09   :  { %9208 = vmatprep.mubr.bf16.mxu0 %v13492_v27 }
 0xb0b   :  { %v16743_v41 = vpop.f32.mrb[128].mxu0 }
 0xb0c   :  { %v8996_v36 = vpop.f32.mrb[129].mxu0 }
 0xb0d   :  { %v16745_v60 = vpop.f32.mrb[130].mxu0 }
 0xb0e   :  { %v9228_v52 = vpack.c.bf16 %v16745_v60, %v16743_v41  ;;  %v8999_v40 = vpop.f32.mrb[131].mxu0 }
 0xb10   :  { %9209 = vmatmul.mubr.bf16.gmra.mrb[236].mxu0 %v13490_v16 }
 0xb11   :  { %9216 = vmatprep.mubr.bf16.mxu0 %v13495_v57 }
 0xb13   :  { %v16749_v13 = vpop.f32.mrb[132].mxu0 }
 0xb14   :  { %v9004_v5 = vpop.f32.mrb[133].mxu0 }
 0xb15   :  { %v16751_v62 = vpop.f32.mrb[134].mxu0 }
 0xb16   :  { %v9229_v49 = vpack.c.bf16 %v16751_v62, %v16749_v13  ;;  %v9007_v26 = vpop.f32.mrb[135].mxu0 }
 0xb18   :  { %9217 = vmatmul.mubr.bf16.gmra.mrb[240].mxu0 %v13493_v44 }
 0xb1b   :  { %v16755_v47 = vpop.f32.mrb[136].mxu0 }
 0xb1c   :  { %v9012_v55 = vpop.f32.mrb[137].mxu0 }
 0xb1d   :  { %v16757_v18 = vpop.f32.mrb[138].mxu0 }
 0xb1e   :  { %v9230_v61 = vpack.c.bf16 %v16757_v18, %v16755_v47  ;;  %v9015_v23 = vpop.f32.mrb[139].mxu0 }
 0xb23   :  { %v16761_v2 = vpop.f32.mrb[140].mxu0 }
 0xb24   :  { %v9020_v63 = vpop.f32.mrb[141].mxu0 }
 0xb25   :  { %v16763_v9 = vpop.f32.mrb[142].mxu0 }
 0xb26   :  { %v9231_v19 = vpack.c.bf16 %v16763_v9, %v16761_v2  ;;  %v9023_v22 = vpop.f32.mrb[143].mxu0 }
 0xb2b   :  { %v16767_v59 = vpop.f32.mrb[144].mxu0 }
 0xb2c   :  { %v9028_v0 = vpop.f32.mrb[145].mxu0 }
 0xb2d   :  { %v16769_v58 = vpop.f32.mrb[146].mxu0 }
 0xb2e   :  { %v9232_v6 = vpack.c.bf16 %v16769_v58, %v16767_v59  ;;  %v9031_v43 = vpop.f32.mrb[147].mxu0 }
 0xb33   :  { %v9034_v31 = vpop.f32.mrb[148].mxu0 }
 0xb34   :  { %v9036_v11 = vpop.f32.mrb[149].mxu0 }
 0xb35   :  { %v9037_v8 = vpop.f32.mrb[150].mxu0  ;;  %v13497_v11 = vld [vmem:[%s16969_s9] sm:$0xff]  }
 0xb36   :  { %v9235_v56 = vpack.c.bf16 %v9037_v8, %v9034_v31  ;;  %v9039_v3 = vpop.f32.mrb[151].mxu0 }
 0xb38   :  { %12163 = vmatprep.mubr.msk.bf16.mxu0 %vm9252_vm5, %v9235_v56 }
 0xb3b   :  { %v9042_v54 = vpop.f32.mrb[152].mxu0 }
 0xb3c   :  { %v9044_v42 = vpop.f32.mrb[153].mxu0 }
 0xb3d   :  { %v9045_v20 = vpop.f32.mrb[154].mxu0 }
 0xb3e   :  { %v9236_v48 = vpack.c.bf16 %v9045_v20, %v9042_v54  ;;  %v9047_v34 = vpop.f32.mrb[155].mxu0 }
 0xb40   :  { %12164 = vmatmul.mubr.msk.bf16.vlgmr.msra.gmra.mrb[244].mxu0 %vm9252_vm5, %v9236_v48 }
 0xb41   :  { %12180 = vmatpush3.bf16.msra.mxu0 %v13496_v15 }
 0xb42   :  { %12197 = vmatprep.subr.bf16.mxu0 %v13497_v11 }
 0xb43   :  { %v9050_v17 = vpop.f32.mrb[156].mxu0 }
 0xb44   :  { %v9052_v12 = vpop.f32.mrb[157].mxu0 }
 0xb45   :  { %v9053_v10 = vpop.f32.mrb[158].mxu0 }
 0xb46   :  { %v9237_v51 = vpack.c.bf16 %v9053_v10, %v9050_v17  ;;  %v9055_v24 = vpop.f32.mrb[159].mxu0 }
 0xb48   :  { %12167 = vmatprep.mubr.msk.bf16.mxu0 %vm9252_vm5, %v9237_v51 }
 0xb4b   :  { %v9058_v30 = vpop.f32.mrb[160].mxu0 }
 0xb4c   :  { %v9060_v37 = vpop.f32.mrb[161].mxu0 }
 0xb4d   :  { %v9061_v25 = vpop.f32.mrb[162].mxu0 }
 0xb4e   :  { %v9238_v53 = vpack.c.bf16 %v9061_v25, %v9058_v30  ;;  %v9063_v7 = vpop.f32.mrb[163].mxu0 }
 0xb50   :  { %12168 = vmatmul.mubr.msk.bf16.gmra.mrb[248].mxu0 %vm9252_vm5, %v9238_v53 }
 0xb53   :  { %v9066_v50 = vpop.f32.mrb[164].mxu0 }
 0xb54   :  { %v9068_v35 = vpop.f32.mrb[165].mxu0 }
 0xb55   :  { %v9069_v38 = vpop.f32.mrb[166].mxu0 }
 0xb56   :  { %v9239_v33 = vpack.c.bf16 %v9069_v38, %v9066_v50  ;;  %v9071_v27 = vpop.f32.mrb[167].mxu0 }
 0xb58   :  { %12171 = vmatprep.mubr.msk.bf16.mxu0 %vm9252_vm5, %v9239_v33 }
 0xb5b   :  { %v9074_v45 = vpop.f32.mrb[168].mxu0 }
 0xb5c   :  { %v9076_v16 = vpop.f32.mrb[169].mxu0 }
 0xb5d   :  { %v9077_v36 = vpop.f32.mrb[170].mxu0 }
 0xb5e   :  { %v9240_v57 = vpack.c.bf16 %v9077_v36, %v9074_v45  ;;  %v9079_v40 = vpop.f32.mrb[171].mxu0 }
 0xb60   :  { %12172 = vmatmul.mubr.msk.bf16.gmra.mrb[252].mxu0 %vm9252_vm5, %v9240_v57 }
 0xb63   :  { %v9082_v44 = vpop.f32.mrb[172].mxu0 }
 0xb64   :  { %v9084_v5 = vpop.f32.mrb[173].mxu0 }
 0xb65   :  { %v9085_v26 = vpop.f32.mrb[174].mxu0 }
 0xb66   :  { %v9241_v55 = vpack.c.bf16 %v9085_v26, %v9082_v44  ;;  %v9087_v23 = vpop.f32.mrb[175].mxu0 }
 0xb68   :  { %12175 = vmatprep.mubr.msk.bf16.mxu0 %vm9252_vm5, %v9241_v55 }
 0xb6b   :  { %v9090_v63 = vpop.f32.mrb[176].mxu0 }
 0xb6c   :  { %v9092_v22 = vpop.f32.mrb[177].mxu0 }
 0xb6d   :  { %v9093_v0 = vpop.f32.mrb[178].mxu0 }
 0xb6e   :  { %v9242_v43 = vpack.c.bf16 %v9093_v0, %v9090_v63  ;;  %v9095_v31 = vpop.f32.mrb[179].mxu0 }
 0xb70   :  { %12176 = vmatmul.mubr.msk.bf16.gmra.mrb[0].mxu0 %vm9252_vm5, %v9242_v43 }
 0xb73   :  { %v16787_v8 = vpop.f32.mrb[180].mxu0 }
 0xb74   :  { %v9100_v56 = vpop.f32.mrb[181].mxu0 }
 0xb75   :  { %v16789_v3 = vpop.f32.mrb[182].mxu0 }
 0xb76   :  { %v9374_v15 = vpack.c.bf16 %v16789_v3, %v16787_v8  ;;  %v9103_v54 = vpop.f32.mrb[183].mxu0 }
 0xb7b   :  { %v16793_v42 = vpop.f32.mrb[184].mxu0 }
 0xb7c   :  { %v9108_v20 = vpop.f32.mrb[185].mxu0 }
 0xb7d   :  { %v16795_v48 = vpop.f32.mrb[186].mxu0 }
 0xb7e   :  { %v9375_v34 = vpack.c.bf16 %v16795_v48, %v16793_v42  ;;  %v9111_v17 = vpop.f32.mrb[187].mxu0 }
 0xb83   :  { %v16799_v12 = vpop.f32.mrb[188].mxu0 }
 0xb84   :  { %v9116_v10 = vpop.f32.mrb[189].mxu0 }
 0xb85   :  { %v16801_v51 = vpop.f32.mrb[190].mxu0 }
 0xb86   :  { %v9376_v24 = vpack.c.bf16 %v16801_v51, %v16799_v12  ;;  %v9119_v30 = vpop.f32.mrb[191].mxu0 }
 0xb8b   :  { %v16805_v37 = vpop.f32.mrb[192].mxu0 }
 0xb8c   :  { %v9124_v25 = vpop.f32.mrb[193].mxu0 }
 0xb8d   :  { %v16807_v53 = vpop.f32.mrb[194].mxu0 }
 0xb8e   :  { %v9377_v7 = vpack.c.bf16 %v16807_v53, %v16805_v37  ;;  %v9127_v50 = vpop.f32.mrb[195].mxu0 }
 0xb93   :  { %v16811_v35 = vpop.f32.mrb[196].mxu0 }
 0xb94   :  { %v9132_v38 = vpop.f32.mrb[197].mxu0 }
 0xb95   :  { %v16813_v33 = vpop.f32.mrb[198].mxu0 }
 0xb96   :  { %v9378_v27 = vpack.c.bf16 %v16813_v33, %v16811_v35  ;;  %v9135_v45 = vpop.f32.mrb[199].mxu0 }
 0xb9b   :  { %v16817_v16 = vpop.f32.mrb[200].mxu0 }
 0xb9c   :  { %v9140_v36 = vpop.f32.mrb[201].mxu0 }
 0xb9d   :  { %v16819_v57 = vpop.f32.mrb[202].mxu0 }
 0xb9e   :  { %v9379_v40 = vpack.c.bf16 %v16819_v57, %v16817_v16  ;;  %v9143_v44 = vpop.f32.mrb[203].mxu0 }
 0xb9f   :  { %v13498_v44 = vld [vmem:[%s16969_s9 + $0x10] sm:$0xff]  }
 0xba3   :  { %v16823_v5 = vpop.f32.mrb[204].mxu0 }
 0xba4   :  { %v9148_v26 = vpop.f32.mrb[205].mxu0 }
 0xba5   :  { %v16825_v55 = vpop.f32.mrb[206].mxu0 }
 0xba6   :  { %v9380_v23 = vpack.c.bf16 %v16825_v55, %v16823_v5  ;;  %v9151_v63 = vpop.f32.mrb[207].mxu0 }
 0xbab   :  { %v16829_v22 = vpop.f32.mrb[208].mxu0 }
 0xbac   :  { %v9156_v0 = vpop.f32.mrb[209].mxu0 }
 0xbad   :  { %v16831_v43 = vpop.f32.mrb[210].mxu0 }
 0xbae   :  { %v9159_v56 = vpop.f32.mrb[211].mxu0  ;;  %v17355_v46 = vpack.c.bf16 %v16831_v43, %v16829_v22 }
 0xbb3   :  { %v9162_v54 = vpop.f32.mrb[212].mxu0 }
 0xbb4   :  { %v9164_v20 = vpop.f32.mrb[213].mxu0 }
 0xbb5   :  { %v9165_v17 = vpop.f32.mrb[214].mxu0 }
 0xbb6   :  { %v9385_v10 = vpack.c.bf16 %v9165_v17, %v9162_v54  ;;  %v9167_v30 = vpop.f32.mrb[215].mxu0 }
 0xbb8   :  { %12181 = vmatprep.mubr.msk.bf16.mxu0 %vm9252_vm5, %v9385_v10 }
 0xbbb   :  { %v9170_v25 = vpop.f32.mrb[216].mxu0 }
 0xbbc   :  { %v9172_v50 = vpop.f32.mrb[217].mxu0 }
 0xbbd   :  { %v9173_v38 = vpop.f32.mrb[218].mxu0 }
 0xbbe   :  { %v9386_v45 = vpack.c.bf16 %v9173_v38, %v9170_v25  ;;  %v9175_v36 = vpop.f32.mrb[219].mxu0 }
 0xbc0   :  { %12182 = vmatmul.mubr.msk.bf16.vlgmr.msra.gmra.mrb[244].mxu0 %vm9252_vm5, %v9386_v45 }
 0xbc1   :  { %12198 = vmatpush3.bf16.msra.mxu0 %v13497_v11 }
 0xbc2   :  { %12215 = vmatprep.subr.bf16.mxu0 %v13498_v44 }
 0xbc3   :  { %v9178_v26 = vpop.f32.mrb[220].mxu0 }
 0xbc4   :  { %v9180_v63 = vpop.f32.mrb[221].mxu0 }
 0xbc5   :  { %v9181_v0 = vpop.f32.mrb[222].mxu0 }
 0xbc6   :  { %v9387_v56 = vpack.c.bf16 %v9181_v0, %v9178_v26  ;;  %v9183_v54 = vpop.f32.mrb[223].mxu0 }
 0xbc8   :  { %12185 = vmatprep.mubr.msk.bf16.mxu0 %vm9252_vm5, %v9387_v56 }
 0xbcb   :  { %v9186_v20 = vpop.f32.mrb[224].mxu0 }
 0xbcc   :  { %v9188_v17 = vpop.f32.mrb[225].mxu0 }
 0xbcd   :  { %v9189_v10 = vpop.f32.mrb[226].mxu0 }
 0xbce   :  { %v9388_v30 = vpack.c.bf16 %v9189_v10, %v9186_v20  ;;  %v9191_v25 = vpop.f32.mrb[227].mxu0 }
 0xbd0   :  { %12186 = vmatmul.mubr.msk.bf16.gmra.mrb[248].mxu0 %vm9252_vm5, %v9388_v30 }
 0xbd3   :  { %v9194_v50 = vpop.f32.mrb[228].mxu0 }
 0xbd4   :  { %v9196_v38 = vpop.f32.mrb[229].mxu0 }
 0xbd5   :  { %v9197_v36 = vpop.f32.mrb[230].mxu0 }
 0xbd6   :  { %v9389_v45 = vpack.c.bf16 %v9197_v36, %v9194_v50  ;;  %v9199_v11 = vpop.f32.mrb[231].mxu0 }
 0xbd8   :  { %12189 = vmatprep.mubr.msk.bf16.mxu0 %vm9252_vm5, %v9389_v45 }
 0xbdb   :  { %v9202_v63 = vpop.f32.mrb[232].mxu0 }
 0xbdc   :  { %v9204_v31 = vpop.f32.mrb[233].mxu0 }
 0xbdd   :  { %v9205_v26 = vpop.f32.mrb[234].mxu0 }
 0xbde   :  { %v9390_v0 = vpack.c.bf16 %v9205_v26, %v9202_v63  ;;  %v9207_v54 = vpop.f32.mrb[235].mxu0 }
 0xbe0   :  { %12190 = vmatmul.mubr.msk.bf16.gmra.mrb[252].mxu0 %vm9252_vm5, %v9390_v0 }
 0xbe3   :  { %v9210_v56 = vpop.f32.mrb[236].mxu0 }
 0xbe4   :  { %v9212_v17 = vpop.f32.mrb[237].mxu0 }
 0xbe5   :  { %v9213_v20 = vpop.f32.mrb[238].mxu0 }
 0xbe6   :  { %v9391_v10 = vpack.c.bf16 %v9213_v20, %v9210_v56  ;;  %v9215_v25 = vpop.f32.mrb[239].mxu0 }
 0xbe8   :  { %12193 = vmatprep.mubr.msk.bf16.mxu0 %vm9252_vm5, %v9391_v10 }
 0xbeb   :  { %v9218_v30 = vpop.f32.mrb[240].mxu0 }
 0xbec   :  { %v9220_v38 = vpop.f32.mrb[241].mxu0 }
 0xbed   :  { %v9221_v50 = vpop.f32.mrb[242].mxu0 }
 0xbee   :  { %v9392_v36 = vpack.c.bf16 %v9221_v50, %v9218_v30  ;;  %v9223_v11 = vpop.f32.mrb[243].mxu0 }
 0xbf0   :  { %12194 = vmatmul.mubr.msk.bf16.gmra.mrb[0].mxu0 %vm9252_vm5, %v9392_v36 }
 0xbf1   :  { %12199 = vmatprep.mubr.msk.bf16.mxu0 %vm9252_vm5, %v9225_v21  ;;  %v9812_v21 = vpop.permute.xlu0 %9811 }
 0xbf5   :  { %v9822_v29 = vpop.permute.xlu0 %9821 }
 0xbf8   :  { %12200 = vmatmul.mubr.msk.bf16.vlgmr.msra.gmra.mrb[244].mxu0 %vm9252_vm5, %v9226_v14  ;;  %v9827_v14 = vpop.permute.xlu1 %9826 }
 0xbf9   :  { %12203 = vmatprep.mubr.msk.bf16.mxu0 %vm9252_vm5, %v9227_v28  ;;  %12216 = vmatpush3.bf16.msra.mxu0 %v13498_v44  ;;  %v9832_v39 = vpop.permute.xlu0 %9831 }
 0xbfc   :  { %v9837_v32 = vpop.permute.xlu1 %9836 }
 0xbfd   :  { %v9842_v28 = vpop.permute.xlu0 %9841 }
 0xc00   :  { %12204 = vmatmul.mubr.msk.bf16.gmra.mrb[248].mxu0 %vm9252_vm5, %v9228_v52  ;;  %v9847_v13 = vpop.permute.xlu1 %9846 }
 0xc01   :  { %12207 = vmatprep.mubr.msk.bf16.mxu0 %vm9252_vm5, %v9229_v49 }
 0xc04   :  { %v9857_v8 = vpop.permute.xlu1 %9856 }
 0xc08   :  { %12208 = vmatmul.mubr.msk.bf16.gmra.mrb[252].mxu0 %vm9252_vm5, %v9230_v61  ;;  %v9867_v33 = vpop.permute.xlu1 %9866 }
 0xc09   :  { %12211 = vmatprep.mubr.msk.bf16.mxu0 %vm9252_vm5, %v9231_v19  ;;  %v9852_v19 = vpop.permute.xlu0 %9851 }
 0xc0c   :  { %v9877_v63 = vpop.permute.xlu1 %9876 }
 0xc0d   :  { %v9862_v37 = vpop.permute.xlu0 %9861 }
 0xc10   :  { %12212 = vmatmul.mubr.msk.bf16.gmra.mrb[0].mxu0 %vm9252_vm5, %v9232_v6  ;;  %v9887_v36 = vpop.permute.xlu1 %9886 }
 0xc11   :  { %12217 = vmatprep.mubr.msk.bf16.mxu0 %vm9252_vm5, %v9374_v15  ;;  %v9872_v22 = vpop.permute.xlu0 %9871 }
 0xc15   :  { %v9882_v10 = vpop.permute.xlu0 %9881 }
 0xc18   :  { %12218 = vmatmul.mubr.msk.bf16.vlgmr.msra.gmra.mrb[244].mxu0 %vm9252_vm5, %v9375_v34 }
 0xc19   :  { %12221 = vmatprep.mubr.msk.bf16.mxu0 %vm9252_vm5, %v9376_v24 }
 0xc20   :  { %12222 = vmatmul.mubr.msk.bf16.gmra.mrb[248].mxu0 %vm9252_vm5, %v9377_v7 }
 0xc21   :  { %12225 = vmatprep.mubr.msk.bf16.mxu0 %vm9252_vm5, %v9378_v27 }
 0xc28   :  { %12226 = vmatmul.mubr.msk.bf16.gmra.mrb[252].mxu0 %vm9252_vm5, %v9379_v40 }
 0xc29   :  { %12229 = vmatprep.mubr.msk.bf16.mxu0 %vm9252_vm5, %v9380_v23 }
 0xc30   :  { %12230 = vmatmul.mubr.msk.bf16.gmra.mrb[0].mxu0 %vm9252_vm5, %v17355_v46 }
 0xc31   :  { %12249 = vmatprep.mubr.bf16.mxu0 %v13499_v4 }
 0xceb   :  { %v12219_v41 = vpop.f32.mrb[244].mxu0 }
 0xcec   :  { %v9891_v60 = vadd.f32 %v12219_v41, %v9822_v29  ;;  %v9714_v52 = vpop.f32.mrb[245].mxu0 }
 0xced   :  { %v9889_v62 = vadd.f32 %v9812_v21, %v9714_v52  ;;  %v12220_v49 = vpop.f32.mrb[246].mxu0  ;;  %v13501_v52 = vld [vmem:[%s16972_s12 + $0x10] sm:$0xff]  }
 0xcee   :  { %v9892_v47 = vadd.f32 %v12220_v49, %v9827_v14  ;;  %v9717_v18 = vpop.f32.mrb[247].mxu0  ;;  %v9907_v2 = vmax.f32 %v9891_v60, 0.0  ;;  %v13500_v60 = vld [vmem:[%s16970_s10 + $0x8] sm:$0xff]  }
 0xcef   :  { %v9890_v61 = vadd.f32 %v9817_v1, %v9717_v18  ;;  %v9905_v59 = vmax.f32 %v9889_v62, 0.0  ;;  %v13502_v62 = vld [vmem:[%s16972_s12 + $0x18] sm:$0xff]  }
 0xcf0   :  { %v9908_v9 = vmax.f32 %v9892_v47, 0.0 }
 0xcf1   :  { %v9906_v58 = vmax.f32 %v9890_v61, 0.0 }
 0xcf2   :  { %v9922_v6 = vpack.c.bf16 %v9908_v9, %v9907_v2  ;;  %v13503_v2 = vld [vmem:[%s16972_s12 + $0x30] sm:$0xff]  }
 0xcf3   :  { %v9921_v3 = vpack.c.bf16 %v9906_v58, %v9905_v59  ;;  %v12223_v15 = vpop.f32.mrb[248].mxu0  ;;  %v13505_v59 = vld [vmem:[%s16972_s12] sm:$0xff]  }
 0xcf4   :  { %v9895_v42 = vadd.f32 %v12223_v15, %v9842_v28  ;;  %v9730_v48 = vpop.f32.mrb[249].mxu0  ;;  %v13508_v15 = vld [vmem:[%s16972_s12 + $0x28] sm:$0xff]  }
 0xcf5   :  { %v9893_v34 = vadd.f32 %v9832_v39, %v9730_v48  ;;  %v12224_v12 = vpop.f32.mrb[250].mxu0  ;;  %12233 = vmatprep.subr.bf16.mxu0 %v9921_v3 }
 0xcf6   :  { %v9896_v51 = vadd.f32 %v12224_v12, %v9847_v13  ;;  %v9733_v24 = vpop.f32.mrb[251].mxu0  ;;  %12234 = vmatpush3.bf16.msra.mxu0 %v9921_v3  ;;  %v9911_v7 = vmax.f32 %v9895_v42, 0.0  ;;  %v13563_v13 = vmov 0.0  }
 0xcf7   :  { %v9894_v53 = vadd.f32 %v9837_v32, %v9733_v24  ;;  %12235 = vmatprep.subr.bf16.mxu0 %v9922_v6  ;;  %v9909_v27 = vmax.f32 %v9893_v34, 0.0 }
 0xcf8   :  { %v9912_v35 = vmax.f32 %v9896_v51, 0.0 }
 0xcf9   :  { %v9910_v16 = vmax.f32 %v9894_v53, 0.0 }
 0xcfa   :  { %v9924_v57 = vpack.c.bf16 %v9912_v35, %v9911_v7  ;;  %12236 = vmatpush3.bf16.msra.mxu0 %v9922_v6  ;;  %v13506_v6 = vld [vmem:[%s16972_s12 + $0x8] sm:$0xff]  }
 0xcfb   :  { %v9923_v40 = vpack.c.bf16 %v9910_v16, %v9909_v27  ;;  %v12227_v5 = vpop.f32.mrb[252].mxu0 }
 0xcfc   :  { %v9899_v55 = vadd.f32 %v12227_v5, %v9862_v37  ;;  %v9746_v23 = vpop.f32.mrb[253].mxu0 }
 0xcfd   :  { %v9897_v43 = vadd.f32 %v9852_v19, %v9746_v23  ;;  %v12228_v31 = vpop.f32.mrb[254].mxu0  ;;  %12237 = vmatprep.subr.bf16.mxu0 %v9923_v40  ;;  %v13504_v19 = vld [vmem:[%s16972_s12 + $0x38] sm:$0xff]  }
 0xcfe   :  { %v9900_v44 = vadd.f32 %v12228_v31, %v9867_v33  ;;  %v9749_v45 = vpop.f32.mrb[255].mxu0  ;;  %12238 = vmatpush3.bf16.msra.mxu0 %v9923_v40  ;;  %v9915_v0 = vmax.f32 %v9899_v55, 0.0  ;;  %v10242_v31 = vpop.permute.xlu0 %10241 }
 0xcff   :  { %v9898_v26 = vadd.f32 %v9857_v8, %v9749_v45  ;;  %12239 = vmatprep.subr.bf16.mxu0 %v9924_v57  ;;  %v9913_v56 = vmax.f32 %v9897_v43, 0.0  ;;  %v13507_v8 = vld [vmem:[%s16972_s12 + $0x20] sm:$0xff]   ;;  %s13565_s12 = smov 96  }
 0xd00   :  { %v9916_v54 = vmax.f32 %v9900_v44, 0.0 }
 0xd01   :  { %v9914_v17 = vmax.f32 %v9898_v26, 0.0 }
 0xd02   :  { %v9926_v20 = vpack.c.bf16 %v9916_v54, %v9915_v0  ;;  %12240 = vmatpush3.bf16.msra.mxu0 %v9924_v57 }
 0xd03   :  { %v9925_v25 = vpack.c.bf16 %v9914_v17, %v9913_v56  ;;  %v12231_v30 = vpop.f32.mrb[0].mxu0 }
 0xd04   :  { %v9903_v38 = vadd.f32 %v12231_v30, %v9882_v10  ;;  %v9762_v50 = vpop.f32.mrb[1].mxu0 }
 0xd05   :  { %v9901_v11 = vadd.f32 %v9872_v22, %v9762_v50  ;;  %v12232_v46 = vpop.f32.mrb[2].mxu0  ;;  %12241 = vmatprep.subr.bf16.mxu0 %v9925_v25 }
 0xd06   :  { %v9904_v4 = vadd.f32 %v12232_v46, %v9887_v36  ;;  %v9765_v21 = vpop.f32.mrb[3].mxu0  ;;  %12242 = vmatpush3.bf16.msra.mxu0 %v9925_v25  ;;  %v9919_v29 = vmax.f32 %v9903_v38, 0.0 }
 0xd07   :  { %v9902_v1 = vadd.f32 %v9877_v63, %v9765_v21  ;;  %12243 = vmatprep.subr.bf16.mxu0 %v9926_v20  ;;  %v9917_v39 = vmax.f32 %v9901_v11, 0.0 }
 0xd08   :  { %v9920_v14 = vmax.f32 %v9904_v4, 0.0 }
 0xd09   :  { %v9918_v32 = vmax.f32 %v9902_v1, 0.0 }
 0xd0a   :  { %v9928_v28 = vpack.c.bf16 %v9920_v14, %v9919_v29  ;;  %12244 = vmatpush3.bf16.msra.mxu0 %v9926_v20 }
 0xd0b   :  { %v9927_v41 = vpack.c.bf16 %v9918_v32, %v9917_v39 }
 0xd0d   :  { %12245 = vmatprep.subr.bf16.mxu0 %v9927_v41 }
 0xd0e   :  { %12246 = vmatpush3.bf16.msra.mxu0 %v9927_v41 }
 0xd0f   :  { %12247 = vmatprep.subr.bf16.mxu0 %v9928_v28 }
 0xd12   :  { %12248 = vmatpush3.bf16.msra.mxu0 %v9928_v28 }
 0xd13   :  { %12253 = vmatprep.subr.bf16.mxu0 %v13563_v13 }
 0xd15   :  { %12250 = vmatmul.mubr.bf16.vlgmr.msra.gmra.mrb[4].mxu0 %v13500_v60 }
 0xd16   :  { %12254 = vmatpush3.bf16.msra.mxu0 %v13501_v52  ;;  %12257 = vmatprep.mubr.msk.bf16.mxu0 %vm13564_vm6, %v13563_v13 }
 0xd17   :  { %12255 = vmatprep.subr.bf16.mxu0 %v13563_v13 }
 0xd1a   :  { %12256 = vmatpush3.bf16.msra.mxu0 %v13502_v62 }
 0xd1b   :  { %12261 = vmatprep.subr.bf16.mxu0 %v13563_v13 }
 0xde8   :  { %v12251_v49 = vpop.f32.mrb[4].mxu0 }
 0xde9   :  { %v9979_v47 = vpop.f32.mrb[5].mxu0  ;;  %v10060_v42 = vpack.c.bf16 %v12251_v49, %v12251_v49 }
 0xdea   :  { %v12252_v18 = vpop.f32.mrb[6].mxu0  ;;  %v9994_v3 = vpack.c.bf16 %v9979_v47, %v9979_v47 }
 0xdeb   :  { %v9982_v61 = vpop.f32.mrb[7].mxu0  ;;  %v10066_v58 = vpack.c.bf16 %v12252_v18, %v12252_v18 }
 0xdec   :  { %v9999_v9 = vpack.c.bf16 %v9982_v61, %v9982_v61 }
 0xdee   :  { %12258 = vmatmul.mubr.msk.bf16.vlgmr.msra.gmra.mrb[8].mxu0 %vm962_vm0, %v9999_v9 }
 0xdef   :  { %12262 = vmatpush3.bf16.msra.mxu0 %v13503_v2  ;;  %12265 = vmatprep.mubr.msk.bf16.mxu0 %vm13564_vm6, %v13563_v13 }
 0xdf0   :  { %12263 = vmatprep.subr.bf16.mxu0 %v13563_v13 }
 0xdf3   :  { %12264 = vmatpush3.bf16.msra.mxu0 %v13504_v19 }
 0xdf4   :  { %12269 = vmatprep.subr.bf16.mxu0 %v13563_v13 }
 0xdf6   :  { %12266 = vmatmul.mubr.msk.bf16.vlgmr.msra.gmra.mrb[12].mxu0 %vm962_vm0, %v10066_v58 }
 0xdf7   :  { %12270 = vmatpush3.bf16.msra.mxu0 %v13505_v59  ;;  %12273 = vmatprep.mubr.msk.bf16.mxu0 %vm13564_vm6, %v13563_v13 }
 0xdf8   :  { %12271 = vmatprep.subr.bf16.mxu0 %v13563_v13 }
 0xdfb   :  { %12272 = vmatpush3.bf16.msra.mxu0 %v13506_v6 }
 0xdfc   :  { %12277 = vmatprep.subr.bf16.mxu0 %v13563_v13 }
 0xdfe   :  { %12274 = vmatmul.mubr.msk.bf16.vlgmr.msra.gmra.mrb[16].mxu0 %vm962_vm0, %v9994_v3 }
 0xdff   :  { %12278 = vmatpush3.bf16.msra.mxu0 %v13507_v8  ;;  %12281 = vmatprep.mubr.msk.bf16.mxu0 %vm13564_vm6, %v13563_v13 }
 0xe00   :  { %12279 = vmatprep.subr.bf16.mxu0 %v13563_v13 }
 0xe03   :  { %12280 = vmatpush3.bf16.msra.mxu0 %v13508_v15 }
 0xe06   :  { %12282 = vmatmul.mubr.msk.bf16.vlgmr.msra.gmra.mrb[20].mxu0 %vm962_vm0, %v10060_v42 }
 0xec1   :  { %v10054_v48 = vpop.f32.mrb[8].mxu0 }
 0xec2   :  { %v12259_v34 = vpop.f32.mrb[9].mxu0 }
 0xec3   :  { %v10057_v12 = vpop.f32.mrb[10].mxu0 }
 0xec4   :  { %v12260_v51 = vpop.f32.mrb[11].mxu0 }
 0xec9   :  { %v10121_v24 = vpop.f32.mrb[12].mxu0 }
 0xeca   :  { %v12267_v37 = vpop.f32.mrb[13].mxu0 }
 0xecb   :  { %v10124_v53 = vpop.f32.mrb[14].mxu0 }
 0xecc   :  { %v12268_v7 = vpop.f32.mrb[15].mxu0 }
 0xed1   :  { %v10176_v35 = vpop.f32.mrb[16].mxu0 }
 0xed2   :  { %v10177_v33 = vadd.f32 %v10176_v35, %v10054_v48  ;;  %v12275_v27 = vpop.f32.mrb[17].mxu0 }
 0xed3   :  { %v10179_v16 = vpop.f32.mrb[18].mxu0 }
 0xed4   :  { %v12276_v57 = vpop.f32.mrb[19].mxu0 }
 0xed9   :  { %v10231_v40 = vpop.f32.mrb[20].mxu0 }
 0xeda   :  { %v10232_v5 = vadd.f32 %v10231_v40, %v10121_v24  ;;  %v12283_v55 = vpop.f32.mrb[21].mxu0 }
 0xedb   :  { %v10234_v23 = vpop.f32.mrb[22].mxu0 }
 0xedc   :  { %v10237_v22 = vadd.f32 %v10232_v5, %v10177_v33  ;;  %v12284_v43 = vpop.f32.mrb[23].mxu0 }
 0xede   :  { %v10244_v44 = vadd.f32 %v10242_v31, %v10237_v22 }
 0xee0   :  { %13509 = vtanh.f32 %v10244_v44 }
 0xeea   :  { %v13510_v45 = vpop.eup %13509 }
 0xeeb   :  { %10249 = vrot.lane.b32.xlu1 %v13510_v45, %s13565_s12  ;;  %10247 = vst.msk [vmem:[#allocation5] sm:$0xf] %vm10246_vm7, %v13510_v45 }
 0xf5d   :  { %v10250_v63 = vpop.permute.xlu1 %10249 }
 0xf5e   :  { %10253 = vst.msk [vmem:[#allocation5 + $0x4] sm:$0xf] %vm10246_vm7, %v10250_v63 }
 0xf5f   :  { %13544 = shalt.err (!%p13541_p12)
}
 0xf60   :  { %s13545_s5 = scalar_lea.hbm %s16973_s13, 128 }
 0xf61   :  { %p13546_p13 = scmp.ne.s32.totalorder %s16973_s13, %s13545_s5  ;;  %p13549_p0 = scmp.lt.u32.totalorder %s13545_s5, %s16973_s13 }
 0xf63   :  { %p13551_p1 = pnand %p13549_p0, %p13546_p13 }
 0xf65   :  { %13554 = shalt.err (!%p13551_p1)
}
 0xf66   :  { %s13567_s11 = smov 64   ;;  %s13568_s2 = smov 4  }
 0xf67   :  { %10265 = dma.vmem_to_hbm [thread:$0]  %s10260_s6, 128, %s16973_s13, [#allocation4], %s13567_s11, %s13567_s11, %s13568_s2  }
 0xf68   :  { %13557 = dma.done.wait [#allocation4], 128  }
 0xf69   :  { %13558 = vsyncadd [#allocation4], 4294967168 }
 0xf6a   :  { %10269 = vsyncpa [#allocation3], 1 }
 0xf6b   :  { %10270 = vsyncpa [#allocation4], 1 }

</bundles_post_ra>
